<compile_context>
chip_gen: v6e
topology: v6e:2x2x1
jax: 0.10.0
libtpu: 0.0.40
codegen_flags: <defaults>
</compile_context>

<pallas_src>
import jax
import jax.numpy as jnp
from jax import lax
from jax.experimental import pallas as pl
from jax.experimental.pallas import tpu as pltpu

# ---- module hyper-params (small, consistent with the PyTorch module) ----
INPUT_SIZE = 32     # vocab size (nn.Embedding num_embeddings)
VECTOR_SIZE = 16    # embedding dim
HIDDEN_SIZE = 32    # LSTM hidden (module default 100; kept small + lane-aligned.
                    # If restored to 100, pad H to 128 so 4H stays a lane multiple.)
NUM_LAYERS = 2
NUM_CLASSES = 6
BATCH = 2
SEQ = 8


def make_classifier_kernel(T, B, H):
    """Builds the fused forward kernel for static T (seq), B (batch), H (hidden)."""
    H4 = 4 * H

    def cell(gates, c_prev, g_mask):
        # LSTM cell update. gates: (B, 4H) pre-activation, gate order [i, f, g, o].
        # One full-width sigmoid + one full-width tanh, select the 'g' lanes — 2 EUP
        # pushes for the gates instead of 4 sliced ones; +1 for tanh(c).
        act = jnp.where(g_mask, jnp.tanh(gates), jax.nn.sigmoid(gates))
        i = act[:, 0:H]
        f = act[:, H:2 * H]
        g = act[:, 2 * H:3 * H]
        o = act[:, 3 * H:4 * H]
        c = f * c_prev + i * g
        h = o * jnp.tanh(c)
        return h, c

    def kernel(ids_ref, emb_ref,
               wih0_ref, b0_ref, whh0f_ref, whh0b_ref,
               wih1_ref, b1_ref, whh1f_ref, whh1b_ref,
               fcw_ref, fcb_ref, out_ref):
        f32 = jnp.float32
        V = emb_ref.shape[0]
        TB = T * B

        # ---- embedding lookup as a one-hot matmul (in-kernel gather on the MXU) ----
        ids = ids_ref[...]                                               # (T*B, 1) int32, time-major
        onehot = (lax.broadcasted_iota(jnp.int32, (TB, V), 1) == ids).astype(f32)
        x0 = jnp.dot(onehot, emb_ref[...], preferred_element_type=f32)   # (T*B, D)

        # Gate-position mask built once and reused by every unrolled step.
        lane = lax.broadcasted_iota(jnp.int32, (B, H4), 1)
        g_mask = (lane >= 2 * H) & (lane < 3 * H)

        def bilstm_layer(x_flat, wih_ref, b_ref, whhf_ref, whhb_ref):
            # x_flat: (T*B, Din), time-major rows (row t*B + b).
            # wih_ref: (Din, 8H) — cols [0,4H)=forward dir, [4H,8H)=backward dir.
            # Input projection + bias hoisted out of the recurrence (one MXU push
            # for both directions of all T steps).
            xp = jnp.dot(x_flat, wih_ref[...], preferred_element_type=f32) + b_ref[...]
            xpf = xp[:, :H4]          # (T*B, 4H) forward-dir input contribution
            xpb = xp[:, H4:]          # (T*B, 4H) backward-dir input contribution
            whh_f = whhf_ref[...]
            whh_b = whhb_ref[...]

            h_f = jnp.zeros((B, H), f32)
            c_f = jnp.zeros((B, H), f32)
            h_b = jnp.zeros((B, H), f32)
            c_b = jnp.zeros((B, H), f32)
            outs_f = [None] * T
            outs_b = [None] * T

            # Fully unrolled time loop; the forward and backward recurrences are
            # independent serial chains and interleave so MXU/EUP latency of one
            # hides behind the other.
            for t in range(T):
                tb = T - 1 - t   # backward direction processes reversed time order
                gates_f = xpf[t * B:(t + 1) * B, :] + jnp.dot(
                    h_f, whh_f, preferred_element_type=f32)
                gates_b = xpb[tb * B:(tb + 1) * B, :] + jnp.dot(
                    h_b, whh_b, preferred_element_type=f32)
                h_f, c_f = cell(gates_f, c_f, g_mask)
                h_b, c_b = cell(gates_b, c_b, g_mask)
                outs_f[t] = h_f
                outs_b[tb] = h_b   # re-aligned to original time index
            return outs_f, outs_b

        of0, ob0 = bilstm_layer(x0, wih0_ref, b0_ref, whh0f_ref, whh0b_ref)
        # Layer-1 input (T*B, 2H), time-major; stays entirely in vregs/VMEM.
        x1 = jnp.concatenate(
            [jnp.concatenate([of0[t], ob0[t]], axis=1) for t in range(T)], axis=0)
        # TODO(synk): nn.LSTM inter-layer dropout (p=0.25) applies only in training
        # mode; this is the inference forward, so it is omitted.
        of1, ob1 = bilstm_layer(x1, wih1_ref, b1_ref, whh1f_ref, whh1b_ref)

        # torch.cat((outputs[:, 0], outputs[:, -1]), -1) -> (B, 4H), then the FC head.
        feat = jnp.concatenate([of1[0], ob1[0], of1[T - 1], ob1[T - 1]], axis=1)
        out_ref[...] = (jnp.dot(feat, fcw_ref[...], preferred_element_type=f32)
                        + fcb_ref[...])

    return kernel


def classifier_forward(params, inputs):
    """inputs: (B, T) int32 token ids -> logits (B, NUM_CLASSES)."""
    B, T = inputs.shape
    # Time-major flat row order (t*B + b) so the hoisted input projection can
    # slice each time step with a static contiguous row range.
    ids_tm = jnp.transpose(inputs).reshape(T * B, 1).astype(jnp.int32)

    vmem = pl.BlockSpec(memory_space=pltpu.MemorySpace.VMEM)
    kernel = make_classifier_kernel(T, B, HIDDEN_SIZE)
    return pl.pallas_call(
        kernel,
        out_shape=jax.ShapeDtypeStruct((B, NUM_CLASSES), jnp.float32),
        in_specs=[vmem] * 12,
        out_specs=vmem,
    )(ids_tm,
      params["embedding"],
      params["wih_l0"], params["b_l0"], params["whh_l0_f"], params["whh_l0_b"],
      params["wih_l1"], params["b_l1"], params["whh_l1_f"], params["whh_l1_b"],
      params["fc_w"], params["fc_b"])


def init_params(key):
    """Deterministic param init (shapes mirror the PyTorch module, pre-transposed
    to (Din, 4H)/(H, 4H) and with the two directions' W_ih/bias concatenated)."""
    params = {}
    k_emb, key = jax.random.split(key)
    params["embedding"] = jax.random.normal(
        k_emb, (INPUT_SIZE, VECTOR_SIZE), jnp.float32)

    bound = 1.0 / jnp.sqrt(jnp.float32(HIDDEN_SIZE))
    for layer in range(NUM_LAYERS):
        d_in = VECTOR_SIZE if layer == 0 else 2 * HIDDEN_SIZE
        wih_dirs, b_dirs, whh_dirs = [], [], []
        for _ in range(2):  # forward, backward
            key, k1, k2, k3, k4 = jax.random.split(key, 5)
            wih_dirs.append(jax.random.uniform(
                k1, (d_in, 4 * HIDDEN_SIZE), jnp.float32, -bound, bound))
            whh_dirs.append(jax.random.uniform(
                k2, (HIDDEN_SIZE, 4 * HIDDEN_SIZE), jnp.float32, -bound, bound))
            b_ih = jax.random.uniform(
                k3, (1, 4 * HIDDEN_SIZE), jnp.float32, -bound, bound)
            b_hh = jax.random.uniform(
                k4, (1, 4 * HIDDEN_SIZE), jnp.float32, -bound, bound)
            b_dirs.append(b_ih + b_hh)  # combined bias
        params[f"wih_l{layer}"] = jnp.concatenate(wih_dirs, axis=1)   # (Din, 8H)
        params[f"b_l{layer}"] = jnp.concatenate(b_dirs, axis=1)       # (1, 8H)
        params[f"whh_l{layer}_f"] = whh_dirs[0]                       # (H, 4H)
        params[f"whh_l{layer}_b"] = whh_dirs[1]                       # (H, 4H)

    key, kw, kb = jax.random.split(key, 3)
    fb = 1.0 / jnp.sqrt(jnp.float32(4 * HIDDEN_SIZE))
    params["fc_w"] = jax.random.uniform(
        kw, (4 * HIDDEN_SIZE, NUM_CLASSES), jnp.float32, -fb, fb)
    params["fc_b"] = jax.random.uniform(
        kb, (1, NUM_CLASSES), jnp.float32, -fb, fb)
    return params


if __name__ == "__main__":
    key = jax.random.PRNGKey(0)
    k_params, k_inputs = jax.random.split(key)
    params = init_params(k_params)
    inputs = jax.random.randint(
        k_inputs, (BATCH, SEQ), minval=0, maxval=INPUT_SIZE, dtype=jnp.int32)

    logits = jax.jit(classifier_forward)(params, inputs)
    jax.block_until_ready(logits)
    assert logits.shape == (BATCH, NUM_CLASSES), logits.shape
    assert logits.dtype == jnp.float32
    print("KERNEL_OK")
</pallas_src>

<mosaic_0001>
module attributes {stable_mosaic.version = 11 : i64} {
  func.func @kernel(%arg0: memref<16x1xi32, #tpu.memory_space<vmem>>, %arg1: memref<32x16xf32, #tpu.memory_space<vmem>>, %arg2: memref<16x256xf32, #tpu.memory_space<vmem>>, %arg3: memref<1x256xf32, #tpu.memory_space<vmem>>, %arg4: memref<32x128xf32, #tpu.memory_space<vmem>>, %arg5: memref<32x128xf32, #tpu.memory_space<vmem>>, %arg6: memref<64x256xf32, #tpu.memory_space<vmem>>, %arg7: memref<1x256xf32, #tpu.memory_space<vmem>>, %arg8: memref<32x128xf32, #tpu.memory_space<vmem>>, %arg9: memref<32x128xf32, #tpu.memory_space<vmem>>, %arg10: memref<128x6xf32, #tpu.memory_space<vmem>>, %arg11: memref<1x6xf32, #tpu.memory_space<vmem>>, %arg12: memref<2x6xf32, #tpu.memory_space<vmem>>) attributes {dimension_semantics = [], scalar_prefetch = 0 : i64, scratch_operands = 0 : i64, tpu.core_type = #tpu.core_type<tc>} {
    %c0 = arith.constant 0 : index
    %c0_0 = arith.constant 0 : index
    %0 = vector.load %arg0[%c0, %c0_0] : memref<16x1xi32, #tpu.memory_space<vmem>>, vector<16x1xi32>
    %1 = tpu.iota {dimensions = array<i32: 1>} : vector<16x32xi32>
    %2 = vector.broadcast %0 : vector<16x1xi32> to vector<16x32xi32>
    %3 = arith.cmpi eq, %1, %2 : vector<16x32xi32>
    %4 = arith.extui %3 : vector<16x32xi1> to vector<16x32xi32>
    %5 = arith.sitofp %4 : vector<16x32xi32> to vector<16x32xf32>
    %c0_1 = arith.constant 0 : index
    %c0_2 = arith.constant 0 : index
    %6 = vector.load %arg1[%c0_1, %c0_2] : memref<32x16xf32, #tpu.memory_space<vmem>>, vector<32x16xf32>
    %cst = arith.constant dense<0.000000e+00> : vector<16x16xf32>
    %7 = tpu.matmul %5, %6, %cst {dimension_numbers = #tpu.dot_dimension_numbers<[1], [0], [0], [1], [0, 0, 1, 1], [], []>} : vector<16x32xf32>, vector<32x16xf32>, vector<16x16xf32> -> vector<16x16xf32>
    %8 = tpu.iota {dimensions = array<i32: 1>} : vector<2x128xi32>
    %c64_i32 = arith.constant 64 : i32
    %9 = vector.broadcast %c64_i32 : i32 to vector<2x128xi32>
    %10 = arith.cmpi sge, %8, %9 : vector<2x128xi32>
    %c96_i32 = arith.constant 96 : i32
    %11 = vector.broadcast %c96_i32 : i32 to vector<2x128xi32>
    %12 = arith.cmpi slt, %8, %11 : vector<2x128xi32>
    %13 = arith.andi %10, %12 : vector<2x128xi1>
    %c0_3 = arith.constant 0 : index
    %c0_4 = arith.constant 0 : index
    %14 = vector.load %arg2[%c0_3, %c0_4] : memref<16x256xf32, #tpu.memory_space<vmem>>, vector<16x256xf32>
    %cst_5 = arith.constant dense<0.000000e+00> : vector<16x256xf32>
    %15 = tpu.matmul %7, %14, %cst_5 {dimension_numbers = #tpu.dot_dimension_numbers<[1], [0], [0], [1], [0, 0, 1, 1], [], []>} : vector<16x16xf32>, vector<16x256xf32>, vector<16x256xf32> -> vector<16x256xf32>
    %c0_6 = arith.constant 0 : index
    %c0_7 = arith.constant 0 : index
    %16 = vector.load %arg3[%c0_6, %c0_7] : memref<1x256xf32, #tpu.memory_space<vmem>>, vector<1x256xf32>
    %17 = vector.broadcast %16 : vector<1x256xf32> to vector<16x256xf32>
    %18 = arith.addf %15, %17 : vector<16x256xf32>
    %19 = vector.extract_strided_slice %18 {offsets = [0, 0], sizes = [16, 128], strides = [1, 1]} : vector<16x256xf32> to vector<16x128xf32>
    %20 = vector.extract_strided_slice %18 {offsets = [0, 128], sizes = [16, 128], strides = [1, 1]} : vector<16x256xf32> to vector<16x128xf32>
    %c0_8 = arith.constant 0 : index
    %c0_9 = arith.constant 0 : index
    %21 = vector.load %arg4[%c0_8, %c0_9] : memref<32x128xf32, #tpu.memory_space<vmem>>, vector<32x128xf32>
    %c0_10 = arith.constant 0 : index
    %c0_11 = arith.constant 0 : index
    %22 = vector.load %arg5[%c0_10, %c0_11] : memref<32x128xf32, #tpu.memory_space<vmem>>, vector<32x128xf32>
    %cst_12 = arith.constant 0.000000e+00 : f32
    %23 = vector.broadcast %cst_12 : f32 to vector<2x32xf32>
    %cst_13 = arith.constant 0.000000e+00 : f32
    %24 = vector.broadcast %cst_13 : f32 to vector<2x32xf32>
    %cst_14 = arith.constant 0.000000e+00 : f32
    %25 = vector.broadcast %cst_14 : f32 to vector<2x32xf32>
    %cst_15 = arith.constant 0.000000e+00 : f32
    %26 = vector.broadcast %cst_15 : f32 to vector<2x32xf32>
    %27 = vector.extract_strided_slice %19 {offsets = [0, 0], sizes = [2, 128], strides = [1, 1]} : vector<16x128xf32> to vector<2x128xf32>
    %cst_16 = arith.constant dense<0.000000e+00> : vector<2x128xf32>
    %28 = tpu.matmul %23, %21, %cst_16 {dimension_numbers = #tpu.dot_dimension_numbers<[1], [0], [0], [1], [0, 0, 1, 1], [], []>} : vector<2x32xf32>, vector<32x128xf32>, vector<2x128xf32> -> vector<2x128xf32>
    %29 = arith.addf %27, %28 : vector<2x128xf32>
    %30 = vector.extract_strided_slice %20 {offsets = [14, 0], sizes = [2, 128], strides = [1, 1]} : vector<16x128xf32> to vector<2x128xf32>
    %cst_17 = arith.constant dense<0.000000e+00> : vector<2x128xf32>
    %31 = tpu.matmul %25, %22, %cst_17 {dimension_numbers = #tpu.dot_dimension_numbers<[1], [0], [0], [1], [0, 0, 1, 1], [], []>} : vector<2x32xf32>, vector<32x128xf32>, vector<2x128xf32> -> vector<2x128xf32>
    %32 = arith.addf %30, %31 : vector<2x128xf32>
    %33 = math.tanh %29 : vector<2x128xf32>
    %34 = arith.negf %29 : vector<2x128xf32>
    %35 = math.exp %34 : vector<2x128xf32>
    %cst_18 = arith.constant 1.000000e+00 : f32
    %36 = vector.broadcast %cst_18 : f32 to vector<2x128xf32>
    %37 = arith.addf %36, %35 : vector<2x128xf32>
    %38 = arith.divf %36, %37 : vector<2x128xf32>
    %39 = arith.select %13, %33, %38 : vector<2x128xi1>, vector<2x128xf32>
    %40 = vector.extract_strided_slice %39 {offsets = [0, 0], sizes = [2, 32], strides = [1, 1]} : vector<2x128xf32> to vector<2x32xf32>
    %41 = vector.extract_strided_slice %39 {offsets = [0, 32], sizes = [2, 32], strides = [1, 1]} : vector<2x128xf32> to vector<2x32xf32>
    %42 = vector.extract_strided_slice %39 {offsets = [0, 64], sizes = [2, 32], strides = [1, 1]} : vector<2x128xf32> to vector<2x32xf32>
    %43 = vector.extract_strided_slice %39 {offsets = [0, 96], sizes = [2, 32], strides = [1, 1]} : vector<2x128xf32> to vector<2x32xf32>
    %44 = arith.mulf %41, %24 : vector<2x32xf32>
    %45 = arith.mulf %40, %42 : vector<2x32xf32>
    %46 = arith.addf %44, %45 : vector<2x32xf32>
    %47 = math.tanh %46 : vector<2x32xf32>
    %48 = arith.mulf %43, %47 : vector<2x32xf32>
    %49 = math.tanh %32 : vector<2x128xf32>
    %50 = arith.negf %32 : vector<2x128xf32>
    %51 = math.exp %50 : vector<2x128xf32>
    %cst_19 = arith.constant 1.000000e+00 : f32
    %52 = vector.broadcast %cst_19 : f32 to vector<2x128xf32>
    %53 = arith.addf %52, %51 : vector<2x128xf32>
    %54 = arith.divf %52, %53 : vector<2x128xf32>
    %55 = arith.select %13, %49, %54 : vector<2x128xi1>, vector<2x128xf32>
    %56 = vector.extract_strided_slice %55 {offsets = [0, 0], sizes = [2, 32], strides = [1, 1]} : vector<2x128xf32> to vector<2x32xf32>
    %57 = vector.extract_strided_slice %55 {offsets = [0, 32], sizes = [2, 32], strides = [1, 1]} : vector<2x128xf32> to vector<2x32xf32>
    %58 = vector.extract_strided_slice %55 {offsets = [0, 64], sizes = [2, 32], strides = [1, 1]} : vector<2x128xf32> to vector<2x32xf32>
    %59 = vector.extract_strided_slice %55 {offsets = [0, 96], sizes = [2, 32], strides = [1, 1]} : vector<2x128xf32> to vector<2x32xf32>
    %60 = arith.mulf %57, %26 : vector<2x32xf32>
    %61 = arith.mulf %56, %58 : vector<2x32xf32>
    %62 = arith.addf %60, %61 : vector<2x32xf32>
    %63 = math.tanh %62 : vector<2x32xf32>
    %64 = arith.mulf %59, %63 : vector<2x32xf32>
    %65 = vector.extract_strided_slice %19 {offsets = [2, 0], sizes = [2, 128], strides = [1, 1]} : vector<16x128xf32> to vector<2x128xf32>
    %cst_20 = arith.constant dense<0.000000e+00> : vector<2x128xf32>
    %66 = tpu.matmul %48, %21, %cst_20 {dimension_numbers = #tpu.dot_dimension_numbers<[1], [0], [0], [1], [0, 0, 1, 1], [], []>} : vector<2x32xf32>, vector<32x128xf32>, vector<2x128xf32> -> vector<2x128xf32>
    %67 = arith.addf %65, %66 : vector<2x128xf32>
    %68 = vector.extract_strided_slice %20 {offsets = [12, 0], sizes = [2, 128], strides = [1, 1]} : vector<16x128xf32> to vector<2x128xf32>
    %cst_21 = arith.constant dense<0.000000e+00> : vector<2x128xf32>
    %69 = tpu.matmul %64, %22, %cst_21 {dimension_numbers = #tpu.dot_dimension_numbers<[1], [0], [0], [1], [0, 0, 1, 1], [], []>} : vector<2x32xf32>, vector<32x128xf32>, vector<2x128xf32> -> vector<2x128xf32>
    %70 = arith.addf %68, %69 : vector<2x128xf32>
    %71 = math.tanh %67 : vector<2x128xf32>
    %72 = arith.negf %67 : vector<2x128xf32>
    %73 = math.exp %72 : vector<2x128xf32>
    %cst_22 = arith.constant 1.000000e+00 : f32
    %74 = vector.broadcast %cst_22 : f32 to vector<2x128xf32>
    %75 = arith.addf %74, %73 : vector<2x128xf32>
    %76 = arith.divf %74, %75 : vector<2x128xf32>
    %77 = arith.select %13, %71, %76 : vector<2x128xi1>, vector<2x128xf32>
    %78 = vector.extract_strided_slice %77 {offsets = [0, 0], sizes = [2, 32], strides = [1, 1]} : vector<2x128xf32> to vector<2x32xf32>
    %79 = vector.extract_strided_slice %77 {offsets = [0, 32], sizes = [2, 32], strides = [1, 1]} : vector<2x128xf32> to vector<2x32xf32>
    %80 = vector.extract_strided_slice %77 {offsets = [0, 64], sizes = [2, 32], strides = [1, 1]} : vector<2x128xf32> to vector<2x32xf32>
    %81 = vector.extract_strided_slice %77 {offsets = [0, 96], sizes = [2, 32], strides = [1, 1]} : vector<2x128xf32> to vector<2x32xf32>
    %82 = arith.mulf %79, %46 : vector<2x32xf32>
    %83 = arith.mulf %78, %80 : vector<2x32xf32>
    %84 = arith.addf %82, %83 : vector<2x32xf32>
    %85 = math.tanh %84 : vector<2x32xf32>
    %86 = arith.mulf %81, %85 : vector<2x32xf32>
    %87 = math.tanh %70 : vector<2x128xf32>
    %88 = arith.negf %70 : vector<2x128xf32>
    %89 = math.exp %88 : vector<2x128xf32>
    %cst_23 = arith.constant 1.000000e+00 : f32
    %90 = vector.broadcast %cst_23 : f32 to vector<2x128xf32>
    %91 = arith.addf %90, %89 : vector<2x128xf32>
    %92 = arith.divf %90, %91 : vector<2x128xf32>
    %93 = arith.select %13, %87, %92 : vector<2x128xi1>, vector<2x128xf32>
    %94 = vector.extract_strided_slice %93 {offsets = [0, 0], sizes = [2, 32], strides = [1, 1]} : vector<2x128xf32> to vector<2x32xf32>
    %95 = vector.extract_strided_slice %93 {offsets = [0, 32], sizes = [2, 32], strides = [1, 1]} : vector<2x128xf32> to vector<2x32xf32>
    %96 = vector.extract_strided_slice %93 {offsets = [0, 64], sizes = [2, 32], strides = [1, 1]} : vector<2x128xf32> to vector<2x32xf32>
    %97 = vector.extract_strided_slice %93 {offsets = [0, 96], sizes = [2, 32], strides = [1, 1]} : vector<2x128xf32> to vector<2x32xf32>
    %98 = arith.mulf %95, %62 : vector<2x32xf32>
    %99 = arith.mulf %94, %96 : vector<2x32xf32>
    %100 = arith.addf %98, %99 : vector<2x32xf32>
    %101 = math.tanh %100 : vector<2x32xf32>
    %102 = arith.mulf %97, %101 : vector<2x32xf32>
    %103 = vector.extract_strided_slice %19 {offsets = [4, 0], sizes = [2, 128], strides = [1, 1]} : vector<16x128xf32> to vector<2x128xf32>
    %cst_24 = arith.constant dense<0.000000e+00> : vector<2x128xf32>
    %104 = tpu.matmul %86, %21, %cst_24 {dimension_numbers = #tpu.dot_dimension_numbers<[1], [0], [0], [1], [0, 0, 1, 1], [], []>} : vector<2x32xf32>, vector<32x128xf32>, vector<2x128xf32> -> vector<2x128xf32>
    %105 = arith.addf %103, %104 : vector<2x128xf32>
    %106 = vector.extract_strided_slice %20 {offsets = [10, 0], sizes = [2, 128], strides = [1, 1]} : vector<16x128xf32> to vector<2x128xf32>
    %cst_25 = arith.constant dense<0.000000e+00> : vector<2x128xf32>
    %107 = tpu.matmul %102, %22, %cst_25 {dimension_numbers = #tpu.dot_dimension_numbers<[1], [0], [0], [1], [0, 0, 1, 1], [], []>} : vector<2x32xf32>, vector<32x128xf32>, vector<2x128xf32> -> vector<2x128xf32>
    %108 = arith.addf %106, %107 : vector<2x128xf32>
    %109 = math.tanh %105 : vector<2x128xf32>
    %110 = arith.negf %105 : vector<2x128xf32>
    %111 = math.exp %110 : vector<2x128xf32>
    %cst_26 = arith.constant 1.000000e+00 : f32
    %112 = vector.broadcast %cst_26 : f32 to vector<2x128xf32>
    %113 = arith.addf %112, %111 : vector<2x128xf32>
    %114 = arith.divf %112, %113 : vector<2x128xf32>
    %115 = arith.select %13, %109, %114 : vector<2x128xi1>, vector<2x128xf32>
    %116 = vector.extract_strided_slice %115 {offsets = [0, 0], sizes = [2, 32], strides = [1, 1]} : vector<2x128xf32> to vector<2x32xf32>
    %117 = vector.extract_strided_slice %115 {offsets = [0, 32], sizes = [2, 32], strides = [1, 1]} : vector<2x128xf32> to vector<2x32xf32>
    %118 = vector.extract_strided_slice %115 {offsets = [0, 64], sizes = [2, 32], strides = [1, 1]} : vector<2x128xf32> to vector<2x32xf32>
    %119 = vector.extract_strided_slice %115 {offsets = [0, 96], sizes = [2, 32], strides = [1, 1]} : vector<2x128xf32> to vector<2x32xf32>
    %120 = arith.mulf %117, %84 : vector<2x32xf32>
    %121 = arith.mulf %116, %118 : vector<2x32xf32>
    %122 = arith.addf %120, %121 : vector<2x32xf32>
    %123 = math.tanh %122 : vector<2x32xf32>
    %124 = arith.mulf %119, %123 : vector<2x32xf32>
    %125 = math.tanh %108 : vector<2x128xf32>
    %126 = arith.negf %108 : vector<2x128xf32>
    %127 = math.exp %126 : vector<2x128xf32>
    %cst_27 = arith.constant 1.000000e+00 : f32
    %128 = vector.broadcast %cst_27 : f32 to vector<2x128xf32>
    %129 = arith.addf %128, %127 : vector<2x128xf32>
    %130 = arith.divf %128, %129 : vector<2x128xf32>
    %131 = arith.select %13, %125, %130 : vector<2x128xi1>, vector<2x128xf32>
    %132 = vector.extract_strided_slice %131 {offsets = [0, 0], sizes = [2, 32], strides = [1, 1]} : vector<2x128xf32> to vector<2x32xf32>
    %133 = vector.extract_strided_slice %131 {offsets = [0, 32], sizes = [2, 32], strides = [1, 1]} : vector<2x128xf32> to vector<2x32xf32>
    %134 = vector.extract_strided_slice %131 {offsets = [0, 64], sizes = [2, 32], strides = [1, 1]} : vector<2x128xf32> to vector<2x32xf32>
    %135 = vector.extract_strided_slice %131 {offsets = [0, 96], sizes = [2, 32], strides = [1, 1]} : vector<2x128xf32> to vector<2x32xf32>
    %136 = arith.mulf %133, %100 : vector<2x32xf32>
    %137 = arith.mulf %132, %134 : vector<2x32xf32>
    %138 = arith.addf %136, %137 : vector<2x32xf32>
    %139 = math.tanh %138 : vector<2x32xf32>
    %140 = arith.mulf %135, %139 : vector<2x32xf32>
    %141 = vector.extract_strided_slice %19 {offsets = [6, 0], sizes = [2, 128], strides = [1, 1]} : vector<16x128xf32> to vector<2x128xf32>
    %cst_28 = arith.constant dense<0.000000e+00> : vector<2x128xf32>
    %142 = tpu.matmul %124, %21, %cst_28 {dimension_numbers = #tpu.dot_dimension_numbers<[1], [0], [0], [1], [0, 0, 1, 1], [], []>} : vector<2x32xf32>, vector<32x128xf32>, vector<2x128xf32> -> vector<2x128xf32>
    %143 = arith.addf %141, %142 : vector<2x128xf32>
    %144 = vector.extract_strided_slice %20 {offsets = [8, 0], sizes = [2, 128], strides = [1, 1]} : vector<16x128xf32> to vector<2x128xf32>
    %cst_29 = arith.constant dense<0.000000e+00> : vector<2x128xf32>
    %145 = tpu.matmul %140, %22, %cst_29 {dimension_numbers = #tpu.dot_dimension_numbers<[1], [0], [0], [1], [0, 0, 1, 1], [], []>} : vector<2x32xf32>, vector<32x128xf32>, vector<2x128xf32> -> vector<2x128xf32>
    %146 = arith.addf %144, %145 : vector<2x128xf32>
    %147 = math.tanh %143 : vector<2x128xf32>
    %148 = arith.negf %143 : vector<2x128xf32>
    %149 = math.exp %148 : vector<2x128xf32>
    %cst_30 = arith.constant 1.000000e+00 : f32
    %150 = vector.broadcast %cst_30 : f32 to vector<2x128xf32>
    %151 = arith.addf %150, %149 : vector<2x128xf32>
    %152 = arith.divf %150, %151 : vector<2x128xf32>
    %153 = arith.select %13, %147, %152 : vector<2x128xi1>, vector<2x128xf32>
    %154 = vector.extract_strided_slice %153 {offsets = [0, 0], sizes = [2, 32], strides = [1, 1]} : vector<2x128xf32> to vector<2x32xf32>
    %155 = vector.extract_strided_slice %153 {offsets = [0, 32], sizes = [2, 32], strides = [1, 1]} : vector<2x128xf32> to vector<2x32xf32>
    %156 = vector.extract_strided_slice %153 {offsets = [0, 64], sizes = [2, 32], strides = [1, 1]} : vector<2x128xf32> to vector<2x32xf32>
    %157 = vector.extract_strided_slice %153 {offsets = [0, 96], sizes = [2, 32], strides = [1, 1]} : vector<2x128xf32> to vector<2x32xf32>
    %158 = arith.mulf %155, %122 : vector<2x32xf32>
    %159 = arith.mulf %154, %156 : vector<2x32xf32>
    %160 = arith.addf %158, %159 : vector<2x32xf32>
    %161 = math.tanh %160 : vector<2x32xf32>
    %162 = arith.mulf %157, %161 : vector<2x32xf32>
    %163 = math.tanh %146 : vector<2x128xf32>
    %164 = arith.negf %146 : vector<2x128xf32>
    %165 = math.exp %164 : vector<2x128xf32>
    %cst_31 = arith.constant 1.000000e+00 : f32
    %166 = vector.broadcast %cst_31 : f32 to vector<2x128xf32>
    %167 = arith.addf %166, %165 : vector<2x128xf32>
    %168 = arith.divf %166, %167 : vector<2x128xf32>
    %169 = arith.select %13, %163, %168 : vector<2x128xi1>, vector<2x128xf32>
    %170 = vector.extract_strided_slice %169 {offsets = [0, 0], sizes = [2, 32], strides = [1, 1]} : vector<2x128xf32> to vector<2x32xf32>
    %171 = vector.extract_strided_slice %169 {offsets = [0, 32], sizes = [2, 32], strides = [1, 1]} : vector<2x128xf32> to vector<2x32xf32>
    %172 = vector.extract_strided_slice %169 {offsets = [0, 64], sizes = [2, 32], strides = [1, 1]} : vector<2x128xf32> to vector<2x32xf32>
    %173 = vector.extract_strided_slice %169 {offsets = [0, 96], sizes = [2, 32], strides = [1, 1]} : vector<2x128xf32> to vector<2x32xf32>
    %174 = arith.mulf %171, %138 : vector<2x32xf32>
    %175 = arith.mulf %170, %172 : vector<2x32xf32>
    %176 = arith.addf %174, %175 : vector<2x32xf32>
    %177 = math.tanh %176 : vector<2x32xf32>
    %178 = arith.mulf %173, %177 : vector<2x32xf32>
    %179 = vector.extract_strided_slice %19 {offsets = [8, 0], sizes = [2, 128], strides = [1, 1]} : vector<16x128xf32> to vector<2x128xf32>
    %cst_32 = arith.constant dense<0.000000e+00> : vector<2x128xf32>
    %180 = tpu.matmul %162, %21, %cst_32 {dimension_numbers = #tpu.dot_dimension_numbers<[1], [0], [0], [1], [0, 0, 1, 1], [], []>} : vector<2x32xf32>, vector<32x128xf32>, vector<2x128xf32> -> vector<2x128xf32>
    %181 = arith.addf %179, %180 : vector<2x128xf32>
    %182 = vector.extract_strided_slice %20 {offsets = [6, 0], sizes = [2, 128], strides = [1, 1]} : vector<16x128xf32> to vector<2x128xf32>
    %cst_33 = arith.constant dense<0.000000e+00> : vector<2x128xf32>
    %183 = tpu.matmul %178, %22, %cst_33 {dimension_numbers = #tpu.dot_dimension_numbers<[1], [0], [0], [1], [0, 0, 1, 1], [], []>} : vector<2x32xf32>, vector<32x128xf32>, vector<2x128xf32> -> vector<2x128xf32>
    %184 = arith.addf %182, %183 : vector<2x128xf32>
    %185 = math.tanh %181 : vector<2x128xf32>
    %186 = arith.negf %181 : vector<2x128xf32>
    %187 = math.exp %186 : vector<2x128xf32>
    %cst_34 = arith.constant 1.000000e+00 : f32
    %188 = vector.broadcast %cst_34 : f32 to vector<2x128xf32>
    %189 = arith.addf %188, %187 : vector<2x128xf32>
    %190 = arith.divf %188, %189 : vector<2x128xf32>
    %191 = arith.select %13, %185, %190 : vector<2x128xi1>, vector<2x128xf32>
    %192 = vector.extract_strided_slice %191 {offsets = [0, 0], sizes = [2, 32], strides = [1, 1]} : vector<2x128xf32> to vector<2x32xf32>
    %193 = vector.extract_strided_slice %191 {offsets = [0, 32], sizes = [2, 32], strides = [1, 1]} : vector<2x128xf32> to vector<2x32xf32>
    %194 = vector.extract_strided_slice %191 {offsets = [0, 64], sizes = [2, 32], strides = [1, 1]} : vector<2x128xf32> to vector<2x32xf32>
    %195 = vector.extract_strided_slice %191 {offsets = [0, 96], sizes = [2, 32], strides = [1, 1]} : vector<2x128xf32> to vector<2x32xf32>
    %196 = arith.mulf %193, %160 : vector<2x32xf32>
    %197 = arith.mulf %192, %194 : vector<2x32xf32>
    %198 = arith.addf %196, %197 : vector<2x32xf32>
    %199 = math.tanh %198 : vector<2x32xf32>
    %200 = arith.mulf %195, %199 : vector<2x32xf32>
    %201 = math.tanh %184 : vector<2x128xf32>
    %202 = arith.negf %184 : vector<2x128xf32>
    %203 = math.exp %202 : vector<2x128xf32>
    %cst_35 = arith.constant 1.000000e+00 : f32
    %204 = vector.broadcast %cst_35 : f32 to vector<2x128xf32>
    %205 = arith.addf %204, %203 : vector<2x128xf32>
    %206 = arith.divf %204, %205 : vector<2x128xf32>
    %207 = arith.select %13, %201, %206 : vector<2x128xi1>, vector<2x128xf32>
    %208 = vector.extract_strided_slice %207 {offsets = [0, 0], sizes = [2, 32], strides = [1, 1]} : vector<2x128xf32> to vector<2x32xf32>
    %209 = vector.extract_strided_slice %207 {offsets = [0, 32], sizes = [2, 32], strides = [1, 1]} : vector<2x128xf32> to vector<2x32xf32>
    %210 = vector.extract_strided_slice %207 {offsets = [0, 64], sizes = [2, 32], strides = [1, 1]} : vector<2x128xf32> to vector<2x32xf32>
    %211 = vector.extract_strided_slice %207 {offsets = [0, 96], sizes = [2, 32], strides = [1, 1]} : vector<2x128xf32> to vector<2x32xf32>
    %212 = arith.mulf %209, %176 : vector<2x32xf32>
    %213 = arith.mulf %208, %210 : vector<2x32xf32>
    %214 = arith.addf %212, %213 : vector<2x32xf32>
    %215 = math.tanh %214 : vector<2x32xf32>
    %216 = arith.mulf %211, %215 : vector<2x32xf32>
    %217 = vector.extract_strided_slice %19 {offsets = [10, 0], sizes = [2, 128], strides = [1, 1]} : vector<16x128xf32> to vector<2x128xf32>
    %cst_36 = arith.constant dense<0.000000e+00> : vector<2x128xf32>
    %218 = tpu.matmul %200, %21, %cst_36 {dimension_numbers = #tpu.dot_dimension_numbers<[1], [0], [0], [1], [0, 0, 1, 1], [], []>} : vector<2x32xf32>, vector<32x128xf32>, vector<2x128xf32> -> vector<2x128xf32>
    %219 = arith.addf %217, %218 : vector<2x128xf32>
    %220 = vector.extract_strided_slice %20 {offsets = [4, 0], sizes = [2, 128], strides = [1, 1]} : vector<16x128xf32> to vector<2x128xf32>
    %cst_37 = arith.constant dense<0.000000e+00> : vector<2x128xf32>
    %221 = tpu.matmul %216, %22, %cst_37 {dimension_numbers = #tpu.dot_dimension_numbers<[1], [0], [0], [1], [0, 0, 1, 1], [], []>} : vector<2x32xf32>, vector<32x128xf32>, vector<2x128xf32> -> vector<2x128xf32>
    %222 = arith.addf %220, %221 : vector<2x128xf32>
    %223 = math.tanh %219 : vector<2x128xf32>
    %224 = arith.negf %219 : vector<2x128xf32>
    %225 = math.exp %224 : vector<2x128xf32>
    %cst_38 = arith.constant 1.000000e+00 : f32
    %226 = vector.broadcast %cst_38 : f32 to vector<2x128xf32>
    %227 = arith.addf %226, %225 : vector<2x128xf32>
    %228 = arith.divf %226, %227 : vector<2x128xf32>
    %229 = arith.select %13, %223, %228 : vector<2x128xi1>, vector<2x128xf32>
    %230 = vector.extract_strided_slice %229 {offsets = [0, 0], sizes = [2, 32], strides = [1, 1]} : vector<2x128xf32> to vector<2x32xf32>
    %231 = vector.extract_strided_slice %229 {offsets = [0, 32], sizes = [2, 32], strides = [1, 1]} : vector<2x128xf32> to vector<2x32xf32>
    %232 = vector.extract_strided_slice %229 {offsets = [0, 64], sizes = [2, 32], strides = [1, 1]} : vector<2x128xf32> to vector<2x32xf32>
    %233 = vector.extract_strided_slice %229 {offsets = [0, 96], sizes = [2, 32], strides = [1, 1]} : vector<2x128xf32> to vector<2x32xf32>
    %234 = arith.mulf %231, %198 : vector<2x32xf32>
    %235 = arith.mulf %230, %232 : vector<2x32xf32>
    %236 = arith.addf %234, %235 : vector<2x32xf32>
    %237 = math.tanh %236 : vector<2x32xf32>
    %238 = arith.mulf %233, %237 : vector<2x32xf32>
    %239 = math.tanh %222 : vector<2x128xf32>
    %240 = arith.negf %222 : vector<2x128xf32>
    %241 = math.exp %240 : vector<2x128xf32>
    %cst_39 = arith.constant 1.000000e+00 : f32
    %242 = vector.broadcast %cst_39 : f32 to vector<2x128xf32>
    %243 = arith.addf %242, %241 : vector<2x128xf32>
    %244 = arith.divf %242, %243 : vector<2x128xf32>
    %245 = arith.select %13, %239, %244 : vector<2x128xi1>, vector<2x128xf32>
    %246 = vector.extract_strided_slice %245 {offsets = [0, 0], sizes = [2, 32], strides = [1, 1]} : vector<2x128xf32> to vector<2x32xf32>
    %247 = vector.extract_strided_slice %245 {offsets = [0, 32], sizes = [2, 32], strides = [1, 1]} : vector<2x128xf32> to vector<2x32xf32>
    %248 = vector.extract_strided_slice %245 {offsets = [0, 64], sizes = [2, 32], strides = [1, 1]} : vector<2x128xf32> to vector<2x32xf32>
    %249 = vector.extract_strided_slice %245 {offsets = [0, 96], sizes = [2, 32], strides = [1, 1]} : vector<2x128xf32> to vector<2x32xf32>
    %250 = arith.mulf %247, %214 : vector<2x32xf32>
    %251 = arith.mulf %246, %248 : vector<2x32xf32>
    %252 = arith.addf %250, %251 : vector<2x32xf32>
    %253 = math.tanh %252 : vector<2x32xf32>
    %254 = arith.mulf %249, %253 : vector<2x32xf32>
    %255 = vector.extract_strided_slice %19 {offsets = [12, 0], sizes = [2, 128], strides = [1, 1]} : vector<16x128xf32> to vector<2x128xf32>
    %cst_40 = arith.constant dense<0.000000e+00> : vector<2x128xf32>
    %256 = tpu.matmul %238, %21, %cst_40 {dimension_numbers = #tpu.dot_dimension_numbers<[1], [0], [0], [1], [0, 0, 1, 1], [], []>} : vector<2x32xf32>, vector<32x128xf32>, vector<2x128xf32> -> vector<2x128xf32>
    %257 = arith.addf %255, %256 : vector<2x128xf32>
    %258 = vector.extract_strided_slice %20 {offsets = [2, 0], sizes = [2, 128], strides = [1, 1]} : vector<16x128xf32> to vector<2x128xf32>
    %cst_41 = arith.constant dense<0.000000e+00> : vector<2x128xf32>
    %259 = tpu.matmul %254, %22, %cst_41 {dimension_numbers = #tpu.dot_dimension_numbers<[1], [0], [0], [1], [0, 0, 1, 1], [], []>} : vector<2x32xf32>, vector<32x128xf32>, vector<2x128xf32> -> vector<2x128xf32>
    %260 = arith.addf %258, %259 : vector<2x128xf32>
    %261 = math.tanh %257 : vector<2x128xf32>
    %262 = arith.negf %257 : vector<2x128xf32>
    %263 = math.exp %262 : vector<2x128xf32>
    %cst_42 = arith.constant 1.000000e+00 : f32
    %264 = vector.broadcast %cst_42 : f32 to vector<2x128xf32>
    %265 = arith.addf %264, %263 : vector<2x128xf32>
    %266 = arith.divf %264, %265 : vector<2x128xf32>
    %267 = arith.select %13, %261, %266 : vector<2x128xi1>, vector<2x128xf32>
    %268 = vector.extract_strided_slice %267 {offsets = [0, 0], sizes = [2, 32], strides = [1, 1]} : vector<2x128xf32> to vector<2x32xf32>
    %269 = vector.extract_strided_slice %267 {offsets = [0, 32], sizes = [2, 32], strides = [1, 1]} : vector<2x128xf32> to vector<2x32xf32>
    %270 = vector.extract_strided_slice %267 {offsets = [0, 64], sizes = [2, 32], strides = [1, 1]} : vector<2x128xf32> to vector<2x32xf32>
    %271 = vector.extract_strided_slice %267 {offsets = [0, 96], sizes = [2, 32], strides = [1, 1]} : vector<2x128xf32> to vector<2x32xf32>
    %272 = arith.mulf %269, %236 : vector<2x32xf32>
    %273 = arith.mulf %268, %270 : vector<2x32xf32>
    %274 = arith.addf %272, %273 : vector<2x32xf32>
    %275 = math.tanh %274 : vector<2x32xf32>
    %276 = arith.mulf %271, %275 : vector<2x32xf32>
    %277 = math.tanh %260 : vector<2x128xf32>
    %278 = arith.negf %260 : vector<2x128xf32>
    %279 = math.exp %278 : vector<2x128xf32>
    %cst_43 = arith.constant 1.000000e+00 : f32
    %280 = vector.broadcast %cst_43 : f32 to vector<2x128xf32>
    %281 = arith.addf %280, %279 : vector<2x128xf32>
    %282 = arith.divf %280, %281 : vector<2x128xf32>
    %283 = arith.select %13, %277, %282 : vector<2x128xi1>, vector<2x128xf32>
    %284 = vector.extract_strided_slice %283 {offsets = [0, 0], sizes = [2, 32], strides = [1, 1]} : vector<2x128xf32> to vector<2x32xf32>
    %285 = vector.extract_strided_slice %283 {offsets = [0, 32], sizes = [2, 32], strides = [1, 1]} : vector<2x128xf32> to vector<2x32xf32>
    %286 = vector.extract_strided_slice %283 {offsets = [0, 64], sizes = [2, 32], strides = [1, 1]} : vector<2x128xf32> to vector<2x32xf32>
    %287 = vector.extract_strided_slice %283 {offsets = [0, 96], sizes = [2, 32], strides = [1, 1]} : vector<2x128xf32> to vector<2x32xf32>
    %288 = arith.mulf %285, %252 : vector<2x32xf32>
    %289 = arith.mulf %284, %286 : vector<2x32xf32>
    %290 = arith.addf %288, %289 : vector<2x32xf32>
    %291 = math.tanh %290 : vector<2x32xf32>
    %292 = arith.mulf %287, %291 : vector<2x32xf32>
    %293 = vector.extract_strided_slice %19 {offsets = [14, 0], sizes = [2, 128], strides = [1, 1]} : vector<16x128xf32> to vector<2x128xf32>
    %cst_44 = arith.constant dense<0.000000e+00> : vector<2x128xf32>
    %294 = tpu.matmul %276, %21, %cst_44 {dimension_numbers = #tpu.dot_dimension_numbers<[1], [0], [0], [1], [0, 0, 1, 1], [], []>} : vector<2x32xf32>, vector<32x128xf32>, vector<2x128xf32> -> vector<2x128xf32>
    %295 = arith.addf %293, %294 : vector<2x128xf32>
    %296 = vector.extract_strided_slice %20 {offsets = [0, 0], sizes = [2, 128], strides = [1, 1]} : vector<16x128xf32> to vector<2x128xf32>
    %cst_45 = arith.constant dense<0.000000e+00> : vector<2x128xf32>
    %297 = tpu.matmul %292, %22, %cst_45 {dimension_numbers = #tpu.dot_dimension_numbers<[1], [0], [0], [1], [0, 0, 1, 1], [], []>} : vector<2x32xf32>, vector<32x128xf32>, vector<2x128xf32> -> vector<2x128xf32>
    %298 = arith.addf %296, %297 : vector<2x128xf32>
    %299 = math.tanh %295 : vector<2x128xf32>
    %300 = arith.negf %295 : vector<2x128xf32>
    %301 = math.exp %300 : vector<2x128xf32>
    %cst_46 = arith.constant 1.000000e+00 : f32
    %302 = vector.broadcast %cst_46 : f32 to vector<2x128xf32>
    %303 = arith.addf %302, %301 : vector<2x128xf32>
    %304 = arith.divf %302, %303 : vector<2x128xf32>
    %305 = arith.select %13, %299, %304 : vector<2x128xi1>, vector<2x128xf32>
    %306 = vector.extract_strided_slice %305 {offsets = [0, 0], sizes = [2, 32], strides = [1, 1]} : vector<2x128xf32> to vector<2x32xf32>
    %307 = vector.extract_strided_slice %305 {offsets = [0, 32], sizes = [2, 32], strides = [1, 1]} : vector<2x128xf32> to vector<2x32xf32>
    %308 = vector.extract_strided_slice %305 {offsets = [0, 64], sizes = [2, 32], strides = [1, 1]} : vector<2x128xf32> to vector<2x32xf32>
    %309 = vector.extract_strided_slice %305 {offsets = [0, 96], sizes = [2, 32], strides = [1, 1]} : vector<2x128xf32> to vector<2x32xf32>
    %310 = arith.mulf %307, %274 : vector<2x32xf32>
    %311 = arith.mulf %306, %308 : vector<2x32xf32>
    %312 = arith.addf %310, %311 : vector<2x32xf32>
    %313 = math.tanh %312 : vector<2x32xf32>
    %314 = arith.mulf %309, %313 : vector<2x32xf32>
    %315 = math.tanh %298 : vector<2x128xf32>
    %316 = arith.negf %298 : vector<2x128xf32>
    %317 = math.exp %316 : vector<2x128xf32>
    %cst_47 = arith.constant 1.000000e+00 : f32
    %318 = vector.broadcast %cst_47 : f32 to vector<2x128xf32>
    %319 = arith.addf %318, %317 : vector<2x128xf32>
    %320 = arith.divf %318, %319 : vector<2x128xf32>
    %321 = arith.select %13, %315, %320 : vector<2x128xi1>, vector<2x128xf32>
    %322 = vector.extract_strided_slice %321 {offsets = [0, 0], sizes = [2, 32], strides = [1, 1]} : vector<2x128xf32> to vector<2x32xf32>
    %323 = vector.extract_strided_slice %321 {offsets = [0, 32], sizes = [2, 32], strides = [1, 1]} : vector<2x128xf32> to vector<2x32xf32>
    %324 = vector.extract_strided_slice %321 {offsets = [0, 64], sizes = [2, 32], strides = [1, 1]} : vector<2x128xf32> to vector<2x32xf32>
    %325 = vector.extract_strided_slice %321 {offsets = [0, 96], sizes = [2, 32], strides = [1, 1]} : vector<2x128xf32> to vector<2x32xf32>
    %326 = arith.mulf %323, %290 : vector<2x32xf32>
    %327 = arith.mulf %322, %324 : vector<2x32xf32>
    %328 = arith.addf %326, %327 : vector<2x32xf32>
    %329 = math.tanh %328 : vector<2x32xf32>
    %330 = arith.mulf %325, %329 : vector<2x32xf32>
    %331 = tpu.concatenate %48, %330 in 1 : vector<2x32xf32>, vector<2x32xf32> -> vector<2x64xf32>
    %332 = tpu.concatenate %86, %292 in 1 : vector<2x32xf32>, vector<2x32xf32> -> vector<2x64xf32>
    %333 = tpu.concatenate %124, %254 in 1 : vector<2x32xf32>, vector<2x32xf32> -> vector<2x64xf32>
    %334 = tpu.concatenate %162, %216 in 1 : vector<2x32xf32>, vector<2x32xf32> -> vector<2x64xf32>
    %335 = tpu.concatenate %200, %178 in 1 : vector<2x32xf32>, vector<2x32xf32> -> vector<2x64xf32>
    %336 = tpu.concatenate %238, %140 in 1 : vector<2x32xf32>, vector<2x32xf32> -> vector<2x64xf32>
    %337 = tpu.concatenate %276, %102 in 1 : vector<2x32xf32>, vector<2x32xf32> -> vector<2x64xf32>
    %338 = tpu.concatenate %314, %64 in 1 : vector<2x32xf32>, vector<2x32xf32> -> vector<2x64xf32>
    %339 = tpu.concatenate %331, %332, %333, %334, %335, %336, %337, %338 in 0 : vector<2x64xf32>, vector<2x64xf32>, vector<2x64xf32>, vector<2x64xf32>, vector<2x64xf32>, vector<2x64xf32>, vector<2x64xf32>, vector<2x64xf32> -> vector<16x64xf32>
    %c0_48 = arith.constant 0 : index
    %c0_49 = arith.constant 0 : index
    %340 = vector.load %arg6[%c0_48, %c0_49] : memref<64x256xf32, #tpu.memory_space<vmem>>, vector<64x256xf32>
    %cst_50 = arith.constant dense<0.000000e+00> : vector<16x256xf32>
    %341 = tpu.matmul %339, %340, %cst_50 {dimension_numbers = #tpu.dot_dimension_numbers<[1], [0], [0], [1], [0, 0, 1, 1], [], []>} : vector<16x64xf32>, vector<64x256xf32>, vector<16x256xf32> -> vector<16x256xf32>
    %c0_51 = arith.constant 0 : index
    %c0_52 = arith.constant 0 : index
    %342 = vector.load %arg7[%c0_51, %c0_52] : memref<1x256xf32, #tpu.memory_space<vmem>>, vector<1x256xf32>
    %343 = vector.broadcast %342 : vector<1x256xf32> to vector<16x256xf32>
    %344 = arith.addf %341, %343 : vector<16x256xf32>
    %345 = vector.extract_strided_slice %344 {offsets = [0, 0], sizes = [16, 128], strides = [1, 1]} : vector<16x256xf32> to vector<16x128xf32>
    %346 = vector.extract_strided_slice %344 {offsets = [0, 128], sizes = [16, 128], strides = [1, 1]} : vector<16x256xf32> to vector<16x128xf32>
    %c0_53 = arith.constant 0 : index
    %c0_54 = arith.constant 0 : index
    %347 = vector.load %arg8[%c0_53, %c0_54] : memref<32x128xf32, #tpu.memory_space<vmem>>, vector<32x128xf32>
    %c0_55 = arith.constant 0 : index
    %c0_56 = arith.constant 0 : index
    %348 = vector.load %arg9[%c0_55, %c0_56] : memref<32x128xf32, #tpu.memory_space<vmem>>, vector<32x128xf32>
    %cst_57 = arith.constant 0.000000e+00 : f32
    %349 = vector.broadcast %cst_57 : f32 to vector<2x32xf32>
    %cst_58 = arith.constant 0.000000e+00 : f32
    %350 = vector.broadcast %cst_58 : f32 to vector<2x32xf32>
    %cst_59 = arith.constant 0.000000e+00 : f32
    %351 = vector.broadcast %cst_59 : f32 to vector<2x32xf32>
    %cst_60 = arith.constant 0.000000e+00 : f32
    %352 = vector.broadcast %cst_60 : f32 to vector<2x32xf32>
    %353 = vector.extract_strided_slice %345 {offsets = [0, 0], sizes = [2, 128], strides = [1, 1]} : vector<16x128xf32> to vector<2x128xf32>
    %cst_61 = arith.constant dense<0.000000e+00> : vector<2x128xf32>
    %354 = tpu.matmul %349, %347, %cst_61 {dimension_numbers = #tpu.dot_dimension_numbers<[1], [0], [0], [1], [0, 0, 1, 1], [], []>} : vector<2x32xf32>, vector<32x128xf32>, vector<2x128xf32> -> vector<2x128xf32>
    %355 = arith.addf %353, %354 : vector<2x128xf32>
    %356 = vector.extract_strided_slice %346 {offsets = [14, 0], sizes = [2, 128], strides = [1, 1]} : vector<16x128xf32> to vector<2x128xf32>
    %cst_62 = arith.constant dense<0.000000e+00> : vector<2x128xf32>
    %357 = tpu.matmul %351, %348, %cst_62 {dimension_numbers = #tpu.dot_dimension_numbers<[1], [0], [0], [1], [0, 0, 1, 1], [], []>} : vector<2x32xf32>, vector<32x128xf32>, vector<2x128xf32> -> vector<2x128xf32>
    %358 = arith.addf %356, %357 : vector<2x128xf32>
    %359 = math.tanh %355 : vector<2x128xf32>
    %360 = arith.negf %355 : vector<2x128xf32>
    %361 = math.exp %360 : vector<2x128xf32>
    %cst_63 = arith.constant 1.000000e+00 : f32
    %362 = vector.broadcast %cst_63 : f32 to vector<2x128xf32>
    %363 = arith.addf %362, %361 : vector<2x128xf32>
    %364 = arith.divf %362, %363 : vector<2x128xf32>
    %365 = arith.select %13, %359, %364 : vector<2x128xi1>, vector<2x128xf32>
    %366 = vector.extract_strided_slice %365 {offsets = [0, 0], sizes = [2, 32], strides = [1, 1]} : vector<2x128xf32> to vector<2x32xf32>
    %367 = vector.extract_strided_slice %365 {offsets = [0, 32], sizes = [2, 32], strides = [1, 1]} : vector<2x128xf32> to vector<2x32xf32>
    %368 = vector.extract_strided_slice %365 {offsets = [0, 64], sizes = [2, 32], strides = [1, 1]} : vector<2x128xf32> to vector<2x32xf32>
    %369 = vector.extract_strided_slice %365 {offsets = [0, 96], sizes = [2, 32], strides = [1, 1]} : vector<2x128xf32> to vector<2x32xf32>
    %370 = arith.mulf %367, %350 : vector<2x32xf32>
    %371 = arith.mulf %366, %368 : vector<2x32xf32>
    %372 = arith.addf %370, %371 : vector<2x32xf32>
    %373 = math.tanh %372 : vector<2x32xf32>
    %374 = arith.mulf %369, %373 : vector<2x32xf32>
    %375 = math.tanh %358 : vector<2x128xf32>
    %376 = arith.negf %358 : vector<2x128xf32>
    %377 = math.exp %376 : vector<2x128xf32>
    %cst_64 = arith.constant 1.000000e+00 : f32
    %378 = vector.broadcast %cst_64 : f32 to vector<2x128xf32>
    %379 = arith.addf %378, %377 : vector<2x128xf32>
    %380 = arith.divf %378, %379 : vector<2x128xf32>
    %381 = arith.select %13, %375, %380 : vector<2x128xi1>, vector<2x128xf32>
    %382 = vector.extract_strided_slice %381 {offsets = [0, 0], sizes = [2, 32], strides = [1, 1]} : vector<2x128xf32> to vector<2x32xf32>
    %383 = vector.extract_strided_slice %381 {offsets = [0, 32], sizes = [2, 32], strides = [1, 1]} : vector<2x128xf32> to vector<2x32xf32>
    %384 = vector.extract_strided_slice %381 {offsets = [0, 64], sizes = [2, 32], strides = [1, 1]} : vector<2x128xf32> to vector<2x32xf32>
    %385 = vector.extract_strided_slice %381 {offsets = [0, 96], sizes = [2, 32], strides = [1, 1]} : vector<2x128xf32> to vector<2x32xf32>
    %386 = arith.mulf %383, %352 : vector<2x32xf32>
    %387 = arith.mulf %382, %384 : vector<2x32xf32>
    %388 = arith.addf %386, %387 : vector<2x32xf32>
    %389 = math.tanh %388 : vector<2x32xf32>
    %390 = arith.mulf %385, %389 : vector<2x32xf32>
    %391 = vector.extract_strided_slice %345 {offsets = [2, 0], sizes = [2, 128], strides = [1, 1]} : vector<16x128xf32> to vector<2x128xf32>
    %cst_65 = arith.constant dense<0.000000e+00> : vector<2x128xf32>
    %392 = tpu.matmul %374, %347, %cst_65 {dimension_numbers = #tpu.dot_dimension_numbers<[1], [0], [0], [1], [0, 0, 1, 1], [], []>} : vector<2x32xf32>, vector<32x128xf32>, vector<2x128xf32> -> vector<2x128xf32>
    %393 = arith.addf %391, %392 : vector<2x128xf32>
    %394 = vector.extract_strided_slice %346 {offsets = [12, 0], sizes = [2, 128], strides = [1, 1]} : vector<16x128xf32> to vector<2x128xf32>
    %cst_66 = arith.constant dense<0.000000e+00> : vector<2x128xf32>
    %395 = tpu.matmul %390, %348, %cst_66 {dimension_numbers = #tpu.dot_dimension_numbers<[1], [0], [0], [1], [0, 0, 1, 1], [], []>} : vector<2x32xf32>, vector<32x128xf32>, vector<2x128xf32> -> vector<2x128xf32>
    %396 = arith.addf %394, %395 : vector<2x128xf32>
    %397 = math.tanh %393 : vector<2x128xf32>
    %398 = arith.negf %393 : vector<2x128xf32>
    %399 = math.exp %398 : vector<2x128xf32>
    %cst_67 = arith.constant 1.000000e+00 : f32
    %400 = vector.broadcast %cst_67 : f32 to vector<2x128xf32>
    %401 = arith.addf %400, %399 : vector<2x128xf32>
    %402 = arith.divf %400, %401 : vector<2x128xf32>
    %403 = arith.select %13, %397, %402 : vector<2x128xi1>, vector<2x128xf32>
    %404 = vector.extract_strided_slice %403 {offsets = [0, 0], sizes = [2, 32], strides = [1, 1]} : vector<2x128xf32> to vector<2x32xf32>
    %405 = vector.extract_strided_slice %403 {offsets = [0, 32], sizes = [2, 32], strides = [1, 1]} : vector<2x128xf32> to vector<2x32xf32>
    %406 = vector.extract_strided_slice %403 {offsets = [0, 64], sizes = [2, 32], strides = [1, 1]} : vector<2x128xf32> to vector<2x32xf32>
    %407 = vector.extract_strided_slice %403 {offsets = [0, 96], sizes = [2, 32], strides = [1, 1]} : vector<2x128xf32> to vector<2x32xf32>
    %408 = arith.mulf %405, %372 : vector<2x32xf32>
    %409 = arith.mulf %404, %406 : vector<2x32xf32>
    %410 = arith.addf %408, %409 : vector<2x32xf32>
    %411 = math.tanh %410 : vector<2x32xf32>
    %412 = arith.mulf %407, %411 : vector<2x32xf32>
    %413 = math.tanh %396 : vector<2x128xf32>
    %414 = arith.negf %396 : vector<2x128xf32>
    %415 = math.exp %414 : vector<2x128xf32>
    %cst_68 = arith.constant 1.000000e+00 : f32
    %416 = vector.broadcast %cst_68 : f32 to vector<2x128xf32>
    %417 = arith.addf %416, %415 : vector<2x128xf32>
    %418 = arith.divf %416, %417 : vector<2x128xf32>
    %419 = arith.select %13, %413, %418 : vector<2x128xi1>, vector<2x128xf32>
    %420 = vector.extract_strided_slice %419 {offsets = [0, 0], sizes = [2, 32], strides = [1, 1]} : vector<2x128xf32> to vector<2x32xf32>
    %421 = vector.extract_strided_slice %419 {offsets = [0, 32], sizes = [2, 32], strides = [1, 1]} : vector<2x128xf32> to vector<2x32xf32>
    %422 = vector.extract_strided_slice %419 {offsets = [0, 64], sizes = [2, 32], strides = [1, 1]} : vector<2x128xf32> to vector<2x32xf32>
    %423 = vector.extract_strided_slice %419 {offsets = [0, 96], sizes = [2, 32], strides = [1, 1]} : vector<2x128xf32> to vector<2x32xf32>
    %424 = arith.mulf %421, %388 : vector<2x32xf32>
    %425 = arith.mulf %420, %422 : vector<2x32xf32>
    %426 = arith.addf %424, %425 : vector<2x32xf32>
    %427 = math.tanh %426 : vector<2x32xf32>
    %428 = arith.mulf %423, %427 : vector<2x32xf32>
    %429 = vector.extract_strided_slice %345 {offsets = [4, 0], sizes = [2, 128], strides = [1, 1]} : vector<16x128xf32> to vector<2x128xf32>
    %cst_69 = arith.constant dense<0.000000e+00> : vector<2x128xf32>
    %430 = tpu.matmul %412, %347, %cst_69 {dimension_numbers = #tpu.dot_dimension_numbers<[1], [0], [0], [1], [0, 0, 1, 1], [], []>} : vector<2x32xf32>, vector<32x128xf32>, vector<2x128xf32> -> vector<2x128xf32>
    %431 = arith.addf %429, %430 : vector<2x128xf32>
    %432 = vector.extract_strided_slice %346 {offsets = [10, 0], sizes = [2, 128], strides = [1, 1]} : vector<16x128xf32> to vector<2x128xf32>
    %cst_70 = arith.constant dense<0.000000e+00> : vector<2x128xf32>
    %433 = tpu.matmul %428, %348, %cst_70 {dimension_numbers = #tpu.dot_dimension_numbers<[1], [0], [0], [1], [0, 0, 1, 1], [], []>} : vector<2x32xf32>, vector<32x128xf32>, vector<2x128xf32> -> vector<2x128xf32>
    %434 = arith.addf %432, %433 : vector<2x128xf32>
    %435 = math.tanh %431 : vector<2x128xf32>
    %436 = arith.negf %431 : vector<2x128xf32>
    %437 = math.exp %436 : vector<2x128xf32>
    %cst_71 = arith.constant 1.000000e+00 : f32
    %438 = vector.broadcast %cst_71 : f32 to vector<2x128xf32>
    %439 = arith.addf %438, %437 : vector<2x128xf32>
    %440 = arith.divf %438, %439 : vector<2x128xf32>
    %441 = arith.select %13, %435, %440 : vector<2x128xi1>, vector<2x128xf32>
    %442 = vector.extract_strided_slice %441 {offsets = [0, 0], sizes = [2, 32], strides = [1, 1]} : vector<2x128xf32> to vector<2x32xf32>
    %443 = vector.extract_strided_slice %441 {offsets = [0, 32], sizes = [2, 32], strides = [1, 1]} : vector<2x128xf32> to vector<2x32xf32>
    %444 = vector.extract_strided_slice %441 {offsets = [0, 64], sizes = [2, 32], strides = [1, 1]} : vector<2x128xf32> to vector<2x32xf32>
    %445 = vector.extract_strided_slice %441 {offsets = [0, 96], sizes = [2, 32], strides = [1, 1]} : vector<2x128xf32> to vector<2x32xf32>
    %446 = arith.mulf %443, %410 : vector<2x32xf32>
    %447 = arith.mulf %442, %444 : vector<2x32xf32>
    %448 = arith.addf %446, %447 : vector<2x32xf32>
    %449 = math.tanh %448 : vector<2x32xf32>
    %450 = arith.mulf %445, %449 : vector<2x32xf32>
    %451 = math.tanh %434 : vector<2x128xf32>
    %452 = arith.negf %434 : vector<2x128xf32>
    %453 = math.exp %452 : vector<2x128xf32>
    %cst_72 = arith.constant 1.000000e+00 : f32
    %454 = vector.broadcast %cst_72 : f32 to vector<2x128xf32>
    %455 = arith.addf %454, %453 : vector<2x128xf32>
    %456 = arith.divf %454, %455 : vector<2x128xf32>
    %457 = arith.select %13, %451, %456 : vector<2x128xi1>, vector<2x128xf32>
    %458 = vector.extract_strided_slice %457 {offsets = [0, 0], sizes = [2, 32], strides = [1, 1]} : vector<2x128xf32> to vector<2x32xf32>
    %459 = vector.extract_strided_slice %457 {offsets = [0, 32], sizes = [2, 32], strides = [1, 1]} : vector<2x128xf32> to vector<2x32xf32>
    %460 = vector.extract_strided_slice %457 {offsets = [0, 64], sizes = [2, 32], strides = [1, 1]} : vector<2x128xf32> to vector<2x32xf32>
    %461 = vector.extract_strided_slice %457 {offsets = [0, 96], sizes = [2, 32], strides = [1, 1]} : vector<2x128xf32> to vector<2x32xf32>
    %462 = arith.mulf %459, %426 : vector<2x32xf32>
    %463 = arith.mulf %458, %460 : vector<2x32xf32>
    %464 = arith.addf %462, %463 : vector<2x32xf32>
    %465 = math.tanh %464 : vector<2x32xf32>
    %466 = arith.mulf %461, %465 : vector<2x32xf32>
    %467 = vector.extract_strided_slice %345 {offsets = [6, 0], sizes = [2, 128], strides = [1, 1]} : vector<16x128xf32> to vector<2x128xf32>
    %cst_73 = arith.constant dense<0.000000e+00> : vector<2x128xf32>
    %468 = tpu.matmul %450, %347, %cst_73 {dimension_numbers = #tpu.dot_dimension_numbers<[1], [0], [0], [1], [0, 0, 1, 1], [], []>} : vector<2x32xf32>, vector<32x128xf32>, vector<2x128xf32> -> vector<2x128xf32>
    %469 = arith.addf %467, %468 : vector<2x128xf32>
    %470 = vector.extract_strided_slice %346 {offsets = [8, 0], sizes = [2, 128], strides = [1, 1]} : vector<16x128xf32> to vector<2x128xf32>
    %cst_74 = arith.constant dense<0.000000e+00> : vector<2x128xf32>
    %471 = tpu.matmul %466, %348, %cst_74 {dimension_numbers = #tpu.dot_dimension_numbers<[1], [0], [0], [1], [0, 0, 1, 1], [], []>} : vector<2x32xf32>, vector<32x128xf32>, vector<2x128xf32> -> vector<2x128xf32>
    %472 = arith.addf %470, %471 : vector<2x128xf32>
    %473 = math.tanh %469 : vector<2x128xf32>
    %474 = arith.negf %469 : vector<2x128xf32>
    %475 = math.exp %474 : vector<2x128xf32>
    %cst_75 = arith.constant 1.000000e+00 : f32
    %476 = vector.broadcast %cst_75 : f32 to vector<2x128xf32>
    %477 = arith.addf %476, %475 : vector<2x128xf32>
    %478 = arith.divf %476, %477 : vector<2x128xf32>
    %479 = arith.select %13, %473, %478 : vector<2x128xi1>, vector<2x128xf32>
    %480 = vector.extract_strided_slice %479 {offsets = [0, 0], sizes = [2, 32], strides = [1, 1]} : vector<2x128xf32> to vector<2x32xf32>
    %481 = vector.extract_strided_slice %479 {offsets = [0, 32], sizes = [2, 32], strides = [1, 1]} : vector<2x128xf32> to vector<2x32xf32>
    %482 = vector.extract_strided_slice %479 {offsets = [0, 64], sizes = [2, 32], strides = [1, 1]} : vector<2x128xf32> to vector<2x32xf32>
    %483 = vector.extract_strided_slice %479 {offsets = [0, 96], sizes = [2, 32], strides = [1, 1]} : vector<2x128xf32> to vector<2x32xf32>
    %484 = arith.mulf %481, %448 : vector<2x32xf32>
    %485 = arith.mulf %480, %482 : vector<2x32xf32>
    %486 = arith.addf %484, %485 : vector<2x32xf32>
    %487 = math.tanh %486 : vector<2x32xf32>
    %488 = arith.mulf %483, %487 : vector<2x32xf32>
    %489 = math.tanh %472 : vector<2x128xf32>
    %490 = arith.negf %472 : vector<2x128xf32>
    %491 = math.exp %490 : vector<2x128xf32>
    %cst_76 = arith.constant 1.000000e+00 : f32
    %492 = vector.broadcast %cst_76 : f32 to vector<2x128xf32>
    %493 = arith.addf %492, %491 : vector<2x128xf32>
    %494 = arith.divf %492, %493 : vector<2x128xf32>
    %495 = arith.select %13, %489, %494 : vector<2x128xi1>, vector<2x128xf32>
    %496 = vector.extract_strided_slice %495 {offsets = [0, 0], sizes = [2, 32], strides = [1, 1]} : vector<2x128xf32> to vector<2x32xf32>
    %497 = vector.extract_strided_slice %495 {offsets = [0, 32], sizes = [2, 32], strides = [1, 1]} : vector<2x128xf32> to vector<2x32xf32>
    %498 = vector.extract_strided_slice %495 {offsets = [0, 64], sizes = [2, 32], strides = [1, 1]} : vector<2x128xf32> to vector<2x32xf32>
    %499 = vector.extract_strided_slice %495 {offsets = [0, 96], sizes = [2, 32], strides = [1, 1]} : vector<2x128xf32> to vector<2x32xf32>
    %500 = arith.mulf %497, %464 : vector<2x32xf32>
    %501 = arith.mulf %496, %498 : vector<2x32xf32>
    %502 = arith.addf %500, %501 : vector<2x32xf32>
    %503 = math.tanh %502 : vector<2x32xf32>
    %504 = arith.mulf %499, %503 : vector<2x32xf32>
    %505 = vector.extract_strided_slice %345 {offsets = [8, 0], sizes = [2, 128], strides = [1, 1]} : vector<16x128xf32> to vector<2x128xf32>
    %cst_77 = arith.constant dense<0.000000e+00> : vector<2x128xf32>
    %506 = tpu.matmul %488, %347, %cst_77 {dimension_numbers = #tpu.dot_dimension_numbers<[1], [0], [0], [1], [0, 0, 1, 1], [], []>} : vector<2x32xf32>, vector<32x128xf32>, vector<2x128xf32> -> vector<2x128xf32>
    %507 = arith.addf %505, %506 : vector<2x128xf32>
    %508 = vector.extract_strided_slice %346 {offsets = [6, 0], sizes = [2, 128], strides = [1, 1]} : vector<16x128xf32> to vector<2x128xf32>
    %cst_78 = arith.constant dense<0.000000e+00> : vector<2x128xf32>
    %509 = tpu.matmul %504, %348, %cst_78 {dimension_numbers = #tpu.dot_dimension_numbers<[1], [0], [0], [1], [0, 0, 1, 1], [], []>} : vector<2x32xf32>, vector<32x128xf32>, vector<2x128xf32> -> vector<2x128xf32>
    %510 = arith.addf %508, %509 : vector<2x128xf32>
    %511 = math.tanh %507 : vector<2x128xf32>
    %512 = arith.negf %507 : vector<2x128xf32>
    %513 = math.exp %512 : vector<2x128xf32>
    %cst_79 = arith.constant 1.000000e+00 : f32
    %514 = vector.broadcast %cst_79 : f32 to vector<2x128xf32>
    %515 = arith.addf %514, %513 : vector<2x128xf32>
    %516 = arith.divf %514, %515 : vector<2x128xf32>
    %517 = arith.select %13, %511, %516 : vector<2x128xi1>, vector<2x128xf32>
    %518 = vector.extract_strided_slice %517 {offsets = [0, 0], sizes = [2, 32], strides = [1, 1]} : vector<2x128xf32> to vector<2x32xf32>
    %519 = vector.extract_strided_slice %517 {offsets = [0, 32], sizes = [2, 32], strides = [1, 1]} : vector<2x128xf32> to vector<2x32xf32>
    %520 = vector.extract_strided_slice %517 {offsets = [0, 64], sizes = [2, 32], strides = [1, 1]} : vector<2x128xf32> to vector<2x32xf32>
    %521 = vector.extract_strided_slice %517 {offsets = [0, 96], sizes = [2, 32], strides = [1, 1]} : vector<2x128xf32> to vector<2x32xf32>
    %522 = arith.mulf %519, %486 : vector<2x32xf32>
    %523 = arith.mulf %518, %520 : vector<2x32xf32>
    %524 = arith.addf %522, %523 : vector<2x32xf32>
    %525 = math.tanh %524 : vector<2x32xf32>
    %526 = arith.mulf %521, %525 : vector<2x32xf32>
    %527 = math.tanh %510 : vector<2x128xf32>
    %528 = arith.negf %510 : vector<2x128xf32>
    %529 = math.exp %528 : vector<2x128xf32>
    %cst_80 = arith.constant 1.000000e+00 : f32
    %530 = vector.broadcast %cst_80 : f32 to vector<2x128xf32>
    %531 = arith.addf %530, %529 : vector<2x128xf32>
    %532 = arith.divf %530, %531 : vector<2x128xf32>
    %533 = arith.select %13, %527, %532 : vector<2x128xi1>, vector<2x128xf32>
    %534 = vector.extract_strided_slice %533 {offsets = [0, 0], sizes = [2, 32], strides = [1, 1]} : vector<2x128xf32> to vector<2x32xf32>
    %535 = vector.extract_strided_slice %533 {offsets = [0, 32], sizes = [2, 32], strides = [1, 1]} : vector<2x128xf32> to vector<2x32xf32>
    %536 = vector.extract_strided_slice %533 {offsets = [0, 64], sizes = [2, 32], strides = [1, 1]} : vector<2x128xf32> to vector<2x32xf32>
    %537 = vector.extract_strided_slice %533 {offsets = [0, 96], sizes = [2, 32], strides = [1, 1]} : vector<2x128xf32> to vector<2x32xf32>
    %538 = arith.mulf %535, %502 : vector<2x32xf32>
    %539 = arith.mulf %534, %536 : vector<2x32xf32>
    %540 = arith.addf %538, %539 : vector<2x32xf32>
    %541 = math.tanh %540 : vector<2x32xf32>
    %542 = arith.mulf %537, %541 : vector<2x32xf32>
    %543 = vector.extract_strided_slice %345 {offsets = [10, 0], sizes = [2, 128], strides = [1, 1]} : vector<16x128xf32> to vector<2x128xf32>
    %cst_81 = arith.constant dense<0.000000e+00> : vector<2x128xf32>
    %544 = tpu.matmul %526, %347, %cst_81 {dimension_numbers = #tpu.dot_dimension_numbers<[1], [0], [0], [1], [0, 0, 1, 1], [], []>} : vector<2x32xf32>, vector<32x128xf32>, vector<2x128xf32> -> vector<2x128xf32>
    %545 = arith.addf %543, %544 : vector<2x128xf32>
    %546 = vector.extract_strided_slice %346 {offsets = [4, 0], sizes = [2, 128], strides = [1, 1]} : vector<16x128xf32> to vector<2x128xf32>
    %cst_82 = arith.constant dense<0.000000e+00> : vector<2x128xf32>
    %547 = tpu.matmul %542, %348, %cst_82 {dimension_numbers = #tpu.dot_dimension_numbers<[1], [0], [0], [1], [0, 0, 1, 1], [], []>} : vector<2x32xf32>, vector<32x128xf32>, vector<2x128xf32> -> vector<2x128xf32>
    %548 = arith.addf %546, %547 : vector<2x128xf32>
    %549 = math.tanh %545 : vector<2x128xf32>
    %550 = arith.negf %545 : vector<2x128xf32>
    %551 = math.exp %550 : vector<2x128xf32>
    %cst_83 = arith.constant 1.000000e+00 : f32
    %552 = vector.broadcast %cst_83 : f32 to vector<2x128xf32>
    %553 = arith.addf %552, %551 : vector<2x128xf32>
    %554 = arith.divf %552, %553 : vector<2x128xf32>
    %555 = arith.select %13, %549, %554 : vector<2x128xi1>, vector<2x128xf32>
    %556 = vector.extract_strided_slice %555 {offsets = [0, 0], sizes = [2, 32], strides = [1, 1]} : vector<2x128xf32> to vector<2x32xf32>
    %557 = vector.extract_strided_slice %555 {offsets = [0, 32], sizes = [2, 32], strides = [1, 1]} : vector<2x128xf32> to vector<2x32xf32>
    %558 = vector.extract_strided_slice %555 {offsets = [0, 64], sizes = [2, 32], strides = [1, 1]} : vector<2x128xf32> to vector<2x32xf32>
    %559 = vector.extract_strided_slice %555 {offsets = [0, 96], sizes = [2, 32], strides = [1, 1]} : vector<2x128xf32> to vector<2x32xf32>
    %560 = arith.mulf %557, %524 : vector<2x32xf32>
    %561 = arith.mulf %556, %558 : vector<2x32xf32>
    %562 = arith.addf %560, %561 : vector<2x32xf32>
    %563 = math.tanh %562 : vector<2x32xf32>
    %564 = arith.mulf %559, %563 : vector<2x32xf32>
    %565 = math.tanh %548 : vector<2x128xf32>
    %566 = arith.negf %548 : vector<2x128xf32>
    %567 = math.exp %566 : vector<2x128xf32>
    %cst_84 = arith.constant 1.000000e+00 : f32
    %568 = vector.broadcast %cst_84 : f32 to vector<2x128xf32>
    %569 = arith.addf %568, %567 : vector<2x128xf32>
    %570 = arith.divf %568, %569 : vector<2x128xf32>
    %571 = arith.select %13, %565, %570 : vector<2x128xi1>, vector<2x128xf32>
    %572 = vector.extract_strided_slice %571 {offsets = [0, 0], sizes = [2, 32], strides = [1, 1]} : vector<2x128xf32> to vector<2x32xf32>
    %573 = vector.extract_strided_slice %571 {offsets = [0, 32], sizes = [2, 32], strides = [1, 1]} : vector<2x128xf32> to vector<2x32xf32>
    %574 = vector.extract_strided_slice %571 {offsets = [0, 64], sizes = [2, 32], strides = [1, 1]} : vector<2x128xf32> to vector<2x32xf32>
    %575 = vector.extract_strided_slice %571 {offsets = [0, 96], sizes = [2, 32], strides = [1, 1]} : vector<2x128xf32> to vector<2x32xf32>
    %576 = arith.mulf %573, %540 : vector<2x32xf32>
    %577 = arith.mulf %572, %574 : vector<2x32xf32>
    %578 = arith.addf %576, %577 : vector<2x32xf32>
    %579 = math.tanh %578 : vector<2x32xf32>
    %580 = arith.mulf %575, %579 : vector<2x32xf32>
    %581 = vector.extract_strided_slice %345 {offsets = [12, 0], sizes = [2, 128], strides = [1, 1]} : vector<16x128xf32> to vector<2x128xf32>
    %cst_85 = arith.constant dense<0.000000e+00> : vector<2x128xf32>
    %582 = tpu.matmul %564, %347, %cst_85 {dimension_numbers = #tpu.dot_dimension_numbers<[1], [0], [0], [1], [0, 0, 1, 1], [], []>} : vector<2x32xf32>, vector<32x128xf32>, vector<2x128xf32> -> vector<2x128xf32>
    %583 = arith.addf %581, %582 : vector<2x128xf32>
    %584 = vector.extract_strided_slice %346 {offsets = [2, 0], sizes = [2, 128], strides = [1, 1]} : vector<16x128xf32> to vector<2x128xf32>
    %cst_86 = arith.constant dense<0.000000e+00> : vector<2x128xf32>
    %585 = tpu.matmul %580, %348, %cst_86 {dimension_numbers = #tpu.dot_dimension_numbers<[1], [0], [0], [1], [0, 0, 1, 1], [], []>} : vector<2x32xf32>, vector<32x128xf32>, vector<2x128xf32> -> vector<2x128xf32>
    %586 = arith.addf %584, %585 : vector<2x128xf32>
    %587 = math.tanh %583 : vector<2x128xf32>
    %588 = arith.negf %583 : vector<2x128xf32>
    %589 = math.exp %588 : vector<2x128xf32>
    %cst_87 = arith.constant 1.000000e+00 : f32
    %590 = vector.broadcast %cst_87 : f32 to vector<2x128xf32>
    %591 = arith.addf %590, %589 : vector<2x128xf32>
    %592 = arith.divf %590, %591 : vector<2x128xf32>
    %593 = arith.select %13, %587, %592 : vector<2x128xi1>, vector<2x128xf32>
    %594 = vector.extract_strided_slice %593 {offsets = [0, 0], sizes = [2, 32], strides = [1, 1]} : vector<2x128xf32> to vector<2x32xf32>
    %595 = vector.extract_strided_slice %593 {offsets = [0, 32], sizes = [2, 32], strides = [1, 1]} : vector<2x128xf32> to vector<2x32xf32>
    %596 = vector.extract_strided_slice %593 {offsets = [0, 64], sizes = [2, 32], strides = [1, 1]} : vector<2x128xf32> to vector<2x32xf32>
    %597 = vector.extract_strided_slice %593 {offsets = [0, 96], sizes = [2, 32], strides = [1, 1]} : vector<2x128xf32> to vector<2x32xf32>
    %598 = arith.mulf %595, %562 : vector<2x32xf32>
    %599 = arith.mulf %594, %596 : vector<2x32xf32>
    %600 = arith.addf %598, %599 : vector<2x32xf32>
    %601 = math.tanh %600 : vector<2x32xf32>
    %602 = arith.mulf %597, %601 : vector<2x32xf32>
    %603 = math.tanh %586 : vector<2x128xf32>
    %604 = arith.negf %586 : vector<2x128xf32>
    %605 = math.exp %604 : vector<2x128xf32>
    %cst_88 = arith.constant 1.000000e+00 : f32
    %606 = vector.broadcast %cst_88 : f32 to vector<2x128xf32>
    %607 = arith.addf %606, %605 : vector<2x128xf32>
    %608 = arith.divf %606, %607 : vector<2x128xf32>
    %609 = arith.select %13, %603, %608 : vector<2x128xi1>, vector<2x128xf32>
    %610 = vector.extract_strided_slice %609 {offsets = [0, 0], sizes = [2, 32], strides = [1, 1]} : vector<2x128xf32> to vector<2x32xf32>
    %611 = vector.extract_strided_slice %609 {offsets = [0, 32], sizes = [2, 32], strides = [1, 1]} : vector<2x128xf32> to vector<2x32xf32>
    %612 = vector.extract_strided_slice %609 {offsets = [0, 64], sizes = [2, 32], strides = [1, 1]} : vector<2x128xf32> to vector<2x32xf32>
    %613 = vector.extract_strided_slice %609 {offsets = [0, 96], sizes = [2, 32], strides = [1, 1]} : vector<2x128xf32> to vector<2x32xf32>
    %614 = arith.mulf %611, %578 : vector<2x32xf32>
    %615 = arith.mulf %610, %612 : vector<2x32xf32>
    %616 = arith.addf %614, %615 : vector<2x32xf32>
    %617 = math.tanh %616 : vector<2x32xf32>
    %618 = arith.mulf %613, %617 : vector<2x32xf32>
    %619 = vector.extract_strided_slice %345 {offsets = [14, 0], sizes = [2, 128], strides = [1, 1]} : vector<16x128xf32> to vector<2x128xf32>
    %cst_89 = arith.constant dense<0.000000e+00> : vector<2x128xf32>
    %620 = tpu.matmul %602, %347, %cst_89 {dimension_numbers = #tpu.dot_dimension_numbers<[1], [0], [0], [1], [0, 0, 1, 1], [], []>} : vector<2x32xf32>, vector<32x128xf32>, vector<2x128xf32> -> vector<2x128xf32>
    %621 = arith.addf %619, %620 : vector<2x128xf32>
    %622 = vector.extract_strided_slice %346 {offsets = [0, 0], sizes = [2, 128], strides = [1, 1]} : vector<16x128xf32> to vector<2x128xf32>
    %cst_90 = arith.constant dense<0.000000e+00> : vector<2x128xf32>
    %623 = tpu.matmul %618, %348, %cst_90 {dimension_numbers = #tpu.dot_dimension_numbers<[1], [0], [0], [1], [0, 0, 1, 1], [], []>} : vector<2x32xf32>, vector<32x128xf32>, vector<2x128xf32> -> vector<2x128xf32>
    %624 = arith.addf %622, %623 : vector<2x128xf32>
    %625 = math.tanh %621 : vector<2x128xf32>
    %626 = arith.negf %621 : vector<2x128xf32>
    %627 = math.exp %626 : vector<2x128xf32>
    %cst_91 = arith.constant 1.000000e+00 : f32
    %628 = vector.broadcast %cst_91 : f32 to vector<2x128xf32>
    %629 = arith.addf %628, %627 : vector<2x128xf32>
    %630 = arith.divf %628, %629 : vector<2x128xf32>
    %631 = arith.select %13, %625, %630 : vector<2x128xi1>, vector<2x128xf32>
    %632 = vector.extract_strided_slice %631 {offsets = [0, 0], sizes = [2, 32], strides = [1, 1]} : vector<2x128xf32> to vector<2x32xf32>
    %633 = vector.extract_strided_slice %631 {offsets = [0, 32], sizes = [2, 32], strides = [1, 1]} : vector<2x128xf32> to vector<2x32xf32>
    %634 = vector.extract_strided_slice %631 {offsets = [0, 64], sizes = [2, 32], strides = [1, 1]} : vector<2x128xf32> to vector<2x32xf32>
    %635 = vector.extract_strided_slice %631 {offsets = [0, 96], sizes = [2, 32], strides = [1, 1]} : vector<2x128xf32> to vector<2x32xf32>
    %636 = arith.mulf %633, %600 : vector<2x32xf32>
    %637 = arith.mulf %632, %634 : vector<2x32xf32>
    %638 = arith.addf %636, %637 : vector<2x32xf32>
    %639 = math.tanh %638 : vector<2x32xf32>
    %640 = arith.mulf %635, %639 : vector<2x32xf32>
    %641 = math.tanh %624 : vector<2x128xf32>
    %642 = arith.negf %624 : vector<2x128xf32>
    %643 = math.exp %642 : vector<2x128xf32>
    %cst_92 = arith.constant 1.000000e+00 : f32
    %644 = vector.broadcast %cst_92 : f32 to vector<2x128xf32>
    %645 = arith.addf %644, %643 : vector<2x128xf32>
    %646 = arith.divf %644, %645 : vector<2x128xf32>
    %647 = arith.select %13, %641, %646 : vector<2x128xi1>, vector<2x128xf32>
    %648 = vector.extract_strided_slice %647 {offsets = [0, 0], sizes = [2, 32], strides = [1, 1]} : vector<2x128xf32> to vector<2x32xf32>
    %649 = vector.extract_strided_slice %647 {offsets = [0, 32], sizes = [2, 32], strides = [1, 1]} : vector<2x128xf32> to vector<2x32xf32>
    %650 = vector.extract_strided_slice %647 {offsets = [0, 64], sizes = [2, 32], strides = [1, 1]} : vector<2x128xf32> to vector<2x32xf32>
    %651 = vector.extract_strided_slice %647 {offsets = [0, 96], sizes = [2, 32], strides = [1, 1]} : vector<2x128xf32> to vector<2x32xf32>
    %652 = arith.mulf %649, %616 : vector<2x32xf32>
    %653 = arith.mulf %648, %650 : vector<2x32xf32>
    %654 = arith.addf %652, %653 : vector<2x32xf32>
    %655 = math.tanh %654 : vector<2x32xf32>
    %656 = arith.mulf %651, %655 : vector<2x32xf32>
    %657 = tpu.concatenate %374, %656, %640, %390 in 1 : vector<2x32xf32>, vector<2x32xf32>, vector<2x32xf32>, vector<2x32xf32> -> vector<2x128xf32>
    %c0_93 = arith.constant 0 : index
    %c0_94 = arith.constant 0 : index
    %658 = vector.load %arg10[%c0_93, %c0_94] : memref<128x6xf32, #tpu.memory_space<vmem>>, vector<128x6xf32>
    %cst_95 = arith.constant dense<0.000000e+00> : vector<2x6xf32>
    %659 = tpu.matmul %657, %658, %cst_95 {dimension_numbers = #tpu.dot_dimension_numbers<[1], [0], [0], [1], [0, 0, 1, 1], [], []>} : vector<2x128xf32>, vector<128x6xf32>, vector<2x6xf32> -> vector<2x6xf32>
    %c0_96 = arith.constant 0 : index
    %c0_97 = arith.constant 0 : index
    %660 = vector.load %arg11[%c0_96, %c0_97] : memref<1x6xf32, #tpu.memory_space<vmem>>, vector<1x6xf32>
    %661 = vector.broadcast %660 : vector<1x6xf32> to vector<2x6xf32>
    %662 = arith.addf %659, %661 : vector<2x6xf32>
    %c0_98 = arith.constant 0 : index
    %c0_99 = arith.constant 0 : index
    %663 = vector.load %arg12[%c0_98, %c0_99] : memref<2x6xf32, #tpu.memory_space<vmem>>, vector<2x6xf32>
    tpu.vector_store %arg12[%c0_98, %c0_99], %662 {strides = array<i32>} : memref<2x6xf32, #tpu.memory_space<vmem>>, vector<2x6xf32>,
    return
  }
}

</mosaic_0001>

<bundles_post_ra>
// kernel: classifier_forward.1
= control target key start
LH: loop header
LB: loop body
LE: loop exit
PB: predicated region body
PF: predicated region fallthrough
CT: control target
= control target key end

     0   :  { %17 = vsyncpa [#allocation3], 0  ;;  %s6111_s0 = inlined_call_operand.vmem [shape: s32[16,1], index: 0, kind: input, shape index: {}]   ;;  %s6112_s1 = inlined_call_operand.vmem [shape: f32[32,16], index: 1, kind: input, shape index: {}]   ;;  %s6113_s2 = inlined_call_operand.vmem [shape: f32[16,256], index: 2, kind: input, shape index: {}]   ;;  %s6114_s3 = inlined_call_operand.vmem [shape: f32[1,256], index: 3, kind: input, shape index: {}]   ;;  %s6115_s4 = inlined_call_operand.vmem [shape: f32[32,128], index: 4, kind: input, shape index: {}]   ;;  %s6116_s5 = inlined_call_operand.vmem [shape: f32[32,128], index: 5, kind: input, shape index: {}]   ;;  %s6117_s6 = inlined_call_operand.vmem [shape: f32[64,256], index: 6, kind: input, shape index: {}]   ;;  %s6118_s7 = inlined_call_operand.vmem [shape: f32[1,256], index: 7, kind: input, shape index: {}]   ;;  %s6119_s8 = inlined_call_operand.hbm [shape: f32[32,128], index: 8, kind: input, shape index: {}]   ;;  %s6120_s9 = inlined_call_operand.hbm [shape: f32[32,128], index: 9, kind: input, shape index: {}]   ;;  %s6121_s10 = inlined_call_operand.vmem [shape: f32[128,6], index: 10, kind: input, shape index: {}]   ;;  %s6122_s11 = inlined_call_operand.vmem [shape: f32[1,6], index: 11, kind: input, shape index: {}]   ;;  %s6123_s12 = inlined_call_operand.hbm [shape: f32[2,6], index: 12, kind: output, shape index: {}]  }
   0x1   :  { %18 = vsyncpa [#allocation6], 0 }
   0x2   :  { %19 = vsyncpa [#allocation4], 0  ;;  %s4977_s21 = smov [#allocation2]  }
   0x3   :  { %s41_s22 = sshll.u32 %s4977_s21, 4  ;;  %s42_s22 = int_to_ptr.vmem [resolvable:$true] %s41_s22 }
   0x4   :  { %s4919_s23 = scalar_lea.vmem %s42_s22, 512  ;;  %p4924_p1 = scmp.lt.s32.totalorder %s42_s22, %s42_s22 }
   0x5   :  { %p4920_p0 = scmp.ne.s32.totalorder %s42_s22, %s4919_s23  ;;  %p4925_p2 = scmp.lt.s32.totalorder %s4919_s23, %s4919_s23 }
   0x7   :  { %p4926_p3 = por %p4925_p2, %p4924_p1 }
   0x9   :  { %p4927_p4 = pnand %p4926_p3, %p4920_p0 }
   0xb   :  { %4930 = shalt.err (!%p4927_p4)
}
   0xc   :  { %s4978_s24 = smov 128   ;;  %s4979_s25 = smov 8  }
   0xd   :  { %47 = dma.hbm_to_vmem [thread:$0]  %s6119_s8, 512, %s42_s22, [#allocation3], %s4978_s24, %s4978_s24, %s4979_s25  }
   0xe   :  { %s4980_s28 = smov [#allocation5]  }
   0xf   :  { %s53_s29 = sshll.u32 %s4980_s28, 4  ;;  %s54_s29 = int_to_ptr.vmem [resolvable:$true] %s53_s29 }
  0x10   :  { %s4939_s30 = scalar_lea.vmem %s54_s29, 512  ;;  %p4944_p6 = scmp.lt.s32.totalorder %s54_s29, %s54_s29 }
  0x11   :  { %p4940_p5 = scmp.ne.s32.totalorder %s54_s29, %s4939_s30  ;;  %p4945_p7 = scmp.lt.s32.totalorder %s4939_s30, %s4939_s30 }
  0x13   :  { %p4946_p8 = por %p4945_p7, %p4944_p6 }
  0x15   :  { %p4947_p9 = pnand %p4946_p8, %p4940_p5 }
  0x17   :  { %4950 = shalt.err (!%p4947_p9)
}
  0x18   :  { %59 = dma.hbm_to_vmem [thread:$0]  %s6120_s9, 512, %s54_s29, [#allocation6], %s4978_s24, %s4978_s24, %s4979_s25  }
  0x19   :  { %4971 = dma.done.wait [#allocation3], 512  }
  0x1a   :  { %4972 = vsyncadd [#allocation3], 4294966784 }
  0x1b   :  { %4973 = dma.done.wait [#allocation6], 512  }
  0x1c   :  { %4974 = vsyncadd [#allocation6], 4294966784  ;;  %v4981_v0 = vmov 0   ;;  %v4982_v1 = vmov 0.0   ;;  %v70_v2 = vld [vmem:[%s6111_s0] sm:$0xff]  ;;  %v89_v3 = vld [vmem:[%s6112_s1 + $0x18] sm:$0xff]  ;;  %v72_v9 = vlaneseq }
  0x1d   :  { %4646 = vset.pattern.permute.xlu0 %v4981_v0  ;;  %262 = vmatprep.mubr.f32.mxu1 %v4982_v1  ;;  %v88_v4 = vld [vmem:[%s6112_s1 + $0x10] sm:$0xff]  ;;  %v71_v5 = vld [vmem:[%s6111_s0 + $0x8] sm:$0xff]  ;;  %v178_v7 = vld [vmem:[%s6113_s2 + $0x18] sm:$0xff]  ;;  %vm90_vm0 = vcmask 261120   ;;  %vm4983_vm3 = vmmov 0   ;;  %vm191_vm4 = vcmask 130048  }
  0x1e   :  { %75 = vperm.xlu0 %4646, %v70_v2   ;;  %4237 = vmatprep.subr.mxu0 %v89_v3  ;;  %v87_v6 = vld [vmem:[%s6112_s1 + $0x8] sm:$0xff]  ;;  %v86_v8 = vld [vmem:[%s6112_s1] sm:$0xff]  ;;  %v5083_v10 = vand.u32 127, %v72_v9  ;;  %v177_v15 = vld [vmem:[%s6113_s2 + $0x10] sm:$0xff]  ;;  %v5185_v30 = vshrl.u32 %v72_v9, 7  ;;  %s4985_s0 = smov 32  }
  0x1f   :  { %4238 = vmatpush3.msra.mxu0 %v89_v3  ;;  %226 = vmatprep.subr.mxu1 %v178_v7  ;;  %v5097_v16 = vld [vmem:[%s6116_s5 + $0x18] sm:$0xff]  ;;  %v176_v17 = vld [vmem:[%s6113_s2 + $0x8] sm:$0xff]  ;;  %v175_v18 = vld [vmem:[%s6113_s2] sm:$0xff]  ;;  %vm2037_vm8 = vcmask 1043456   ;;  %vm2035_vm9 = vcmask 1041408   ;;  %vm2039_vm10 = vcmask 1045504  }
  0x20   :  { %4239 = vmatprep.subr.mxu0 %v88_v4  ;;  %227 = vmatpush1.msra.mxu1 %v177_v15  ;;  %v5110_v19 = vld [vmem:[%s6116_s5 + $0x10] sm:$0xff]  ;;  %v5118_v20 = vld [vmem:[%s6116_s5 + $0x8] sm:$0xff]  ;;  %v5125_v21 = vld [vmem:[%s6116_s5] sm:$0xff]  ;;  %v187_v31 = vsub.s32 1, %v5185_v30  ;;  %v183_v33 = vsub.s32 0, %v5185_v30  ;;  %vm172_vm5 = vcmp.ge.s32.totalorder %v5083_v10, 64 }
  0x21   :  { %4240 = vmatpush3.msra.mxu0 %v88_v4  ;;  %228 = vmatprep.subr.mxu1 %v176_v17  ;;  %v5145_v23 = vld [vmem:[%s6115_s4 + $0x18] sm:$0xff]  ;;  %v5150_v25 = vld [vmem:[%s6115_s4 + $0x10] sm:$0xff]  ;;  %v5158_v26 = vld [vmem:[%s6115_s4 + $0x8] sm:$0xff]  ;;  %vm173_vm6 = vcmp.lt.s32.totalorder %v5083_v10, 96  ;;  %vm2072_vm11 = vcmask 523264   ;;  %s4986_s24 = smov 96  }
  0x22   :  { %78 = vperm.xlu0 %4646, %v71_v5   ;;  %4241 = vmatprep.subr.mxu0 %v87_v6  ;;  %v5165_v27 = vld [vmem:[%s6115_s4] sm:$0xff]  ;;  %vm5208_vm7 = vmand %vm172_vm5, %vm173_vm6  ;;  %vm3872_vm12 = vcmask 785408   ;;  %s4987_s4 = smov [#allocation7]   ;;  %vm3967_vm13 = vcmask 41984  }
  0x23   :  { %4242 = vmatpush3.msra.mxu0 %v87_v6  ;;  %229 = vmatpush1.msra.mxu1 %v175_v18  ;;  %v179_v32 = vld [vmem:[%s6114_s3] sm:$0x3]  ;;  %s4984_s3 = smov 64   ;;  %s3975_s26 = sshll.u32 %s4987_s4, 4  ;;  %s3976_s26 = int_to_ptr.vmem [resolvable:$true] %s3975_s26 }
  0x24   :  { %4243 = vmatprep.subr.mxu0 %v86_v8  ;;  %4248 = vmatprep.subr.mxu1 %v4982_v1  ;;  %v188_v34 = vrot.slane %v179_v32, %v187_v31  ;;  %v184_v37 = vrot.slane %v179_v32, %v183_v33  ;;  %p4956_p11 = scmp.lt.s32.totalorder %s3976_s26, %s3976_s26 }
  0x25   :  { %4244 = vmatpush3.msra.mxu0 %v86_v8 }
  0x26   :  { %4259 = vmatprep.subr.mxu0 %v4982_v1 }
  0x99   :  { %v76_v11 = vpop.permute.xlu0 %75 }
  0x9a   :  { %vm80_vm1 = vcmp.eq.s32.totalorder %v5083_v10, %v76_v11 }
  0x9b   :  { %v3985_v12 = vsel %vm80_vm1, 1.0, %v4982_v1 }
  0x9c   :  { %4245 = vmatprep.mubr.msk.f32.mxu0 %vm90_vm0, %v3985_v12 }
  0x9d   :  { %v79_v13 = vpop.permute.xlu0 %78 }
  0x9e   :  { %vm81_vm2 = vcmp.eq.s32.totalorder %v5083_v10, %v79_v13 }
  0x9f   :  { %v3986_v14 = vsel %vm81_vm2, 1.0, %v4982_v1 }
  0xa0   :  { %4246 = vmatmul.mubr.msk.f32.vlgmr.msra.gmra.mxu0 %vm90_vm0, %v3986_v14 }
  0xa1   :  { %4260 = vmatpush3.msra.mxu0 %v5097_v16  ;;  %4267 = vmatprep.mubr.msk.f32.mxu0 %vm4983_vm3, %v4982_v1 }
  0xa2   :  { %4261 = vmatprep.subr.mxu0 %v4982_v1 }
  0xa3   :  { %4262 = vmatpush3.msra.mxu0 %v5110_v19 }
  0xa4   :  { %4263 = vmatprep.subr.mxu0 %v4982_v1 }
  0xa5   :  { %4264 = vmatpush3.msra.mxu0 %v5118_v20 }
  0xa6   :  { %4265 = vmatprep.subr.mxu0 %v4982_v1 }
  0xa7   :  { %4266 = vmatpush3.msra.mxu0 %v5125_v21 }
  0xa8   :  { %4268 = vmatmul.mubr.f32.vlgmr.msra.gmra.mxu0 %v4982_v1  ;;  %4281 = vmatprep.subr.mxu0 %v4982_v1 }
  0xa9   :  { %4282 = vmatpush3.msra.mxu0 %v5097_v16  ;;  %4289 = vmatprep.mubr.msk.f32.mxu0 %vm4983_vm3, %v4982_v1 }
  0xaa   :  { %4283 = vmatprep.subr.mxu0 %v4982_v1 }
  0xab   :  { %4284 = vmatpush3.msra.mxu0 %v5110_v19 }
  0xac   :  { %4285 = vmatprep.subr.mxu0 %v4982_v1 }
  0xad   :  { %4286 = vmatpush3.msra.mxu0 %v5118_v20 }
  0xae   :  { %4287 = vmatprep.subr.mxu0 %v4982_v1 }
  0xaf   :  { %4288 = vmatpush3.msra.mxu0 %v5125_v21 }
  0xb0   :  { %4303 = vmatprep.subr.mxu0 %v4982_v1 }
 0x160   :  { %v4247_v22 = vpop.f32.mrf.mxu0 }
 0x162   :  { %v163_v24 = vpop.f32.mrf.mxu0 }
 0x163   :  { %3989 = vmatmul.mubr.msk.f32.vlgmr.msra.gmra.mxu1 %vm191_vm4, %v163_v24 }
 0x164   :  { %4249 = vmatpush3.msra.mxu1 %v5145_v23  ;;  %268 = vmatprep.mubr.f32.mxu1 %v4982_v1 }
 0x165   :  { %4250 = vmatprep.subr.mxu1 %v4982_v1 }
 0x166   :  { %4251 = vmatpush3.msra.mxu1 %v5150_v25 }
 0x167   :  { %3990 = vmatmul.mubr.msk.f32.gmra.mxu1 %vm191_vm4, %v4247_v22  ;;  %4252 = vmatprep.subr.mxu1 %v4982_v1 }
 0x168   :  { %4253 = vmatpush3.msra.mxu1 %v5158_v26  ;;  %4256 = vmatprep.mubr.msk.f32.mxu1 %vm4983_vm3, %v4982_v1  ;;  %v423_v28 = vpop.f32.mrf.mxu0 }
 0x169   :  { %4254 = vmatprep.subr.mxu1 %v4982_v1  ;;  %v428_v41 = vrot.slane %v423_v28, 2 }
 0x16a   :  { %4255 = vmatpush3.msra.mxu1 %v5165_v27  ;;  %v4269_v29 = vpop.f32.mrf.mxu0 }
 0x16b   :  { %4257 = vmatmul.mubr.f32.vlgmr.msra.gmra.mxu1 %v4982_v1  ;;  %4270 = vmatprep.subr.mxu1 %v4982_v1 }
 0x16c   :  { %4271 = vmatpush3.msra.mxu1 %v5145_v23  ;;  %4278 = vmatprep.mubr.msk.f32.mxu1 %vm4983_vm3, %v4982_v1 }
 0x16d   :  { %4272 = vmatprep.subr.mxu1 %v4982_v1 }
 0x16e   :  { %4273 = vmatpush3.msra.mxu1 %v5150_v25 }
 0x16f   :  { %4274 = vmatprep.subr.mxu1 %v4982_v1 }
 0x170   :  { %4275 = vmatpush3.msra.mxu1 %v5158_v26 }
 0x171   :  { %4276 = vmatprep.subr.mxu1 %v4982_v1 }
 0x172   :  { %4277 = vmatpush3.msra.mxu1 %v5165_v27 }
 0x173   :  { %4292 = vmatprep.subr.mxu1 %v4982_v1 }
 0x223   :  { %v264_v35 = vpop.f32.mrf.mxu1 }
 0x224   :  { %v5200_v43 = vadd.f32 %v264_v35, %v184_v37 }
 0x225   :  { %v266_v36 = vpop.f32.mrf.mxu1 }
 0x226   :  { %v5196_v38 = vadd.f32 %v266_v36, %v188_v34 }
 0x227   :  { %v270_v39 = vpop.f32.mrf.mxu1 }
 0x228   :  { %v5198_v40 = vadd.f32 %v270_v39, %v184_v37 }
 0x229   :  { %v272_v42 = vpop.f32.mrf.mxu1 }
 0x22a   :  { %v5202_v44 = vadd.f32 %v272_v42, %v188_v34 }
 0x22b   :  { %v352_v45 = vpop.f32.mrf.mxu1 }
 0x22c   :  { %v430_v46 = vadd.f32 %v428_v41, %v5202_v44  ;;  %v356_v47 = vadd.f32 %v352_v45, %v5200_v43 }
 0x22d   :  { %v4258_v48 = vpop.f32.mrf.mxu1 }
 0x22e   :  { %v3992_v49 = vmul.f32 -1.442695, %v430_v46  ;;  %v3991_v50 = vmul.f32 -1.442695, %v356_v47 }
 0x230   :  { %4647 = vpow2.f32 %v3992_v49 }
 0x231   :  { %4649 = vpow2.f32 %v3991_v50 }
 0x232   :  { %4651 = vtanh.f32 %v430_v46 }
 0x23d   :  { %v4648_v51 = vpop.eup %4647 }
 0x23e   :  { %v4650_v52 = vpop.eup %4649  ;;  %v460_v53 = vadd.f32 1.0, %v4648_v51 }
 0x23f   :  { %v435_v54 = vadd.f32 1.0, %v4650_v52  ;;  %v4652_v56 = vpop.eup %4651 }
 0x240   :  { %4653 = vrcp.f32 %v460_v53 }
 0x241   :  { %4655 = vrcp.f32 %v435_v54 }
 0x242   :  { %4657 = vtanh.f32 %v356_v47 }
 0x24d   :  { %v4654_v57 = vpop.eup %4653 }
 0x24e   :  { %v463_v58 = vsel %vm5208_vm7, %v4652_v56, %v4654_v57  ;;  %v4656_v59 = vpop.eup %4655 }
 0x24f   :  { %466 = vrot.lane.b32.xlu1 %v463_v58, %s4984_s3  ;;  %v4658_v60 = vpop.eup %4657  ;;  %v464_v3 = vmul.f32 0.0, %v463_v58 }
 0x250   :  { %v438_v61 = vsel %vm5208_vm7, %v4658_v60, %v4656_v59 }
 0x251   :  { %v439_v6 = vmul.f32 0.0, %v438_v61 }
 0x253   :  { %441 = vrot.lane.b32.xlu1 %v438_v61, %s4984_s3 }
 0x2c1   :  { %v467_v62 = vpop.permute.xlu1 %466 }
 0x2c2   :  { %v469_v63 = vmul.f32 %v467_v62, %v463_v58 }
 0x2c4   :  { %471 = vrot.lane.b32.xlu0 %v469_v63, %s4985_s0 }
 0x2c5   :  { %v442_v0 = vpop.permute.xlu1 %441 }
 0x2c6   :  { %v444_v2 = vmul.f32 %v442_v0, %v438_v61 }
 0x2c8   :  { %446 = vrot.lane.b32.xlu1 %v444_v2, %s4985_s0 }
 0x336   :  { %v472_v4 = vpop.permute.xlu0 %471 }
 0x337   :  { %v5220_v5 = vadd.f32 %v472_v4, %v464_v3 }
 0x339   :  { %4659 = vtanh.f32 %v5220_v5 }
 0x33a   :  { %v447_v7 = vpop.permute.xlu1 %446 }
 0x33b   :  { %v5223_v8 = vadd.f32 %v447_v7, %v439_v6 }
 0x33d   :  { %4661 = vtanh.f32 %v5223_v8  ;;  %v649_v59 = vrot.slane %v5223_v8, 6 }
 0x346   :  { %v4660_v9 = vpop.eup %4659 }
 0x347   :  { %477 = vrot.lane.b32.xlu0 %v4660_v9, %s4984_s3 }
 0x34a   :  { %v4662_v10 = vpop.eup %4661 }
 0x34b   :  { %452 = vrot.lane.b32.xlu1 %v4662_v10, %s4984_s3 }
 0x3b9   :  { %v478_v11 = vpop.permute.xlu0 %477 }
 0x3ba   :  { %v5228_v12 = vmul.f32 %v478_v11, %v463_v58  ;;  %v677_v58 = vrot.slane %v5220_v5, 2 }
 0x3bc   :  { %v561_v13 = vrot.slane %v5228_v12, 6 }
 0x3bd   :  { %v453_v14 = vpop.permute.xlu1 %452 }
 0x3be   :  { %v455_v15 = vmul.f32 %v453_v14, %v438_v61  ;;  %562 = vrot.lane.b32.xlu0 %v561_v13, %s4985_s0 }
 0x3c0   :  { %482 = vrot.lane.b32.xlu1 %v455_v15, %s4985_s0 }
 0x430   :  { %v563_v17 = vpop.permute.xlu0 %562 }
 0x431   :  { %4290 = vmatmul.mubr.msk.f32.vlgmr.msra.gmra.mxu0 %vm90_vm0, %v563_v17 }
 0x432   :  { %v5234_v18 = vpop.permute.xlu1 %482  ;;  %4304 = vmatpush3.msra.mxu0 %v5097_v16  ;;  %4311 = vmatprep.mubr.msk.f32.mxu0 %vm4983_vm3, %v4982_v1 }
 0x433   :  { %4279 = vmatmul.mubr.msk.f32.vlgmr.msra.gmra.mxu1 %vm90_vm0, %v5234_v18  ;;  %4305 = vmatprep.subr.mxu0 %v4982_v1 }
 0x434   :  { %4293 = vmatpush3.msra.mxu1 %v5145_v23  ;;  %4306 = vmatpush3.msra.mxu0 %v5110_v19 }
 0x435   :  { %4294 = vmatprep.subr.mxu1 %v4982_v1  ;;  %4307 = vmatprep.subr.mxu0 %v4982_v1 }
 0x436   :  { %4295 = vmatpush3.msra.mxu1 %v5150_v25  ;;  %4308 = vmatpush3.msra.mxu0 %v5118_v20 }
 0x437   :  { %4296 = vmatprep.subr.mxu1 %v4982_v1  ;;  %4309 = vmatprep.subr.mxu0 %v4982_v1 }
 0x438   :  { %4310 = vmatpush3.msra.mxu0 %v5125_v21  ;;  %4297 = vmatpush3.msra.mxu1 %v5158_v26 }
 0x439   :  { %4298 = vmatprep.subr.mxu1 %v4982_v1  ;;  %4300 = vmatprep.mubr.msk.f32.mxu1 %vm4983_vm3, %v4982_v1 }
 0x43a   :  { %4299 = vmatpush3.msra.mxu1 %v5165_v27  ;;  %4325 = vmatprep.subr.mxu0 %v4982_v1 }
 0x43b   :  { %4314 = vmatprep.subr.mxu1 %v4982_v1 }
 0x4f1   :  { %v632_v22 = vpop.f32.mrf.mxu0 }
 0x4f2   :  { %v637_v24 = vrot.slane %v632_v22, 4 }
 0x4f3   :  { %v552_v28 = vpop.f32.mrf.mxu1  ;;  %v4291_v29 = vpop.f32.mrf.mxu0 }
 0x4f4   :  { %v639_v32 = vadd.f32 %v637_v24, %v5202_v44  ;;  %v557_v34 = vrot.slane %v552_v28, 6 }
 0x4f5   :  { %v4280_v35 = vpop.f32.mrf.mxu1 }
 0x4f6   :  { %v3996_v36 = vmul.f32 -1.442695, %v639_v32  ;;  %v559_v37 = vadd.f32 %v557_v34, %v5200_v43 }
 0x4f8   :  { %4663 = vpow2.f32 %v3996_v36  ;;  %v3995_v39 = vmul.f32 -1.442695, %v559_v37 }
 0x4fa   :  { %4665 = vpow2.f32 %v3995_v39 }
 0x4fb   :  { %4667 = vtanh.f32 %v639_v32 }
 0x505   :  { %v4664_v41 = vpop.eup %4663 }
 0x506   :  { %v672_v42 = vadd.f32 1.0, %v4664_v41 }
 0x507   :  { %v4666_v45 = vpop.eup %4665 }
 0x508   :  { %4669 = vrcp.f32 %v672_v42  ;;  %v644_v46 = vadd.f32 1.0, %v4666_v45  ;;  %v4668_v47 = vpop.eup %4667 }
 0x509   :  { %4671 = vtanh.f32 %v559_v37 }
 0x50a   :  { %4673 = vrcp.f32 %v644_v46 }
 0x515   :  { %v4670_v48 = vpop.eup %4669 }
 0x516   :  { %v4672_v49 = vpop.eup %4671  ;;  %v675_v50 = vsel %vm5208_vm7, %v4668_v47, %v4670_v48 }
 0x517   :  { %v4674_v51 = vpop.eup %4673  ;;  %681 = vrot.lane.b32.xlu0 %v675_v50, %s4984_s3  ;;  %v679_v60 = vmul.f32 %v677_v58, %v675_v50 }
 0x518   :  { %v647_v52 = vsel %vm5208_vm7, %v4672_v49, %v4674_v51 }
 0x519   :  { %653 = vrot.lane.b32.xlu1 %v647_v52, %s4984_s3  ;;  %v651_v63 = vmul.f32 %v649_v59, %v647_v52 }
 0x589   :  { %v682_v53 = vpop.permute.xlu0 %681 }
 0x58a   :  { %v684_v54 = vmul.f32 %v682_v53, %v675_v50 }
 0x58b   :  { %v654_v56 = vpop.permute.xlu1 %653 }
 0x58c   :  { %v656_v57 = vmul.f32 %v654_v56, %v647_v52  ;;  %686 = vrot.lane.b32.xlu0 %v684_v54, %s4985_s0 }
 0x58e   :  { %658 = vrot.lane.b32.xlu1 %v656_v57, %s4985_s0 }
 0x5fe   :  { %v687_v61 = vpop.permute.xlu0 %686 }
 0x5ff   :  { %v5270_v62 = vadd.f32 %v687_v61, %v679_v60 }
 0x600   :  { %v659_v0 = vpop.permute.xlu1 %658 }
 0x601   :  { %4675 = vtanh.f32 %v5270_v62  ;;  %v5273_v2 = vadd.f32 %v659_v0, %v651_v63  ;;  %v893_v54 = vrot.slane %v5270_v62, 2 }
 0x603   :  { %4677 = vtanh.f32 %v5273_v2  ;;  %v865_v56 = vrot.slane %v5273_v2, 6 }
 0x60e   :  { %v4676_v3 = vpop.eup %4675 }
 0x60f   :  { %692 = vrot.lane.b32.xlu0 %v4676_v3, %s4984_s3 }
 0x610   :  { %v4678_v4 = vpop.eup %4677 }
 0x611   :  { %664 = vrot.lane.b32.xlu1 %v4678_v4, %s4984_s3 }
 0x681   :  { %v693_v5 = vpop.permute.xlu0 %692 }
 0x682   :  { %v5278_v6 = vmul.f32 %v693_v5, %v675_v50 }
 0x683   :  { %v665_v7 = vpop.permute.xlu1 %664 }
 0x684   :  { %v777_v8 = vrot.slane %v5278_v6, 4  ;;  %v5281_v9 = vmul.f32 %v665_v7, %v647_v52 }
 0x686   :  { %v697_v10 = vrot.slane %v5281_v9, 2  ;;  %778 = vrot.lane.b32.xlu0 %v777_v8, %s4985_s0 }
 0x688   :  { %698 = vrot.lane.b32.xlu1 %v697_v10, %s4985_s0 }
 0x6f8   :  { %v779_v11 = vpop.permute.xlu0 %778 }
 0x6f9   :  { %4312 = vmatmul.mubr.msk.f32.vlgmr.msra.gmra.mxu0 %vm90_vm0, %v779_v11 }
 0x6fa   :  { %v699_v13 = vpop.permute.xlu1 %698  ;;  %4326 = vmatpush3.msra.mxu0 %v5097_v16  ;;  %4333 = vmatprep.mubr.msk.f32.mxu0 %vm4983_vm3, %v4982_v1 }
 0x6fb   :  { %4301 = vmatmul.mubr.msk.f32.vlgmr.msra.gmra.mxu1 %vm90_vm0, %v699_v13  ;;  %4327 = vmatprep.subr.mxu0 %v4982_v1 }
 0x6fc   :  { %4315 = vmatpush3.msra.mxu1 %v5145_v23  ;;  %4328 = vmatpush3.msra.mxu0 %v5110_v19 }
 0x6fd   :  { %4316 = vmatprep.subr.mxu1 %v4982_v1  ;;  %4329 = vmatprep.subr.mxu0 %v4982_v1 }
 0x6fe   :  { %4317 = vmatpush3.msra.mxu1 %v5150_v25  ;;  %4330 = vmatpush3.msra.mxu0 %v5118_v20 }
 0x6ff   :  { %4318 = vmatprep.subr.mxu1 %v4982_v1  ;;  %4331 = vmatprep.subr.mxu0 %v4982_v1 }
 0x700   :  { %4332 = vmatpush3.msra.mxu0 %v5125_v21  ;;  %4319 = vmatpush3.msra.mxu1 %v5158_v26 }
 0x701   :  { %4320 = vmatprep.subr.mxu1 %v4982_v1  ;;  %4322 = vmatprep.mubr.msk.f32.mxu1 %vm4983_vm3, %v4982_v1 }
 0x702   :  { %4321 = vmatpush3.msra.mxu1 %v5165_v27  ;;  %4347 = vmatprep.subr.mxu0 %v4982_v1 }
 0x703   :  { %4336 = vmatprep.subr.mxu1 %v4982_v1 }
 0x7b9   :  { %v848_v14 = vpop.f32.mrf.mxu0 }
 0x7ba   :  { %v853_v15 = vrot.slane %v848_v14, 6 }
 0x7bb   :  { %v768_v17 = vpop.f32.mrf.mxu1  ;;  %v4313_v22 = vpop.f32.mrf.mxu0 }
 0x7bc   :  { %v855_v24 = vadd.f32 %v853_v15, %v5202_v44  ;;  %v773_v28 = vrot.slane %v768_v17, 4 }
 0x7bd   :  { %v4302_v29 = vpop.f32.mrf.mxu1 }
 0x7be   :  { %v4000_v32 = vmul.f32 -1.442695, %v855_v24  ;;  %v775_v34 = vadd.f32 %v773_v28, %v5200_v43 }
 0x7c0   :  { %4679 = vpow2.f32 %v4000_v32  ;;  %v3999_v35 = vmul.f32 -1.442695, %v775_v34 }
 0x7c2   :  { %4681 = vpow2.f32 %v3999_v35 }
 0x7c3   :  { %4683 = vtanh.f32 %v855_v24 }
 0x7cd   :  { %v4680_v36 = vpop.eup %4679 }
 0x7ce   :  { %v888_v37 = vadd.f32 1.0, %v4680_v36 }
 0x7cf   :  { %v4682_v39 = vpop.eup %4681 }
 0x7d0   :  { %4685 = vrcp.f32 %v888_v37  ;;  %v860_v41 = vadd.f32 1.0, %v4682_v39  ;;  %v4684_v42 = vpop.eup %4683 }
 0x7d1   :  { %4687 = vtanh.f32 %v775_v34 }
 0x7d2   :  { %4689 = vrcp.f32 %v860_v41 }
 0x7dd   :  { %v4686_v45 = vpop.eup %4685 }
 0x7de   :  { %v4688_v46 = vpop.eup %4687  ;;  %v891_v47 = vsel %vm5208_vm7, %v4684_v42, %v4686_v45 }
 0x7df   :  { %v4690_v48 = vpop.eup %4689  ;;  %897 = vrot.lane.b32.xlu0 %v891_v47, %s4984_s3  ;;  %v895_v57 = vmul.f32 %v893_v54, %v891_v47 }
 0x7e0   :  { %v863_v49 = vsel %vm5208_vm7, %v4688_v46, %v4690_v48 }
 0x7e1   :  { %869 = vrot.lane.b32.xlu1 %v863_v49, %s4984_s3  ;;  %v867_v60 = vmul.f32 %v865_v56, %v863_v49 }
 0x851   :  { %v898_v50 = vpop.permute.xlu0 %897 }
 0x852   :  { %v900_v51 = vmul.f32 %v898_v50, %v891_v47 }
 0x853   :  { %v870_v52 = vpop.permute.xlu1 %869 }
 0x854   :  { %v872_v53 = vmul.f32 %v870_v52, %v863_v49  ;;  %902 = vrot.lane.b32.xlu0 %v900_v51, %s4985_s0 }
 0x856   :  { %874 = vrot.lane.b32.xlu1 %v872_v53, %s4985_s0 }
 0x8c6   :  { %v903_v58 = vpop.permute.xlu0 %902 }
 0x8c7   :  { %v5320_v59 = vadd.f32 %v903_v58, %v895_v57 }
 0x8c8   :  { %v875_v61 = vpop.permute.xlu1 %874 }
 0x8c9   :  { %4691 = vtanh.f32 %v5320_v59  ;;  %v5323_v63 = vadd.f32 %v875_v61, %v867_v60  ;;  %v1106_v50 = vrot.slane %v5320_v59, 2 }
 0x8cb   :  { %4693 = vtanh.f32 %v5323_v63  ;;  %v1078_v53 = vrot.slane %v5323_v63, 6 }
 0x8d6   :  { %v4692_v0 = vpop.eup %4691 }
 0x8d7   :  { %908 = vrot.lane.b32.xlu0 %v4692_v0, %s4984_s3 }
 0x8d8   :  { %v4694_v3 = vpop.eup %4693 }
 0x8d9   :  { %880 = vrot.lane.b32.xlu1 %v4694_v3, %s4984_s3 }
 0x949   :  { %v909_v62 = vpop.permute.xlu0 %908 }
 0x94a   :  { %v5328_v2 = vmul.f32 %v909_v62, %v891_v47 }
 0x94b   :  { %v881_v4 = vpop.permute.xlu1 %880 }
 0x94c   :  { %v993_v5 = vrot.slane %v5328_v2, 2  ;;  %v5331_v7 = vmul.f32 %v881_v4, %v863_v49 }
 0x94e   :  { %v913_v8 = vrot.slane %v5331_v7, 4  ;;  %994 = vrot.lane.b32.xlu0 %v993_v5, %s4985_s0 }
 0x950   :  { %914 = vrot.lane.b32.xlu1 %v913_v8, %s4985_s0 }
 0x9c0   :  { %v995_v10 = vpop.permute.xlu0 %994 }
 0x9c1   :  { %4334 = vmatmul.mubr.msk.f32.vlgmr.msra.gmra.mxu0 %vm90_vm0, %v995_v10 }
 0x9c2   :  { %v915_v11 = vpop.permute.xlu1 %914  ;;  %4348 = vmatpush3.msra.mxu0 %v5097_v16  ;;  %4355 = vmatprep.mubr.msk.f32.mxu0 %vm4983_vm3, %v4982_v1 }
 0x9c3   :  { %4323 = vmatmul.mubr.msk.f32.vlgmr.msra.gmra.mxu1 %vm90_vm0, %v915_v11  ;;  %4349 = vmatprep.subr.mxu0 %v4982_v1 }
 0x9c4   :  { %4350 = vmatpush3.msra.mxu0 %v5110_v19  ;;  %4337 = vmatpush3.msra.mxu1 %v5145_v23 }
 0x9c5   :  { %4351 = vmatprep.subr.mxu0 %v4982_v1  ;;  %4338 = vmatprep.subr.mxu1 %v4982_v1 }
 0x9c6   :  { %4352 = vmatpush3.msra.mxu0 %v5118_v20  ;;  %4339 = vmatpush3.msra.mxu1 %v5150_v25 }
 0x9c7   :  { %4353 = vmatprep.subr.mxu0 %v4982_v1  ;;  %4340 = vmatprep.subr.mxu1 %v4982_v1 }
 0x9c8   :  { %4354 = vmatpush3.msra.mxu0 %v5125_v21  ;;  %4341 = vmatpush3.msra.mxu1 %v5158_v26 }
 0x9c9   :  { %4342 = vmatprep.subr.mxu1 %v4982_v1  ;;  %4344 = vmatprep.mubr.msk.f32.mxu1 %vm4983_vm3, %v4982_v1 }
 0x9ca   :  { %4343 = vmatpush3.msra.mxu1 %v5165_v27  ;;  %4369 = vmatprep.subr.mxu0 %v4982_v1 }
 0x9cb   :  { %4358 = vmatprep.subr.mxu1 %v4982_v1 }
 0xa81   :  { %v1064_v13 = vpop.f32.mrf.mxu0 }
 0xa82   :  { %v1068_v14 = vadd.f32 %v1064_v13, %v5202_v44 }
 0xa83   :  { %v984_v15 = vpop.f32.mrf.mxu1  ;;  %v4335_v17 = vpop.f32.mrf.mxu0 }
 0xa84   :  { %v4004_v22 = vmul.f32 -1.442695, %v1068_v14  ;;  %v989_v24 = vrot.slane %v984_v15, 2 }
 0xa85   :  { %v4324_v28 = vpop.f32.mrf.mxu1 }
 0xa86   :  { %4695 = vpow2.f32 %v4004_v22  ;;  %v991_v29 = vadd.f32 %v989_v24, %v5200_v43 }
 0xa88   :  { %v4003_v32 = vmul.f32 -1.442695, %v991_v29 }
 0xa8a   :  { %4697 = vpow2.f32 %v4003_v32 }
 0xa8b   :  { %4699 = vtanh.f32 %v1068_v14 }
 0xa93   :  { %v4696_v34 = vpop.eup %4695 }
 0xa94   :  { %v1101_v35 = vadd.f32 1.0, %v4696_v34 }
 0xa96   :  { %4701 = vrcp.f32 %v1101_v35 }
 0xa97   :  { %v4698_v36 = vpop.eup %4697  ;;  %4703 = vtanh.f32 %v991_v29 }
 0xa98   :  { %v1073_v37 = vadd.f32 1.0, %v4698_v36  ;;  %v4700_v39 = vpop.eup %4699 }
 0xa9a   :  { %4705 = vrcp.f32 %v1073_v37 }
 0xaa3   :  { %v4702_v44 = vpop.eup %4701 }
 0xaa4   :  { %v1104_v41 = vsel %vm5208_vm7, %v4700_v39, %v4702_v44  ;;  %v4704_v42 = vpop.eup %4703 }
 0xaa5   :  { %1110 = vrot.lane.b32.xlu0 %v1104_v41, %s4984_s3  ;;  %v1108_v51 = vmul.f32 %v1106_v50, %v1104_v41 }
 0xaa7   :  { %v4706_v45 = vpop.eup %4705 }
 0xaa8   :  { %v1076_v43 = vsel %vm5208_vm7, %v4704_v42, %v4706_v45 }
 0xaa9   :  { %1082 = vrot.lane.b32.xlu1 %v1076_v43, %s4984_s3  ;;  %v1080_v56 = vmul.f32 %v1078_v53, %v1076_v43 }
 0xb17   :  { %v1111_v46 = vpop.permute.xlu0 %1110 }
 0xb18   :  { %v1113_v47 = vmul.f32 %v1111_v46, %v1104_v41 }
 0xb1a   :  { %1115 = vrot.lane.b32.xlu0 %v1113_v47, %s4985_s0 }
 0xb1b   :  { %v1083_v48 = vpop.permute.xlu1 %1082 }
 0xb1c   :  { %v1085_v49 = vmul.f32 %v1083_v48, %v1076_v43 }
 0xb1e   :  { %1087 = vrot.lane.b32.xlu1 %v1085_v49, %s4985_s0 }
 0xb8c   :  { %v1116_v52 = vpop.permute.xlu0 %1115 }
 0xb8d   :  { %v5370_v54 = vadd.f32 %v1116_v52, %v1108_v51 }
 0xb8f   :  { %4707 = vtanh.f32 %v5370_v54  ;;  %v1318_v47 = vrot.slane %v5370_v54, 2 }
 0xb90   :  { %v1088_v57 = vpop.permute.xlu1 %1087 }
 0xb91   :  { %v5373_v58 = vadd.f32 %v1088_v57, %v1080_v56 }
 0xb93   :  { %4709 = vtanh.f32 %v5373_v58  ;;  %v1290_v50 = vrot.slane %v5373_v58, 6 }
 0xb9c   :  { %v4708_v60 = vpop.eup %4707 }
 0xb9d   :  { %1121 = vrot.lane.b32.xlu0 %v4708_v60, %s4984_s3 }
 0xba0   :  { %v4710_v61 = vpop.eup %4709 }
 0xba1   :  { %1093 = vrot.lane.b32.xlu1 %v4710_v61, %s4984_s3 }
 0xc0f   :  { %v1122_v59 = vpop.permute.xlu0 %1121 }
 0xc10   :  { %v5378_v0 = vmul.f32 %v1122_v59, %v1104_v41 }
 0xc12   :  { %1203 = vrot.lane.b32.xlu0 %v5378_v0, %s4985_s0 }
 0xc13   :  { %v1094_v63 = vpop.permute.xlu1 %1093 }
 0xc14   :  { %v5382_v3 = vmul.f32 %v1094_v63, %v1076_v43 }
 0xc16   :  { %v1126_v62 = vrot.slane %v5382_v3, 6 }
 0xc18   :  { %1127 = vrot.lane.b32.xlu1 %v1126_v62, %s4985_s0 }
 0xc84   :  { %v1204_v4 = vpop.permute.xlu0 %1203 }
 0xc85   :  { %4356 = vmatmul.mubr.msk.f32.vlgmr.msra.gmra.mxu0 %vm90_vm0, %v1204_v4 }
 0xc86   :  { %4370 = vmatpush3.msra.mxu0 %v5097_v16  ;;  %4377 = vmatprep.mubr.msk.f32.mxu0 %vm4983_vm3, %v4982_v1 }
 0xc87   :  { %4371 = vmatprep.subr.mxu0 %v4982_v1 }
 0xc88   :  { %4372 = vmatpush3.msra.mxu0 %v5110_v19 }
 0xc89   :  { %4373 = vmatprep.subr.mxu0 %v4982_v1 }
 0xc8a   :  { %v1128_v5 = vpop.permute.xlu1 %1127  ;;  %4374 = vmatpush3.msra.mxu0 %v5118_v20 }
 0xc8b   :  { %4345 = vmatmul.mubr.msk.f32.vlgmr.msra.gmra.mxu1 %vm90_vm0, %v1128_v5  ;;  %4375 = vmatprep.subr.mxu0 %v4982_v1 }
 0xc8c   :  { %4359 = vmatpush3.msra.mxu1 %v5145_v23  ;;  %4376 = vmatpush3.msra.mxu0 %v5125_v21 }
 0xc8d   :  { %4360 = vmatprep.subr.mxu1 %v4982_v1  ;;  %4366 = vmatprep.mubr.msk.f32.mxu1 %vm4983_vm3, %v4982_v1 }
 0xc8e   :  { %4361 = vmatpush3.msra.mxu1 %v5150_v25  ;;  %4391 = vmatprep.subr.mxu0 %v4982_v1 }
 0xc8f   :  { %4362 = vmatprep.subr.mxu1 %v4982_v1 }
 0xc90   :  { %4363 = vmatpush3.msra.mxu1 %v5158_v26 }
 0xc91   :  { %4364 = vmatprep.subr.mxu1 %v4982_v1 }
 0xc92   :  { %4365 = vmatpush3.msra.mxu1 %v5165_v27 }
 0xc93   :  { %4380 = vmatprep.subr.mxu1 %v4982_v1 }
 0xd45   :  { %v1273_v8 = vpop.f32.mrf.mxu0 }
 0xd46   :  { %v1278_v10 = vrot.slane %v1273_v8, 2 }
 0xd47   :  { %v4357_v11 = vpop.f32.mrf.mxu0 }
 0xd48   :  { %v1280_v13 = vadd.f32 %v1278_v10, %v5196_v38 }
 0xd4a   :  { %v4008_v14 = vmul.f32 -1.442695, %v1280_v13 }
 0xd4b   :  { %v1197_v15 = vpop.f32.mrf.mxu1 }
 0xd4c   :  { %4711 = vpow2.f32 %v4008_v14  ;;  %v1201_v17 = vadd.f32 %v1197_v15, %v5198_v40 }
 0xd4d   :  { %v4346_v22 = vpop.f32.mrf.mxu1 }
 0xd4e   :  { %v4007_v24 = vmul.f32 -1.442695, %v1201_v17 }
 0xd50   :  { %4713 = vpow2.f32 %v4007_v24 }
 0xd51   :  { %4715 = vtanh.f32 %v1280_v13 }
 0xd59   :  { %v4712_v28 = vpop.eup %4711 }
 0xd5a   :  { %v1313_v29 = vadd.f32 1.0, %v4712_v28 }
 0xd5c   :  { %4717 = vrcp.f32 %v1313_v29 }
 0xd5d   :  { %v4714_v32 = vpop.eup %4713  ;;  %4719 = vtanh.f32 %v1201_v17 }
 0xd5e   :  { %v1285_v34 = vadd.f32 1.0, %v4714_v32  ;;  %v4716_v35 = vpop.eup %4715 }
 0xd60   :  { %4721 = vrcp.f32 %v1285_v34 }
 0xd69   :  { %v4718_v36 = vpop.eup %4717 }
 0xd6a   :  { %v1316_v37 = vsel %vm5208_vm7, %v4716_v35, %v4718_v36  ;;  %v4720_v39 = vpop.eup %4719 }
 0xd6b   :  { %1322 = vrot.lane.b32.xlu0 %v1316_v37, %s4984_s3  ;;  %v1320_v48 = vmul.f32 %v1318_v47, %v1316_v37 }
 0xd6d   :  { %v4722_v44 = vpop.eup %4721 }
 0xd6e   :  { %v1288_v41 = vsel %vm5208_vm7, %v4720_v39, %v4722_v44 }
 0xd6f   :  { %1294 = vrot.lane.b32.xlu1 %v1288_v41, %s4984_s3  ;;  %v1292_v52 = vmul.f32 %v1290_v50, %v1288_v41 }
 0xddd   :  { %v1323_v42 = vpop.permute.xlu0 %1322 }
 0xdde   :  { %v1325_v45 = vmul.f32 %v1323_v42, %v1316_v37 }
 0xde0   :  { %1327 = vrot.lane.b32.xlu0 %v1325_v45, %s4985_s0 }
 0xde1   :  { %v1295_v43 = vpop.permute.xlu1 %1294 }
 0xde2   :  { %v1297_v46 = vmul.f32 %v1295_v43, %v1288_v41 }
 0xde4   :  { %1299 = vrot.lane.b32.xlu1 %v1297_v46, %s4985_s0 }
 0xe52   :  { %v1328_v49 = vpop.permute.xlu0 %1327 }
 0xe53   :  { %v5420_v51 = vadd.f32 %v1328_v49, %v1320_v48 }
 0xe55   :  { %4723 = vtanh.f32 %v5420_v51  ;;  %v1533_v42 = vrot.slane %v5420_v51, 2 }
 0xe56   :  { %v1300_v53 = vpop.permute.xlu1 %1299 }
 0xe57   :  { %v5423_v56 = vadd.f32 %v1300_v53, %v1292_v52 }
 0xe59   :  { %4725 = vtanh.f32 %v5423_v56  ;;  %v1505_v45 = vrot.slane %v5423_v56, 6 }
 0xe62   :  { %v4724_v57 = vpop.eup %4723 }
 0xe63   :  { %1333 = vrot.lane.b32.xlu0 %v4724_v57, %s4984_s3 }
 0xe66   :  { %v4726_v60 = vpop.eup %4725 }
 0xe67   :  { %1305 = vrot.lane.b32.xlu1 %v4726_v60, %s4984_s3 }
 0xed5   :  { %v1334_v54 = vpop.permute.xlu0 %1333 }
 0xed6   :  { %v5428_v61 = vmul.f32 %v1334_v54, %v1316_v37 }
 0xed8   :  { %v1417_v58 = vrot.slane %v5428_v61, 6 }
 0xed9   :  { %v1306_v59 = vpop.permute.xlu1 %1305 }
 0xeda   :  { %v1308_v63 = vmul.f32 %v1306_v59, %v1288_v41  ;;  %1418 = vrot.lane.b32.xlu0 %v1417_v58, %s4985_s0 }
 0xedc   :  { %1338 = vrot.lane.b32.xlu1 %v1308_v63, %s4985_s0 }
 0xf4c   :  { %v1419_v62 = vpop.permute.xlu0 %1418 }
 0xf4d   :  { %4378 = vmatmul.mubr.msk.f32.vlgmr.msra.gmra.mxu0 %vm90_vm0, %v1419_v62  ;;  %v4903_v62 = vld [vmem:[%s6116_s5 + $0x18] sm:$0xff] }
 0xf4e   :  { %v5434_v4 = vpop.permute.xlu1 %1338  ;;  %4392 = vmatpush3.msra.mxu0 %v5097_v16  ;;  %4399 = vmatprep.mubr.msk.f32.mxu0 %vm4983_vm3, %v4982_v1 }
 0xf4f   :  { %4367 = vmatmul.mubr.msk.f32.vlgmr.msra.gmra.mxu1 %vm90_vm0, %v5434_v4  ;;  %4393 = vmatprep.subr.mxu0 %v4982_v1 }
 0xf50   :  { %4381 = vmatpush3.msra.mxu1 %v5145_v23  ;;  %4394 = vmatpush3.msra.mxu0 %v5110_v19 }
 0xf51   :  { %4382 = vmatprep.subr.mxu1 %v4982_v1  ;;  %4395 = vmatprep.subr.mxu0 %v4982_v1 }
 0xf52   :  { %4383 = vmatpush3.msra.mxu1 %v5150_v25  ;;  %4396 = vmatpush3.msra.mxu0 %v5118_v20 }
 0xf53   :  { %4384 = vmatprep.subr.mxu1 %v4982_v1  ;;  %4397 = vmatprep.subr.mxu0 %v4982_v1 }
 0xf54   :  { %4398 = vmatpush3.msra.mxu0 %v5125_v21  ;;  %4385 = vmatpush3.msra.mxu1 %v5158_v26 }
 0xf55   :  { %4386 = vmatprep.subr.mxu1 %v4982_v1  ;;  %4388 = vmatprep.mubr.msk.f32.mxu1 %vm4983_vm3, %v4982_v1 }
 0xf56   :  { %4387 = vmatpush3.msra.mxu1 %v5165_v27  ;;  %4413 = vmatprep.subr.mxu0 %v4982_v1 }
 0xf57   :  { %4402 = vmatprep.subr.mxu1 %v4982_v1 }
0x100d   :  { %v1488_v16 = vpop.f32.mrf.mxu0 }
0x100e   :  { %v1493_v19 = vrot.slane %v1488_v16, 4  ;;  %v4904_v16 = vld [vmem:[%s6116_s5 + $0x10] sm:$0xff] }
0x100f   :  { %v1408_v20 = vpop.f32.mrf.mxu1  ;;  %v4379_v5 = vpop.f32.mrf.mxu0 }
0x1010   :  { %v1495_v8 = vadd.f32 %v1493_v19, %v5196_v38  ;;  %v1413_v21 = vrot.slane %v1408_v20, 6  ;;  %v4905_v19 = vld [vmem:[%s6116_s5 + $0x8] sm:$0xff] }
0x1011   :  { %v4368_v10 = vpop.f32.mrf.mxu1 }
0x1012   :  { %v4012_v11 = vmul.f32 -1.442695, %v1495_v8  ;;  %v1415_v13 = vadd.f32 %v1413_v21, %v5198_v40 }
0x1014   :  { %4727 = vpow2.f32 %v4012_v11  ;;  %v4011_v14 = vmul.f32 -1.442695, %v1415_v13 }
0x1016   :  { %4729 = vpow2.f32 %v4011_v14 }
0x1017   :  { %4731 = vtanh.f32 %v1495_v8 }
0x1021   :  { %v4728_v15 = vpop.eup %4727 }
0x1022   :  { %v1528_v17 = vadd.f32 1.0, %v4728_v15 }
0x1023   :  { %v4730_v22 = vpop.eup %4729 }
0x1024   :  { %4733 = vrcp.f32 %v1528_v17  ;;  %v1500_v24 = vadd.f32 1.0, %v4730_v22  ;;  %v4732_v28 = vpop.eup %4731 }
0x1025   :  { %4735 = vtanh.f32 %v1415_v13 }
0x1026   :  { %4737 = vrcp.f32 %v1500_v24 }
0x1031   :  { %v4734_v29 = vpop.eup %4733 }
0x1032   :  { %v4736_v32 = vpop.eup %4735  ;;  %v1531_v34 = vsel %vm5208_vm7, %v4732_v28, %v4734_v29 }
0x1033   :  { %v4738_v35 = vpop.eup %4737  ;;  %1537 = vrot.lane.b32.xlu0 %v1531_v34, %s4984_s3  ;;  %v1535_v43 = vmul.f32 %v1533_v42, %v1531_v34 }
0x1034   :  { %v1503_v36 = vsel %vm5208_vm7, %v4736_v32, %v4738_v35 }
0x1035   :  { %1509 = vrot.lane.b32.xlu1 %v1503_v36, %s4984_s3  ;;  %v1507_v48 = vmul.f32 %v1505_v45, %v1503_v36 }
0x10a5   :  { %v1538_v37 = vpop.permute.xlu0 %1537 }
0x10a6   :  { %v1540_v39 = vmul.f32 %v1538_v37, %v1531_v34 }
0x10a7   :  { %v1510_v44 = vpop.permute.xlu1 %1509 }
0x10a8   :  { %v1512_v41 = vmul.f32 %v1510_v44, %v1503_v36  ;;  %1542 = vrot.lane.b32.xlu0 %v1540_v39, %s4985_s0 }
0x10aa   :  { %1514 = vrot.lane.b32.xlu1 %v1512_v41, %s4985_s0 }
0x111a   :  { %v1543_v46 = vpop.permute.xlu0 %1542 }
0x111b   :  { %v5470_v47 = vadd.f32 %v1543_v46, %v1535_v43 }
0x111c   :  { %v1515_v49 = vpop.permute.xlu1 %1514 }
0x111d   :  { %4739 = vtanh.f32 %v5470_v47  ;;  %v5473_v50 = vadd.f32 %v1515_v49, %v1507_v48  ;;  %v1749_v41 = vrot.slane %v5470_v47, 2 }
0x111f   :  { %4741 = vtanh.f32 %v5473_v50  ;;  %v1721_v42 = vrot.slane %v5473_v50, 6 }
0x112a   :  { %v4740_v52 = vpop.eup %4739 }
0x112b   :  { %1548 = vrot.lane.b32.xlu0 %v4740_v52, %s4984_s3 }
0x112c   :  { %v4742_v53 = vpop.eup %4741 }
0x112d   :  { %1520 = vrot.lane.b32.xlu1 %v4742_v53, %s4984_s3 }
0x119d   :  { %v1549_v51 = vpop.permute.xlu0 %1548 }
0x119e   :  { %v5478_v56 = vmul.f32 %v1549_v51, %v1531_v34 }
0x119f   :  { %v1521_v57 = vpop.permute.xlu1 %1520 }
0x11a0   :  { %v1633_v60 = vrot.slane %v5478_v56, 4  ;;  %v5481_v54 = vmul.f32 %v1521_v57, %v1503_v36 }
0x11a2   :  { %v1553_v58 = vrot.slane %v5481_v54, 2  ;;  %1634 = vrot.lane.b32.xlu0 %v1633_v60, %s4985_s0 }
0x11a4   :  { %1554 = vrot.lane.b32.xlu1 %v1553_v58, %s4985_s0 }
0x1214   :  { %v1635_v59 = vpop.permute.xlu0 %1634 }
0x1215   :  { %4400 = vmatmul.mubr.msk.f32.vlgmr.msra.gmra.mxu0 %vm90_vm0, %v1635_v59 }
0x1216   :  { %v1555_v63 = vpop.permute.xlu1 %1554  ;;  %4414 = vmatpush3.msra.mxu0 %v4903_v62  ;;  %4421 = vmatprep.mubr.msk.f32.mxu0 %vm4983_vm3, %v4982_v1 }
0x1217   :  { %4389 = vmatmul.mubr.msk.f32.vlgmr.msra.gmra.mxu1 %vm90_vm0, %v1555_v63  ;;  %4415 = vmatprep.subr.mxu0 %v4982_v1 }
0x1218   :  { %4403 = vmatpush3.msra.mxu1 %v5145_v23  ;;  %4416 = vmatpush3.msra.mxu0 %v4904_v16  ;;  %v4906_v23 = vld [vmem:[%s6116_s5] sm:$0xff] }
0x1219   :  { %4404 = vmatprep.subr.mxu1 %v4982_v1  ;;  %4417 = vmatprep.subr.mxu0 %v4982_v1 }
0x121a   :  { %4405 = vmatpush3.msra.mxu1 %v5150_v25  ;;  %4418 = vmatpush3.msra.mxu0 %v4905_v19 }
0x121b   :  { %4406 = vmatprep.subr.mxu1 %v4982_v1  ;;  %4419 = vmatprep.subr.mxu0 %v4982_v1 }
0x121c   :  { %4420 = vmatpush3.msra.mxu0 %v4906_v23  ;;  %4407 = vmatpush3.msra.mxu1 %v5158_v26 }
0x121d   :  { %4408 = vmatprep.subr.mxu1 %v4982_v1  ;;  %4410 = vmatprep.mubr.msk.f32.mxu1 %vm4983_vm3, %v4982_v1 }
0x121e   :  { %4409 = vmatpush3.msra.mxu1 %v5165_v27 }
0x121f   :  { %4446 = vmatprep.subr.mxu1 %v4982_v1 }
0x12d5   :  { %v1704_v25 = vpop.f32.mrf.mxu0 }
0x12d6   :  { %v1709_v20 = vrot.slane %v1704_v25, 6 }
0x12d7   :  { %v1624_v5 = vpop.f32.mrf.mxu1  ;;  %v4401_v8 = vpop.f32.mrf.mxu0 }
0x12d8   :  { %v1711_v21 = vadd.f32 %v1709_v20, %v5196_v38  ;;  %v1629_v10 = vrot.slane %v1624_v5, 4 }
0x12d9   :  { %v4390_v11 = vpop.f32.mrf.mxu1 }
0x12da   :  { %v4016_v13 = vmul.f32 -1.442695, %v1711_v21  ;;  %v1631_v26 = vadd.f32 %v1629_v10, %v5198_v40 }
0x12dc   :  { %4743 = vpow2.f32 %v4016_v13  ;;  %v4015_v14 = vmul.f32 -1.442695, %v1631_v26 }
0x12de   :  { %4745 = vpow2.f32 %v4015_v14 }
0x12df   :  { %4747 = vtanh.f32 %v1711_v21 }
0x12e9   :  { %v4744_v15 = vpop.eup %4743 }
0x12ea   :  { %v1744_v17 = vadd.f32 1.0, %v4744_v15 }
0x12eb   :  { %v4746_v22 = vpop.eup %4745 }
0x12ec   :  { %4749 = vrcp.f32 %v1744_v17  ;;  %v1716_v27 = vadd.f32 1.0, %v4746_v22  ;;  %v4748_v24 = vpop.eup %4747 }
0x12ed   :  { %4751 = vtanh.f32 %v1631_v26 }
0x12ee   :  { %4753 = vrcp.f32 %v1716_v27 }
0x12f9   :  { %v4750_v28 = vpop.eup %4749 }
0x12fa   :  { %v4752_v29 = vpop.eup %4751  ;;  %v1747_v32 = vsel %vm5208_vm7, %v4748_v24, %v4750_v28 }
0x12fb   :  { %v4754_v34 = vpop.eup %4753  ;;  %1753 = vrot.lane.b32.xlu0 %v1747_v32, %s4984_s3  ;;  %v1751_v45 = vmul.f32 %v1749_v41, %v1747_v32 }
0x12fc   :  { %v1719_v35 = vsel %vm5208_vm7, %v4752_v29, %v4754_v34 }
0x12fd   :  { %1725 = vrot.lane.b32.xlu1 %v1719_v35, %s4984_s3  ;;  %v1723_v48 = vmul.f32 %v1721_v42, %v1719_v35 }
0x136d   :  { %v1754_v36 = vpop.permute.xlu0 %1753 }
0x136e   :  { %v1756_v37 = vmul.f32 %v1754_v36, %v1747_v32 }
0x136f   :  { %v1726_v39 = vpop.permute.xlu1 %1725 }
0x1370   :  { %v1728_v44 = vmul.f32 %v1726_v39, %v1719_v35  ;;  %1758 = vrot.lane.b32.xlu0 %v1756_v37, %s4985_s0 }
0x1372   :  { %1730 = vrot.lane.b32.xlu1 %v1728_v44, %s4985_s0 }
0x13e2   :  { %v1759_v43 = vpop.permute.xlu0 %1758 }
0x13e3   :  { %v1761_v46 = vadd.f32 %v1759_v43, %v1751_v45 }
0x13e4   :  { %v1731_v49 = vpop.permute.xlu1 %1730 }
0x13e5   :  { %4755 = vtanh.f32 %v1761_v46  ;;  %v1733_v52 = vadd.f32 %v1731_v49, %v1723_v48  ;;  %v1962_v34 = vrot.slane %v1761_v46, 2  ;;  %v2059_v46 = vld [vmem:[%s6117_s6 + $0x78] sm:$0xff]  ;;  %v2050_v49 = vld [vmem:[%s6117_s6 + $0x30] sm:$0xff] }
0x13e6   :  { %2095 = vmatprep.subr.mxu0 %v2059_v46  ;;  %v2051_v48 = vld [vmem:[%s6117_s6 + $0x38] sm:$0xff] }
0x13e7   :  { %4757 = vtanh.f32 %v1733_v52  ;;  %v1934_v37 = vrot.slane %v1733_v52, 6  ;;  %v2049_v52 = vld [vmem:[%s6117_s6 + $0x28] sm:$0xff] }
0x13f2   :  { %v4756_v53 = vpop.eup %4755 }
0x13f3   :  { %1764 = vrot.lane.b32.xlu0 %v4756_v53, %s4984_s3  ;;  %v2047_v53 = vld [vmem:[%s6117_s6 + $0x18] sm:$0xff] }
0x13f4   :  { %v4758_v51 = vpop.eup %4757 }
0x13f5   :  { %1736 = vrot.lane.b32.xlu1 %v4758_v51, %s4984_s3  ;;  %v2046_v51 = vld [vmem:[%s6117_s6 + $0x10] sm:$0xff] }
0x1465   :  { %v1765_v57 = vpop.permute.xlu0 %1764 }
0x1466   :  { %v1767_v60 = vmul.f32 %v1765_v57, %v1747_v32  ;;  %v2044_v57 = vld [vmem:[%s6117_s6] sm:$0xff] }
0x1467   :  { %v1737_v58 = vpop.permute.xlu1 %1736 }
0x1468   :  { %v1849_v47 = vrot.slane %v1767_v60, 2  ;;  %v5529_v59 = vmul.f32 %v1737_v58, %v1719_v35 }
0x146a   :  { %v1769_v50 = vrot.slane %v5529_v59, 4  ;;  %1850 = vrot.lane.b32.xlu0 %v1849_v47, %s4985_s0  ;;  %v5638_v47 = vld [vmem:[#allocation2 + $0x8] sm:$0xff] }
0x146c   :  { %1770 = vrot.lane.b32.xlu1 %v1769_v50, %s4985_s0 }
0x14dc   :  { %v1851_v63 = vpop.permute.xlu0 %1850 }
0x14dd   :  { %4422 = vmatmul.mubr.msk.f32.vlgmr.msra.gmra.mxu0 %vm90_vm0, %v1851_v63  ;;  %v5643_v63 = vld [vmem:[#allocation2] sm:$0xff] }
0x14de   :  { %v1771_v62 = vpop.permute.xlu1 %1770  ;;  %2143 = vmatprep.mubr.f32.mxu0 %v4982_v1 }
0x14df   :  { %4411 = vmatmul.mubr.msk.f32.vlgmr.msra.gmra.mxu1 %vm90_vm0, %v1771_v62 }
0x14e0   :  { %4454 = vmatprep.mubr.msk.f32.mxu1 %vm4983_vm3, %v4982_v1 }
0x159d   :  { %v1920_v16 = vpop.f32.mrf.mxu0 }
0x159e   :  { %v1924_v19 = vadd.f32 %v1920_v16, %v5196_v38 }
0x159f   :  { %v1840_v23 = vpop.f32.mrf.mxu1  ;;  %v4423_v25 = vpop.f32.mrf.mxu0 }
0x15a0   :  { %v4020_v20 = vmul.f32 -1.442695, %v1924_v19  ;;  %v1845_v5 = vrot.slane %v1840_v23, 2 }
0x15a1   :  { %v4412_v8 = vpop.f32.mrf.mxu1 }
0x15a2   :  { %4759 = vpow2.f32 %v4020_v20  ;;  %v1847_v21 = vadd.f32 %v1845_v5, %v5198_v40 }
0x15a4   :  { %v4019_v10 = vmul.f32 -1.442695, %v1847_v21 }
0x15a6   :  { %4761 = vpow2.f32 %v4019_v10 }
0x15a7   :  { %4763 = vtanh.f32 %v1924_v19 }
0x15af   :  { %v4760_v11 = vpop.eup %4759 }
0x15b0   :  { %v1957_v13 = vadd.f32 1.0, %v4760_v11 }
0x15b2   :  { %4765 = vrcp.f32 %v1957_v13 }
0x15b3   :  { %v4762_v26 = vpop.eup %4761  ;;  %4767 = vtanh.f32 %v1847_v21 }
0x15b4   :  { %v1929_v14 = vadd.f32 1.0, %v4762_v26  ;;  %v4764_v15 = vpop.eup %4763 }
0x15b6   :  { %4769 = vrcp.f32 %v1929_v14 }
0x15bf   :  { %v4766_v38 = vpop.eup %4765 }
0x15c0   :  { %v5543_v17 = vsel %vm5208_vm7, %v4764_v15, %v4766_v38  ;;  %v4768_v40 = vpop.eup %4767 }
0x15c1   :  { %1966 = vrot.lane.b32.xlu0 %v5543_v17, %s4984_s3  ;;  %v1964_v35 = vmul.f32 %v1962_v34, %v5543_v17 }
0x15c3   :  { %v4770_v22 = vpop.eup %4769 }
0x15c4   :  { %v5549_v27 = vsel %vm5208_vm7, %v4768_v40, %v4770_v22 }
0x15c5   :  { %1938 = vrot.lane.b32.xlu1 %v5549_v27, %s4984_s3  ;;  %v1936_v44 = vmul.f32 %v1934_v37, %v5549_v27 }
0x1633   :  { %v1967_v24 = vpop.permute.xlu0 %1966 }
0x1634   :  { %v1969_v28 = vmul.f32 %v1967_v24, %v5543_v17 }
0x1636   :  { %1971 = vrot.lane.b32.xlu0 %v1969_v28, %s4985_s0 }
0x1637   :  { %v1939_v29 = vpop.permute.xlu1 %1938 }
0x1638   :  { %v1941_v32 = vmul.f32 %v1939_v29, %v5549_v27 }
0x163a   :  { %1943 = vrot.lane.b32.xlu1 %v1941_v32, %s4985_s0 }
0x16a8   :  { %v1972_v36 = vpop.permute.xlu0 %1971 }
0x16a9   :  { %v1974_v39 = vadd.f32 %v1972_v36, %v1964_v35 }
0x16ab   :  { %4771 = vtanh.f32 %v1974_v39  ;;  %v5685_v39 = vld [vmem:[#allocation5 + $0x10] sm:$0xff] }
0x16ac   :  { %v1944_v41 = vpop.permute.xlu1 %1943 }
0x16ad   :  { %v1946_v42 = vadd.f32 %v1944_v41, %v1936_v44  ;;  %v5691_v44 = vld [vmem:[#allocation5 + $0x8] sm:$0xff]  ;;  %v5695_v41 = vld [vmem:[#allocation5] sm:$0xff] }
0x16af   :  { %4773 = vtanh.f32 %v1946_v42  ;;  %v2060_v42 = vld [vmem:[%s6118_s7] sm:$0x3] }
0x16b8   :  { %v4772_v45 = vpop.eup %4771 }
0x16b9   :  { %1977 = vrot.lane.b32.xlu0 %v4772_v45, %s4984_s3  ;;  %v2069_v45 = vrot.slane %v2060_v42, %v187_v31 }
0x16bc   :  { %v4774_v43 = vpop.eup %4773 }
0x16bd   :  { %1990 = vrot.lane.b32.xlu0 %v1767_v60, %s4984_s3  ;;  %1949 = vrot.lane.b32.xlu1 %v4774_v43, %s4984_s3  ;;  %v5635_v60 = vld [vmem:[#allocation2 + $0x10] sm:$0xff] }
0x16c1   :  { %1997 = vrot.lane.b32.xlu0 %v5478_v56, %s4984_s3  ;;  %1987 = vrot.lane.b32.xlu1 %v5281_v9, %s4985_s0  ;;  %v2058_v9 = vld [vmem:[%s6117_s6 + $0x70] sm:$0xff] }
0x16c2   :  { %2096 = vmatpush1.msra.mxu0 %v2058_v9  ;;  %v2054_v56 = vld [vmem:[%s6117_s6 + $0x50] sm:$0xff] }
0x16c5   :  { %2004 = vrot.lane.b32.xlu0 %v5428_v61, %s4984_s3  ;;  %1994 = vrot.lane.b32.xlu1 %v5331_v7, %s4985_s0  ;;  %v2057_v61 = vld [vmem:[%s6117_s6 + $0x68] sm:$0xff]  ;;  %v2056_v7 = vld [vmem:[%s6117_s6 + $0x60] sm:$0xff] }
0x16c6   :  { %2097 = vmatprep.subr.mxu0 %v2057_v61  ;;  %v2065_v61 = vrot.slane %v2060_v42, %v183_v33 }
0x16c7   :  { %2098 = vmatpush1.msra.mxu0 %v2056_v7 }
0x16c9   :  { %2013 = vrot.lane.b32.xlu0 %v5481_v54, %s4985_s0  ;;  %2001 = vrot.lane.b32.xlu1 %v5382_v3, %s4985_s0  ;;  %v2055_v3 = vld [vmem:[%s6117_s6 + $0x58] sm:$0xff]  ;;  %v2053_v54 = vld [vmem:[%s6117_s6 + $0x48] sm:$0xff] }
0x16ca   :  { %2099 = vmatprep.subr.mxu0 %v2055_v3 }
0x16cb   :  { %2100 = vmatpush1.msra.mxu0 %v2054_v56 }
0x16cc   :  { %2101 = vmatprep.subr.mxu0 %v2053_v54 }
0x16cd   :  { %2009 = vrot.lane.b32.xlu1 %v5378_v0, %s4984_s3  ;;  %v2052_v0 = vld [vmem:[%s6117_s6 + $0x40] sm:$0xff] }
0x16ce   :  { %2102 = vmatpush1.msra.mxu0 %v2052_v0 }
0x16cf   :  { %2103 = vmatprep.subr.mxu0 %v2051_v48 }
0x16d0   :  { %2104 = vmatpush1.msra.mxu0 %v2050_v49 }
0x16d1   :  { %2016 = vrot.lane.b32.xlu1 %v5328_v2, %s4984_s3  ;;  %v2048_v2 = vld [vmem:[%s6117_s6 + $0x20] sm:$0xff]  ;;  %2105 = vmatprep.subr.mxu0 %v2049_v52 }
0x16d2   :  { %2106 = vmatpush1.msra.mxu0 %v2048_v2 }
0x16d3   :  { %2107 = vmatprep.subr.mxu0 %v2047_v53 }
0x16d4   :  { %2108 = vmatpush1.msra.mxu0 %v2046_v51 }
0x16d5   :  { %2023 = vrot.lane.b32.xlu1 %v5278_v6, %s4984_s3  ;;  %v2045_v6 = vld [vmem:[%s6117_s6 + $0x8] sm:$0xff] }
0x16d6   :  { %2109 = vmatprep.subr.mxu0 %v2045_v6 }
0x16d7   :  { %2110 = vmatpush1.msra.mxu0 %v2044_v57 }
0x16d8   :  { %4424 = vmatprep.subr.mxu0 %v4982_v1 }
0x16d9   :  { %2031 = vrot.lane.b32.xlu1 %v5228_v12, %s4984_s3  ;;  %v5631_v12 = vld [vmem:[#allocation2 + $0x18] sm:$0xff] }
0x16da   :  { %4447 = vmatpush3.msra.mxu1 %v5631_v12 }
0x16db   :  { %4448 = vmatprep.subr.mxu1 %v4982_v1 }
0x16dc   :  { %4449 = vmatpush3.msra.mxu1 %v5635_v60 }
0x16dd   :  { %4450 = vmatprep.subr.mxu1 %v4982_v1 }
0x16de   :  { %4451 = vmatpush3.msra.mxu1 %v5638_v47 }
0x16df   :  { %4452 = vmatprep.subr.mxu1 %v4982_v1 }
0x16e0   :  { %4453 = vmatpush3.msra.mxu1 %v5643_v63 }
0x16e1   :  { %4468 = vmatprep.subr.mxu1 %v4982_v1 }
0x172b   :  { %v1978_v58 = vpop.permute.xlu0 %1977 }
0x172c   :  { %v1980_v50 = vmul.f32 %v1978_v58, %v5543_v17 }
0x172e   :  { %1983 = vrot.lane.b32.xlu0 %v1980_v50, %s4984_s3 }
0x172f   :  { %v1950_v62 = vpop.permute.xlu1 %1949  ;;  %v1991_v23 = vpop.permute.xlu0 %1990 }
0x1730   :  { %v1952_v16 = vmul.f32 %v1950_v62, %v5549_v27 }
0x1732   :  { %2020 = vrot.lane.b32.xlu0 %v5529_v59, %s4985_s0 }
0x1733   :  { %v1988_v19 = vpop.permute.xlu1 %1987  ;;  %v1998_v20 = vpop.permute.xlu0 %1997 }
0x1734   :  { %v1993_v26 = vsel %vm90_vm0, %v1988_v19, %v1991_v23 }
0x1736   :  { %2028 = vrot.lane.b32.xlu0 %v1952_v16, %s4985_s0 }
0x1737   :  { %v1995_v25 = vpop.permute.xlu1 %1994  ;;  %v2005_v8 = vpop.permute.xlu0 %2004 }
0x1738   :  { %v2000_v14 = vsel %vm90_vm0, %v1995_v25, %v1998_v20 }
0x173b   :  { %v2002_v5 = vpop.permute.xlu1 %2001  ;;  %v2014_v10 = vpop.permute.xlu0 %2013 }
0x173c   :  { %v2007_v17 = vsel %vm90_vm0, %v2002_v5, %v2005_v8 }
0x173f   :  { %v2010_v21 = vpop.permute.xlu1 %2009 }
0x1740   :  { %v2012_v28 = vsel %vm90_vm0, %v5434_v4, %v2010_v21  ;;  %v5682_v4 = vld [vmem:[#allocation5 + $0x18] sm:$0xff] }
0x1743   :  { %v2017_v11 = vpop.permute.xlu1 %2016 }
0x1744   :  { %v2019_v24 = vsel %vm90_vm0, %v2014_v10, %v2017_v11 }
0x1745   :  { %v2041_v29 = vsel %vm2035_vm9, %v2012_v28, %v2019_v24 }
0x1747   :  { %v2024_v15 = vpop.permute.xlu1 %2023 }
0x174b   :  { %v2032_v32 = vpop.permute.xlu1 %2031 }
0x17a0   :  { %v1984_v13 = vpop.permute.xlu0 %1983 }
0x17a1   :  { %v1986_v59 = vsel %vm90_vm0, %v5234_v18, %v1984_v13 }
0x17a2   :  { %v2036_v38 = vsel %vm2035_vm9, %v1986_v59, %v1993_v26 }
0x17a3   :  { %v2038_v40 = vsel %vm2037_vm8, %v2036_v38, %v2000_v14 }
0x17a4   :  { %v2021_v22 = vpop.permute.xlu0 %2020  ;;  %v2040_v27 = vsel %vm2039_vm10, %v2038_v40, %v2007_v17 }
0x17a5   :  { %4021 = vmatmul.mubr.msk.f32.vlgmr.msra.gmra.mxu0 %vm2072_vm11, %v2040_v27  ;;  %v2026_v18 = vsel %vm90_vm0, %v2021_v22, %v2024_v15 }
0x17a6   :  { %4425 = vmatpush3.msra.mxu0 %v5631_v12  ;;  %2149 = vmatprep.mubr.f32.mxu0 %v4982_v1  ;;  %v2042_v35 = vsel %vm2037_vm8, %v2041_v29, %v2026_v18 }
0x17a7   :  { %4426 = vmatprep.subr.mxu0 %v4982_v1 }
0x17a8   :  { %v2029_v34 = vpop.permute.xlu0 %2028  ;;  %4427 = vmatpush3.msra.mxu0 %v5635_v60 }
0x17a9   :  { %v2034_v36 = vsel %vm90_vm0, %v2029_v34, %v2032_v32  ;;  %4428 = vmatprep.subr.mxu0 %v4982_v1 }
0x17aa   :  { %v2043_v37 = vsel %vm2039_vm10, %v2042_v35, %v2034_v36  ;;  %4429 = vmatpush3.msra.mxu0 %v5638_v47 }
0x17ab   :  { %4022 = vmatmul.mubr.msk.f32.gmra.mxu0 %vm2072_vm11, %v2043_v37  ;;  %4430 = vmatprep.subr.mxu0 %v4982_v1 }
0x17ac   :  { %4431 = vmatpush3.msra.mxu0 %v5643_v63  ;;  %4432 = vmatprep.mubr.msk.f32.mxu0 %vm4983_vm3, %v4982_v1 }
0x17ad   :  { %4435 = vmatprep.subr.mxu0 %v4982_v1 }
0x17af   :  { %4433 = vmatmul.mubr.f32.vlgmr.msra.gmra.mxu0 %v4982_v1 }
0x17b0   :  { %4436 = vmatpush3.msra.mxu0 %v5682_v4  ;;  %4443 = vmatprep.mubr.msk.f32.mxu0 %vm4983_vm3, %v4982_v1 }
0x17b1   :  { %4437 = vmatprep.subr.mxu0 %v4982_v1 }
0x17b2   :  { %4438 = vmatpush3.msra.mxu0 %v5685_v39 }
0x17b3   :  { %4439 = vmatprep.subr.mxu0 %v4982_v1 }
0x17b4   :  { %4440 = vmatpush3.msra.mxu0 %v5691_v44 }
0x17b5   :  { %4441 = vmatprep.subr.mxu0 %v4982_v1 }
0x17b6   :  { %4442 = vmatpush3.msra.mxu0 %v5695_v41 }
0x17b7   :  { %4444 = vmatmul.mubr.f32.vlgmr.msra.gmra.mxu0 %v4982_v1  ;;  %4457 = vmatprep.subr.mxu0 %v4982_v1 }
0x17b8   :  { %4458 = vmatpush3.msra.mxu0 %v5682_v4  ;;  %4465 = vmatprep.mubr.msk.f32.mxu0 %vm4983_vm3, %v4982_v1 }
0x17b9   :  { %4459 = vmatprep.subr.mxu0 %v4982_v1 }
0x17ba   :  { %4460 = vmatpush3.msra.mxu0 %v5685_v39 }
0x17bb   :  { %4461 = vmatprep.subr.mxu0 %v4982_v1 }
0x17bc   :  { %4462 = vmatpush3.msra.mxu0 %v5691_v44 }
0x17bd   :  { %4463 = vmatprep.subr.mxu0 %v4982_v1 }
0x17be   :  { %4464 = vmatpush3.msra.mxu0 %v5695_v41 }
0x17bf   :  { %4479 = vmatprep.subr.mxu0 %v4982_v1 }
0x1865   :  { %v2145_v43 = vpop.f32.mrf.mxu0 }
0x1866   :  { %v5723_v54 = vadd.f32 %v2145_v43, %v2065_v61 }
0x1867   :  { %v2147_v46 = vpop.f32.mrf.mxu0 }
0x1868   :  { %v5717_v9 = vadd.f32 %v2147_v46, %v2069_v45 }
0x186b   :  { %v2151_v7 = vpop.f32.mrf.mxu0 }
0x186c   :  { %v5721_v3 = vadd.f32 %v2151_v7, %v2065_v61 }
0x186d   :  { %v2153_v56 = vpop.f32.mrf.mxu0 }
0x186e   :  { %v5726_v2 = vadd.f32 %v2153_v56, %v2069_v45 }
0x186f   :  { %v2230_v0 = vpop.f32.mrf.mxu0 }
0x1870   :  { %v2234_v48 = vadd.f32 %v2230_v0, %v5723_v54 }
0x1871   :  { %v4434_v49 = vpop.f32.mrf.mxu0 }
0x1872   :  { %v4023_v52 = vmul.f32 -1.442695, %v2234_v48 }
0x1874   :  { %4775 = vpow2.f32 %v4023_v52 }
0x1877   :  { %v2301_v31 = vpop.f32.mrf.mxu0 }
0x1878   :  { %v2306_v53 = vrot.slane %v2301_v31, 2 }
0x1879   :  { %v4445_v51 = vpop.f32.mrf.mxu0 }
0x187a   :  { %v2308_v30 = vadd.f32 %v2306_v53, %v5726_v2 }
0x187c   :  { %v4024_v33 = vmul.f32 -1.442695, %v2308_v30 }
0x187e   :  { %4777 = vpow2.f32 %v4024_v33 }
0x187f   :  { %4779 = vtanh.f32 %v2234_v48 }
0x1881   :  { %v4776_v6 = vpop.eup %4775 }
0x1882   :  { %v2313_v57 = vadd.f32 1.0, %v4776_v6 }
0x1884   :  { %4781 = vrcp.f32 %v2313_v57 }
0x1885   :  { %4783 = vtanh.f32 %v2308_v30 }
0x188b   :  { %v4778_v58 = vpop.eup %4777 }
0x188c   :  { %v2338_v50 = vadd.f32 1.0, %v4778_v58  ;;  %v4780_v62 = vpop.eup %4779 }
0x188e   :  { %4785 = vrcp.f32 %v2338_v50 }
0x1891   :  { %v4782_v16 = vpop.eup %4781 }
0x1892   :  { %v2316_v19 = vsel %vm5208_vm7, %v4780_v62, %v4782_v16  ;;  %v4784_v23 = vpop.eup %4783 }
0x1893   :  { %2319 = vrot.lane.b32.xlu0 %v2316_v19, %s4984_s3  ;;  %v2317_v11 = vmul.f32 0.0, %v2316_v19 }
0x189b   :  { %v4786_v25 = vpop.eup %4785 }
0x189c   :  { %v2341_v20 = vsel %vm5208_vm7, %v4784_v23, %v4786_v25 }
0x189d   :  { %2344 = vrot.lane.b32.xlu1 %v2341_v20, %s4984_s3  ;;  %v2342_v59 = vmul.f32 0.0, %v2341_v20 }
0x1905   :  { %v2320_v5 = vpop.permute.xlu0 %2319 }
0x1906   :  { %v2322_v8 = vmul.f32 %v2320_v5, %v2316_v19 }
0x1908   :  { %2324 = vrot.lane.b32.xlu0 %v2322_v8, %s4985_s0 }
0x190f   :  { %v2345_v21 = vpop.permute.xlu1 %2344 }
0x1910   :  { %v2347_v10 = vmul.f32 %v2345_v21, %v2341_v20 }
0x1912   :  { %2349 = vrot.lane.b32.xlu1 %v2347_v10, %s4985_s0 }
0x197a   :  { %v2325_v13 = vpop.permute.xlu0 %2324 }
0x197b   :  { %v5737_v26 = vadd.f32 %v2325_v13, %v2317_v11 }
0x197d   :  { %4787 = vtanh.f32 %v5737_v26  ;;  %v2527_v50 = vrot.slane %v5737_v26, 6 }
0x1984   :  { %v2350_v14 = vpop.permute.xlu1 %2349 }
0x1985   :  { %v5740_v15 = vadd.f32 %v2350_v14, %v2342_v59 }
0x1987   :  { %4789 = vtanh.f32 %v5740_v15  ;;  %v2555_v23 = vrot.slane %v5740_v15, 2 }
0x198a   :  { %v4788_v38 = vpop.eup %4787 }
0x198b   :  { %2330 = vrot.lane.b32.xlu0 %v4788_v38, %s4984_s3 }
0x1994   :  { %v4790_v17 = vpop.eup %4789 }
0x1995   :  { %2355 = vrot.lane.b32.xlu1 %v4790_v17, %s4984_s3 }
0x19fd   :  { %v2331_v40 = vpop.permute.xlu0 %2330 }
0x19fe   :  { %v2333_v22 = vmul.f32 %v2331_v40, %v2316_v19 }
0x1a00   :  { %2360 = vrot.lane.b32.xlu0 %v2333_v22, %s4985_s0 }
0x1a07   :  { %v2356_v27 = vpop.permute.xlu1 %2355 }
0x1a08   :  { %v5746_v24 = vmul.f32 %v2356_v27, %v2341_v20 }
0x1a0a   :  { %v2439_v18 = vrot.slane %v5746_v24, 6 }
0x1a0c   :  { %2440 = vrot.lane.b32.xlu1 %v2439_v18, %s4985_s0 }
0x1a72   :  { %v5752_v28 = vpop.permute.xlu0 %2360 }
0x1a73   :  { %4455 = vmatmul.mubr.msk.f32.vlgmr.msra.gmra.mxu1 %vm90_vm0, %v5752_v28 }
0x1a74   :  { %4469 = vmatpush3.msra.mxu1 %v5631_v12  ;;  %4476 = vmatprep.mubr.msk.f32.mxu1 %vm4983_vm3, %v4982_v1 }
0x1a75   :  { %4470 = vmatprep.subr.mxu1 %v4982_v1 }
0x1a76   :  { %4471 = vmatpush3.msra.mxu1 %v5635_v60 }
0x1a77   :  { %4472 = vmatprep.subr.mxu1 %v4982_v1 }
0x1a78   :  { %4473 = vmatpush3.msra.mxu1 %v5638_v47 }
0x1a79   :  { %4474 = vmatprep.subr.mxu1 %v4982_v1 }
0x1a7a   :  { %4475 = vmatpush3.msra.mxu1 %v5643_v63 }
0x1a7b   :  { %4490 = vmatprep.subr.mxu1 %v4982_v1 }
0x1a7e   :  { %v2441_v29 = vpop.permute.xlu1 %2440 }
0x1a7f   :  { %4466 = vmatmul.mubr.msk.f32.vlgmr.msra.gmra.mxu0 %vm90_vm0, %v2441_v29 }
0x1a80   :  { %4480 = vmatpush3.msra.mxu0 %v5682_v4  ;;  %4487 = vmatprep.mubr.msk.f32.mxu0 %vm4983_vm3, %v4982_v1 }
0x1a81   :  { %4481 = vmatprep.subr.mxu0 %v4982_v1 }
0x1a82   :  { %4482 = vmatpush3.msra.mxu0 %v5685_v39 }
0x1a83   :  { %4483 = vmatprep.subr.mxu0 %v4982_v1 }
0x1a84   :  { %4484 = vmatpush3.msra.mxu0 %v5691_v44 }
0x1a85   :  { %4485 = vmatprep.subr.mxu0 %v4982_v1 }
0x1a86   :  { %4486 = vmatpush3.msra.mxu0 %v5695_v41 }
0x1a87   :  { %4501 = vmatprep.subr.mxu0 %v4982_v1 }
0x1b33   :  { %v2430_v32 = vpop.f32.mrf.mxu1 }
0x1b34   :  { %v2435_v34 = vrot.slane %v2430_v32, 6 }
0x1b35   :  { %v4456_v35 = vpop.f32.mrf.mxu1 }
0x1b36   :  { %v2437_v36 = vadd.f32 %v2435_v34, %v5723_v54 }
0x1b38   :  { %v4027_v37 = vmul.f32 -1.442695, %v2437_v36 }
0x1b3a   :  { %4791 = vpow2.f32 %v4027_v37 }
0x1b3f   :  { %v2510_v42 = vpop.f32.mrf.mxu0 }
0x1b40   :  { %v2515_v45 = vrot.slane %v2510_v42, 4 }
0x1b41   :  { %v4467_v43 = vpop.f32.mrf.mxu0 }
0x1b42   :  { %v2517_v46 = vadd.f32 %v2515_v45, %v5726_v2 }
0x1b44   :  { %v4028_v61 = vmul.f32 -1.442695, %v2517_v46 }
0x1b46   :  { %4793 = vpow2.f32 %v4028_v61 }
0x1b47   :  { %v4792_v7 = vpop.eup %4791  ;;  %4795 = vtanh.f32 %v2437_v36 }
0x1b48   :  { %v2522_v56 = vadd.f32 1.0, %v4792_v7 }
0x1b4a   :  { %4797 = vrcp.f32 %v2522_v56 }
0x1b4b   :  { %4799 = vtanh.f32 %v2517_v46 }
0x1b53   :  { %v4794_v0 = vpop.eup %4793 }
0x1b54   :  { %v2550_v48 = vadd.f32 1.0, %v4794_v0  ;;  %v4796_v49 = vpop.eup %4795 }
0x1b56   :  { %4801 = vrcp.f32 %v2550_v48 }
0x1b57   :  { %v4798_v52 = vpop.eup %4797 }
0x1b58   :  { %v2525_v31 = vsel %vm5208_vm7, %v4796_v49, %v4798_v52  ;;  %v4800_v53 = vpop.eup %4799 }
0x1b59   :  { %2531 = vrot.lane.b32.xlu0 %v2525_v31, %s4984_s3  ;;  %v2529_v62 = vmul.f32 %v2527_v50, %v2525_v31 }
0x1b63   :  { %v4802_v51 = vpop.eup %4801 }
0x1b64   :  { %v2553_v30 = vsel %vm5208_vm7, %v4800_v53, %v4802_v51 }
0x1b65   :  { %2559 = vrot.lane.b32.xlu1 %v2553_v30, %s4984_s3  ;;  %v2557_v25 = vmul.f32 %v2555_v23, %v2553_v30 }
0x1bcb   :  { %v2532_v33 = vpop.permute.xlu0 %2531 }
0x1bcc   :  { %v2534_v6 = vmul.f32 %v2532_v33, %v2525_v31 }
0x1bce   :  { %2536 = vrot.lane.b32.xlu0 %v2534_v6, %s4985_s0 }
0x1bd7   :  { %v2560_v57 = vpop.permute.xlu1 %2559 }
0x1bd8   :  { %v2562_v58 = vmul.f32 %v2560_v57, %v2553_v30 }
0x1bda   :  { %2564 = vrot.lane.b32.xlu1 %v2562_v58, %s4985_s0 }
0x1c40   :  { %v2537_v16 = vpop.permute.xlu0 %2536 }
0x1c41   :  { %v5788_v19 = vadd.f32 %v2537_v16, %v2529_v62 }
0x1c43   :  { %4803 = vtanh.f32 %v5788_v19 }
0x1c4c   :  { %v2565_v20 = vpop.permute.xlu1 %2564 }
0x1c4d   :  { %v5792_v5 = vadd.f32 %v2565_v20, %v2557_v25 }
0x1c4f   :  { %4805 = vtanh.f32 %v5792_v5  ;;  %v2771_v58 = vrot.slane %v5792_v5, 2 }
0x1c50   :  { %v4804_v8 = vpop.eup %4803 }
0x1c51   :  { %2542 = vrot.lane.b32.xlu0 %v4804_v8, %s4984_s3 }
0x1c5c   :  { %v4806_v21 = vpop.eup %4805 }
0x1c5d   :  { %2570 = vrot.lane.b32.xlu1 %v4806_v21, %s4984_s3 }
0x1cc3   :  { %v2543_v10 = vpop.permute.xlu0 %2542 }
0x1cc4   :  { %v2545_v11 = vmul.f32 %v2543_v10, %v2525_v31 }
0x1cc6   :  { %v2575_v13 = vrot.slane %v2545_v11, 2 }
0x1cc8   :  { %2576 = vrot.lane.b32.xlu0 %v2575_v13, %s4985_s0 }
0x1ccf   :  { %v2571_v26 = vpop.permute.xlu1 %2570 }
0x1cd0   :  { %v2573_v59 = vmul.f32 %v2571_v26, %v2553_v30  ;;  %v2743_v30 = vrot.slane %v5788_v19, 6 }
0x1cd2   :  { %v2655_v14 = vrot.slane %v2573_v59, 4 }
0x1cd4   :  { %2656 = vrot.lane.b32.xlu1 %v2655_v14, %s4985_s0 }
0x1d3a   :  { %v2577_v15 = vpop.permute.xlu0 %2576 }
0x1d3b   :  { %4477 = vmatmul.mubr.msk.f32.vlgmr.msra.gmra.mxu1 %vm90_vm0, %v2577_v15 }
0x1d3c   :  { %4491 = vmatpush3.msra.mxu1 %v5631_v12  ;;  %4498 = vmatprep.mubr.msk.f32.mxu1 %vm4983_vm3, %v4982_v1 }
0x1d3d   :  { %4492 = vmatprep.subr.mxu1 %v4982_v1 }
0x1d3e   :  { %4493 = vmatpush3.msra.mxu1 %v5635_v60 }
0x1d3f   :  { %4494 = vmatprep.subr.mxu1 %v4982_v1 }
0x1d40   :  { %4495 = vmatpush3.msra.mxu1 %v5638_v47 }
0x1d41   :  { %4496 = vmatprep.subr.mxu1 %v4982_v1 }
0x1d42   :  { %4497 = vmatpush3.msra.mxu1 %v5643_v63 }
0x1d43   :  { %4512 = vmatprep.subr.mxu1 %v4982_v1 }
0x1d46   :  { %v2657_v38 = vpop.permute.xlu1 %2656 }
0x1d47   :  { %4488 = vmatmul.mubr.msk.f32.vlgmr.msra.gmra.mxu0 %vm90_vm0, %v2657_v38 }
0x1d48   :  { %4502 = vmatpush3.msra.mxu0 %v5682_v4  ;;  %4509 = vmatprep.mubr.msk.f32.mxu0 %vm4983_vm3, %v4982_v1 }
0x1d49   :  { %4503 = vmatprep.subr.mxu0 %v4982_v1 }
0x1d4a   :  { %4504 = vmatpush3.msra.mxu0 %v5685_v39 }
0x1d4b   :  { %4505 = vmatprep.subr.mxu0 %v4982_v1 }
0x1d4c   :  { %4506 = vmatpush3.msra.mxu0 %v5691_v44 }
0x1d4d   :  { %4507 = vmatprep.subr.mxu0 %v4982_v1 }
0x1d4e   :  { %4508 = vmatpush3.msra.mxu0 %v5695_v41 }
0x1d4f   :  { %4523 = vmatprep.subr.mxu0 %v4982_v1 }
0x1dfb   :  { %v2646_v17 = vpop.f32.mrf.mxu1 }
0x1dfc   :  { %v2651_v40 = vrot.slane %v2646_v17, 4 }
0x1dfd   :  { %v4478_v22 = vpop.f32.mrf.mxu1 }
0x1dfe   :  { %v2653_v27 = vadd.f32 %v2651_v40, %v5723_v54 }
0x1e00   :  { %v4031_v29 = vmul.f32 -1.442695, %v2653_v27 }
0x1e02   :  { %4807 = vpow2.f32 %v4031_v29 }
0x1e07   :  { %v2726_v32 = vpop.f32.mrf.mxu0 }
0x1e08   :  { %v2731_v34 = vrot.slane %v2726_v32, 6 }
0x1e09   :  { %v4489_v35 = vpop.f32.mrf.mxu0 }
0x1e0a   :  { %v2733_v36 = vadd.f32 %v2731_v34, %v5726_v2 }
0x1e0c   :  { %v4032_v37 = vmul.f32 -1.442695, %v2733_v36 }
0x1e0e   :  { %4809 = vpow2.f32 %v4032_v37 }
0x1e0f   :  { %v4808_v42 = vpop.eup %4807  ;;  %4811 = vtanh.f32 %v2653_v27 }
0x1e10   :  { %v2738_v45 = vadd.f32 1.0, %v4808_v42 }
0x1e12   :  { %4813 = vrcp.f32 %v2738_v45 }
0x1e13   :  { %4815 = vtanh.f32 %v2733_v36 }
0x1e1b   :  { %v4810_v43 = vpop.eup %4809 }
0x1e1c   :  { %v2766_v46 = vadd.f32 1.0, %v4810_v43  ;;  %v4812_v61 = vpop.eup %4811 }
0x1e1e   :  { %4817 = vrcp.f32 %v2766_v46 }
0x1e1f   :  { %v4814_v7 = vpop.eup %4813 }
0x1e20   :  { %v2741_v56 = vsel %vm5208_vm7, %v4812_v61, %v4814_v7  ;;  %v4816_v0 = vpop.eup %4815 }
0x1e21   :  { %2747 = vrot.lane.b32.xlu0 %v2741_v56, %s4984_s3  ;;  %v2745_v33 = vmul.f32 %v2743_v30, %v2741_v56 }
0x1e2b   :  { %v4818_v48 = vpop.eup %4817 }
0x1e2c   :  { %v2769_v49 = vsel %vm5208_vm7, %v4816_v0, %v4818_v48 }
0x1e2d   :  { %2775 = vrot.lane.b32.xlu1 %v2769_v49, %s4984_s3  ;;  %v2773_v50 = vmul.f32 %v2771_v58, %v2769_v49 }
0x1e93   :  { %v2748_v52 = vpop.permute.xlu0 %2747 }
0x1e94   :  { %v2750_v31 = vmul.f32 %v2748_v52, %v2741_v56 }
0x1e96   :  { %2752 = vrot.lane.b32.xlu0 %v2750_v31, %s4985_s0 }
0x1e9f   :  { %v2776_v53 = vpop.permute.xlu1 %2775 }
0x1ea0   :  { %v2778_v51 = vmul.f32 %v2776_v53, %v2769_v49 }
0x1ea2   :  { %2780 = vrot.lane.b32.xlu1 %v2778_v51, %s4985_s0 }
0x1f08   :  { %v2753_v6 = vpop.permute.xlu0 %2752 }
0x1f09   :  { %v5832_v57 = vadd.f32 %v2753_v6, %v2745_v33 }
0x1f0b   :  { %4819 = vtanh.f32 %v5832_v57 }
0x1f14   :  { %v2781_v62 = vpop.permute.xlu1 %2780 }
0x1f15   :  { %v5836_v16 = vadd.f32 %v2781_v62, %v2773_v50 }
0x1f17   :  { %4821 = vtanh.f32 %v5836_v16  ;;  %v2984_v52 = vrot.slane %v5836_v16, 2 }
0x1f18   :  { %v4820_v23 = vpop.eup %4819 }
0x1f19   :  { %2758 = vrot.lane.b32.xlu0 %v4820_v23, %s4984_s3 }
0x1f24   :  { %v4822_v25 = vpop.eup %4821 }
0x1f25   :  { %2786 = vrot.lane.b32.xlu1 %v4822_v25, %s4984_s3 }
0x1f8b   :  { %v2759_v19 = vpop.permute.xlu0 %2758 }
0x1f8c   :  { %v2761_v20 = vmul.f32 %v2759_v19, %v2741_v56  ;;  %v2956_v56 = vrot.slane %v5832_v57, 6 }
0x1f8e   :  { %v2791_v8 = vrot.slane %v2761_v20, 4 }
0x1f90   :  { %2792 = vrot.lane.b32.xlu0 %v2791_v8, %s4985_s0 }
0x1f97   :  { %v2787_v21 = vpop.permute.xlu1 %2786 }
0x1f98   :  { %v2789_v10 = vmul.f32 %v2787_v21, %v2769_v49 }
0x1f9a   :  { %v2871_v5 = vrot.slane %v2789_v10, 2 }
0x1f9c   :  { %2872 = vrot.lane.b32.xlu1 %v2871_v5, %s4985_s0 }
0x2002   :  { %v2793_v11 = vpop.permute.xlu0 %2792 }
0x2003   :  { %4499 = vmatmul.mubr.msk.f32.vlgmr.msra.gmra.mxu1 %vm90_vm0, %v2793_v11 }
0x2004   :  { %4513 = vmatpush3.msra.mxu1 %v5631_v12  ;;  %4520 = vmatprep.mubr.msk.f32.mxu1 %vm4983_vm3, %v4982_v1 }
0x2005   :  { %4514 = vmatprep.subr.mxu1 %v4982_v1 }
0x2006   :  { %4515 = vmatpush3.msra.mxu1 %v5635_v60 }
0x2007   :  { %4516 = vmatprep.subr.mxu1 %v4982_v1 }
0x2008   :  { %4517 = vmatpush3.msra.mxu1 %v5638_v47 }
0x2009   :  { %4518 = vmatprep.subr.mxu1 %v4982_v1 }
0x200a   :  { %4519 = vmatpush3.msra.mxu1 %v5643_v63 }
0x200b   :  { %4534 = vmatprep.subr.mxu1 %v4982_v1 }
0x200e   :  { %v2873_v13 = vpop.permute.xlu1 %2872 }
0x200f   :  { %4510 = vmatmul.mubr.msk.f32.vlgmr.msra.gmra.mxu0 %vm90_vm0, %v2873_v13 }
0x2010   :  { %4524 = vmatpush3.msra.mxu0 %v5682_v4  ;;  %4531 = vmatprep.mubr.msk.f32.mxu0 %vm4983_vm3, %v4982_v1 }
0x2011   :  { %4525 = vmatprep.subr.mxu0 %v4982_v1 }
0x2012   :  { %4526 = vmatpush3.msra.mxu0 %v5685_v39 }
0x2013   :  { %4527 = vmatprep.subr.mxu0 %v4982_v1 }
0x2014   :  { %4528 = vmatpush3.msra.mxu0 %v5691_v44 }
0x2015   :  { %4529 = vmatprep.subr.mxu0 %v4982_v1 }
0x2016   :  { %4530 = vmatpush3.msra.mxu0 %v5695_v41 }
0x2017   :  { %4545 = vmatprep.subr.mxu0 %v4982_v1 }
0x20c3   :  { %v2862_v26 = vpop.f32.mrf.mxu1 }
0x20c4   :  { %v2867_v59 = vrot.slane %v2862_v26, 2 }
0x20c5   :  { %v4500_v14 = vpop.f32.mrf.mxu1 }
0x20c6   :  { %v2869_v15 = vadd.f32 %v2867_v59, %v5723_v54 }
0x20c8   :  { %v4035_v38 = vmul.f32 -1.442695, %v2869_v15 }
0x20ca   :  { %4823 = vpow2.f32 %v4035_v38 }
0x20cf   :  { %v2942_v17 = vpop.f32.mrf.mxu0 }
0x20d0   :  { %v2946_v40 = vadd.f32 %v2942_v17, %v5726_v2 }
0x20d1   :  { %v4511_v22 = vpop.f32.mrf.mxu0 }
0x20d2   :  { %v4036_v27 = vmul.f32 -1.442695, %v2946_v40 }
0x20d4   :  { %4825 = vpow2.f32 %v4036_v27 }
0x20d5   :  { %4827 = vtanh.f32 %v2869_v15 }
0x20d7   :  { %v4824_v29 = vpop.eup %4823 }
0x20d8   :  { %v2951_v32 = vadd.f32 1.0, %v4824_v29 }
0x20da   :  { %4829 = vrcp.f32 %v2951_v32 }
0x20db   :  { %4831 = vtanh.f32 %v2946_v40 }
0x20e1   :  { %v4826_v34 = vpop.eup %4825 }
0x20e2   :  { %v2979_v35 = vadd.f32 1.0, %v4826_v34  ;;  %v4828_v36 = vpop.eup %4827 }
0x20e4   :  { %4833 = vrcp.f32 %v2979_v35 }
0x20e7   :  { %v4830_v37 = vpop.eup %4829 }
0x20e8   :  { %v2954_v54 = vsel %vm5208_vm7, %v4828_v36, %v4830_v37  ;;  %v4832_v42 = vpop.eup %4831 }
0x20e9   :  { %2960 = vrot.lane.b32.xlu0 %v2954_v54, %s4984_s3  ;;  %v2958_v0 = vmul.f32 %v2956_v56, %v2954_v54 }
0x20f1   :  { %v4834_v2 = vpop.eup %4833 }
0x20f2   :  { %v2982_v45 = vsel %vm5208_vm7, %v4832_v42, %v4834_v2 }
0x20f3   :  { %2988 = vrot.lane.b32.xlu1 %v2982_v45, %s4984_s3  ;;  %v2986_v31 = vmul.f32 %v2984_v52, %v2982_v45 }
0x215b   :  { %v2961_v43 = vpop.permute.xlu0 %2960 }
0x215c   :  { %v2963_v46 = vmul.f32 %v2961_v43, %v2954_v54 }
0x215e   :  { %2965 = vrot.lane.b32.xlu0 %v2963_v46, %s4985_s0 }
0x2165   :  { %v2989_v61 = vpop.permute.xlu1 %2988 }
0x2166   :  { %v2991_v7 = vmul.f32 %v2989_v61, %v2982_v45 }
0x2168   :  { %2993 = vrot.lane.b32.xlu1 %v2991_v7, %s4985_s0 }
0x21d0   :  { %v2966_v48 = vpop.permute.xlu0 %2965 }
0x21d1   :  { %v5876_v49 = vadd.f32 %v2966_v48, %v2958_v0 }
0x21d3   :  { %4835 = vtanh.f32 %v5876_v49  ;;  %v3168_v37 = vrot.slane %v5876_v49, 6 }
0x21da   :  { %v2994_v53 = vpop.permute.xlu1 %2993 }
0x21db   :  { %v5880_v51 = vadd.f32 %v2994_v53, %v2986_v31 }
0x21dd   :  { %4837 = vtanh.f32 %v5880_v51 }
0x21e0   :  { %v4836_v30 = vpop.eup %4835 }
0x21e1   :  { %2971 = vrot.lane.b32.xlu0 %v4836_v30, %s4984_s3 }
0x21ea   :  { %v4838_v33 = vpop.eup %4837 }
0x21eb   :  { %2999 = vrot.lane.b32.xlu1 %v4838_v33, %s4984_s3 }
0x2253   :  { %v2972_v6 = vpop.permute.xlu0 %2971 }
0x2254   :  { %v2974_v57 = vmul.f32 %v2972_v6, %v2954_v54 }
0x2256   :  { %v3004_v58 = vrot.slane %v2974_v57, 6 }
0x2258   :  { %3005 = vrot.lane.b32.xlu1 %v3004_v58, %s4985_s0 }
0x225d   :  { %v3000_v50 = vpop.permute.xlu1 %2999 }
0x225e   :  { %v3002_v62 = vmul.f32 %v3000_v50, %v2982_v45  ;;  %v3196_v45 = vrot.slane %v5880_v51, 2 }
0x2260   :  { %3081 = vrot.lane.b32.xlu0 %v3002_v62, %s4985_s0 }
0x22ca   :  { %v3006_v16 = vpop.permute.xlu1 %3005 }
0x22cb   :  { %4521 = vmatmul.mubr.msk.f32.vlgmr.msra.gmra.mxu1 %vm90_vm0, %v3006_v16 }
0x22cc   :  { %4535 = vmatpush3.msra.mxu1 %v5631_v12  ;;  %4542 = vmatprep.mubr.msk.f32.mxu1 %vm4983_vm3, %v4982_v1 }
0x22cd   :  { %4536 = vmatprep.subr.mxu1 %v4982_v1 }
0x22ce   :  { %4537 = vmatpush3.msra.mxu1 %v5635_v60 }
0x22cf   :  { %4538 = vmatprep.subr.mxu1 %v4982_v1 }
0x22d0   :  { %4539 = vmatpush3.msra.mxu1 %v5638_v47 }
0x22d1   :  { %4540 = vmatprep.subr.mxu1 %v4982_v1 }
0x22d2   :  { %v3082_v23 = vpop.permute.xlu0 %3081  ;;  %4541 = vmatpush3.msra.mxu1 %v5643_v63 }
0x22d3   :  { %4532 = vmatmul.mubr.msk.f32.vlgmr.msra.gmra.mxu0 %vm90_vm0, %v3082_v23  ;;  %4556 = vmatprep.subr.mxu1 %v4982_v1 }
0x22d4   :  { %4546 = vmatpush3.msra.mxu0 %v5682_v4  ;;  %4553 = vmatprep.mubr.msk.f32.mxu0 %vm4983_vm3, %v4982_v1 }
0x22d5   :  { %4547 = vmatprep.subr.mxu0 %v4982_v1 }
0x22d6   :  { %4548 = vmatpush3.msra.mxu0 %v5685_v39 }
0x22d7   :  { %4549 = vmatprep.subr.mxu0 %v4982_v1 }
0x22d8   :  { %4550 = vmatpush3.msra.mxu0 %v5691_v44 }
0x22d9   :  { %4551 = vmatprep.subr.mxu0 %v4982_v1 }
0x22da   :  { %4552 = vmatpush3.msra.mxu0 %v5695_v41 }
0x22db   :  { %4567 = vmatprep.subr.mxu0 %v4982_v1 }
0x238b   :  { %v3075_v25 = vpop.f32.mrf.mxu1 }
0x238c   :  { %v3079_v19 = vadd.f32 %v3075_v25, %v5721_v3 }
0x238d   :  { %v4522_v20 = vpop.f32.mrf.mxu1 }
0x238e   :  { %v4039_v8 = vmul.f32 -1.442695, %v3079_v19 }
0x2390   :  { %4839 = vpow2.f32 %v4039_v8 }
0x2393   :  { %v3151_v21 = vpop.f32.mrf.mxu0 }
0x2394   :  { %v3156_v10 = vrot.slane %v3151_v21, 2 }
0x2395   :  { %v4533_v5 = vpop.f32.mrf.mxu0 }
0x2396   :  { %v3158_v11 = vadd.f32 %v3156_v10, %v5717_v9 }
0x2398   :  { %v4040_v13 = vmul.f32 -1.442695, %v3158_v11 }
0x239a   :  { %4841 = vpow2.f32 %v4040_v13 }
0x239b   :  { %4843 = vtanh.f32 %v3079_v19 }
0x239d   :  { %v4840_v26 = vpop.eup %4839 }
0x239e   :  { %v3163_v59 = vadd.f32 1.0, %v4840_v26 }
0x23a0   :  { %4845 = vrcp.f32 %v3163_v59 }
0x23a1   :  { %4847 = vtanh.f32 %v3158_v11 }
0x23a7   :  { %v4842_v14 = vpop.eup %4841 }
0x23a8   :  { %v3191_v15 = vadd.f32 1.0, %v4842_v14  ;;  %v4844_v38 = vpop.eup %4843 }
0x23aa   :  { %4849 = vrcp.f32 %v3191_v15 }
0x23ad   :  { %v4846_v17 = vpop.eup %4845 }
0x23ae   :  { %v3166_v40 = vsel %vm5208_vm7, %v4844_v38, %v4846_v17  ;;  %v4848_v22 = vpop.eup %4847 }
0x23af   :  { %3172 = vrot.lane.b32.xlu0 %v3166_v40, %s4984_s3  ;;  %v3170_v54 = vmul.f32 %v3168_v37, %v3166_v40 }
0x23b7   :  { %v4850_v27 = vpop.eup %4849 }
0x23b8   :  { %v3194_v29 = vsel %vm5208_vm7, %v4848_v22, %v4850_v27 }
0x23b9   :  { %3200 = vrot.lane.b32.xlu1 %v3194_v29, %s4984_s3  ;;  %v3198_v43 = vmul.f32 %v3196_v45, %v3194_v29 }
0x2421   :  { %v3173_v32 = vpop.permute.xlu0 %3172 }
0x2422   :  { %v3175_v34 = vmul.f32 %v3173_v32, %v3166_v40 }
0x2424   :  { %3177 = vrot.lane.b32.xlu0 %v3175_v34, %s4985_s0 }
0x242b   :  { %v3201_v35 = vpop.permute.xlu1 %3200 }
0x242c   :  { %v3203_v36 = vmul.f32 %v3201_v35, %v3194_v29 }
0x242e   :  { %3205 = vrot.lane.b32.xlu1 %v3203_v36, %s4985_s0 }
0x2496   :  { %v3178_v42 = vpop.permute.xlu0 %3177 }
0x2497   :  { %v5920_v2 = vadd.f32 %v3178_v42, %v3170_v54 }
0x2499   :  { %4851 = vtanh.f32 %v5920_v2  ;;  %v3383_v14 = vrot.slane %v5920_v2, 6 }
0x24a0   :  { %v3206_v46 = vpop.permute.xlu1 %3205 }
0x24a1   :  { %v5924_v61 = vadd.f32 %v3206_v46, %v3198_v43  ;;  %v4907_v43 = vld [vmem:[#allocation2 + $0x18] sm:$0xff]  ;;  %v4908_v46 = vld [vmem:[#allocation2 + $0x10] sm:$0xff] }
0x24a3   :  { %4853 = vtanh.f32 %v5924_v61 }
0x24a6   :  { %v4852_v7 = vpop.eup %4851 }
0x24a7   :  { %3183 = vrot.lane.b32.xlu0 %v4852_v7, %s4984_s3  ;;  %v4910_v7 = vld [vmem:[#allocation2] sm:$0xff] }
0x24b0   :  { %v4854_v56 = vpop.eup %4853 }
0x24b1   :  { %3211 = vrot.lane.b32.xlu1 %v4854_v56, %s4984_s3 }
0x2519   :  { %v3184_v0 = vpop.permute.xlu0 %3183 }
0x251a   :  { %v3186_v48 = vmul.f32 %v3184_v0, %v3166_v40  ;;  %v3411_v40 = vrot.slane %v5924_v61, 2  ;;  %v4909_v61 = vld [vmem:[#allocation2 + $0x8] sm:$0xff] }
0x251c   :  { %3216 = vrot.lane.b32.xlu0 %v3186_v48, %s4985_s0 }
0x2523   :  { %v3212_v49 = vpop.permute.xlu1 %3211 }
0x2524   :  { %v3214_v52 = vmul.f32 %v3212_v49, %v3194_v29 }
0x2526   :  { %v3295_v31 = vrot.slane %v3214_v52, 6 }
0x2528   :  { %3296 = vrot.lane.b32.xlu1 %v3295_v31, %s4985_s0 }
0x258e   :  { %v3217_v53 = vpop.permute.xlu0 %3216 }
0x258f   :  { %4543 = vmatmul.mubr.msk.f32.vlgmr.msra.gmra.mxu1 %vm90_vm0, %v3217_v53 }
0x2590   :  { %4557 = vmatpush3.msra.mxu1 %v5631_v12  ;;  %4564 = vmatprep.mubr.msk.f32.mxu1 %vm4983_vm3, %v4982_v1 }
0x2591   :  { %4558 = vmatprep.subr.mxu1 %v4982_v1 }
0x2592   :  { %4559 = vmatpush3.msra.mxu1 %v5635_v60 }
0x2593   :  { %4560 = vmatprep.subr.mxu1 %v4982_v1 }
0x2594   :  { %4561 = vmatpush3.msra.mxu1 %v5638_v47 }
0x2595   :  { %4562 = vmatprep.subr.mxu1 %v4982_v1 }
0x2596   :  { %4563 = vmatpush3.msra.mxu1 %v5643_v63 }
0x2597   :  { %4578 = vmatprep.subr.mxu1 %v4982_v1 }
0x259a   :  { %v3297_v51 = vpop.permute.xlu1 %3296 }
0x259b   :  { %4554 = vmatmul.mubr.msk.f32.vlgmr.msra.gmra.mxu0 %vm90_vm0, %v3297_v51 }
0x259c   :  { %4568 = vmatpush3.msra.mxu0 %v5682_v4  ;;  %4575 = vmatprep.mubr.msk.f32.mxu0 %vm4983_vm3, %v4982_v1 }
0x259d   :  { %4569 = vmatprep.subr.mxu0 %v4982_v1 }
0x259e   :  { %4570 = vmatpush3.msra.mxu0 %v5685_v39 }
0x259f   :  { %4571 = vmatprep.subr.mxu0 %v4982_v1 }
0x25a0   :  { %4572 = vmatpush3.msra.mxu0 %v5691_v44 }
0x25a1   :  { %4573 = vmatprep.subr.mxu0 %v4982_v1 }
0x25a2   :  { %4574 = vmatpush3.msra.mxu0 %v5695_v41 }
0x25a3   :  { %4589 = vmatprep.subr.mxu0 %v4982_v1 }
0x264f   :  { %v3286_v12 = vpop.f32.mrf.mxu1 }
0x2650   :  { %v3291_v60 = vrot.slane %v3286_v12, 6 }
0x2651   :  { %v4544_v47 = vpop.f32.mrf.mxu1 }
0x2652   :  { %v3293_v63 = vadd.f32 %v3291_v60, %v5721_v3 }
0x2654   :  { %v4043_v30 = vmul.f32 -1.442695, %v3293_v63 }
0x2656   :  { %4855 = vpow2.f32 %v4043_v30 }
0x265b   :  { %v3366_v33 = vpop.f32.mrf.mxu0 }
0x265c   :  { %v3371_v6 = vrot.slane %v3366_v33, 4 }
0x265d   :  { %v4555_v57 = vpop.f32.mrf.mxu0 }
0x265e   :  { %v3373_v58 = vadd.f32 %v3371_v6, %v5717_v9 }
0x2660   :  { %v4044_v50 = vmul.f32 -1.442695, %v3373_v58 }
0x2662   :  { %4857 = vpow2.f32 %v4044_v50 }
0x2663   :  { %v4856_v62 = vpop.eup %4855  ;;  %4859 = vtanh.f32 %v3293_v63 }
0x2664   :  { %v3378_v16 = vadd.f32 1.0, %v4856_v62 }
0x2666   :  { %4861 = vrcp.f32 %v3378_v16 }
0x2667   :  { %4863 = vtanh.f32 %v3373_v58 }
0x266f   :  { %v4858_v23 = vpop.eup %4857 }
0x2670   :  { %v3406_v25 = vadd.f32 1.0, %v4858_v23  ;;  %v4860_v19 = vpop.eup %4859 }
0x2672   :  { %4865 = vrcp.f32 %v3406_v25 }
0x2673   :  { %v4862_v20 = vpop.eup %4861 }
0x2674   :  { %v3381_v8 = vsel %vm5208_vm7, %v4860_v19, %v4862_v20  ;;  %v4864_v21 = vpop.eup %4863 }
0x2675   :  { %3387 = vrot.lane.b32.xlu0 %v3381_v8, %s4984_s3  ;;  %v3385_v15 = vmul.f32 %v3383_v14, %v3381_v8 }
0x267f   :  { %v4866_v10 = vpop.eup %4865 }
0x2680   :  { %v3409_v5 = vsel %vm5208_vm7, %v4864_v21, %v4866_v10 }
0x2681   :  { %3415 = vrot.lane.b32.xlu1 %v3409_v5, %s4984_s3  ;;  %v3413_v22 = vmul.f32 %v3411_v40, %v3409_v5 }
0x26e7   :  { %v3388_v11 = vpop.permute.xlu0 %3387 }
0x26e8   :  { %v3390_v13 = vmul.f32 %v3388_v11, %v3381_v8 }
0x26ea   :  { %3392 = vrot.lane.b32.xlu0 %v3390_v13, %s4985_s0 }
0x26f3   :  { %v3416_v26 = vpop.permute.xlu1 %3415 }
0x26f4   :  { %v3418_v59 = vmul.f32 %v3416_v26, %v3409_v5 }
0x26f6   :  { %3420 = vrot.lane.b32.xlu1 %v3418_v59, %s4985_s0 }
0x275c   :  { %v3393_v38 = vpop.permute.xlu0 %3392 }
0x275d   :  { %v5964_v17 = vadd.f32 %v3393_v38, %v3385_v15 }
0x275f   :  { %4867 = vtanh.f32 %v5964_v17  ;;  %v3599_v25 = vrot.slane %v5964_v17, 6 }
0x2768   :  { %v3421_v27 = vpop.permute.xlu1 %3420 }
0x2769   :  { %v5968_v29 = vadd.f32 %v3421_v27, %v3413_v22 }
0x276b   :  { %4869 = vtanh.f32 %v5968_v29  ;;  %v3627_v21 = vrot.slane %v5968_v29, 2 }
0x276c   :  { %v4868_v32 = vpop.eup %4867 }
0x276d   :  { %3398 = vrot.lane.b32.xlu0 %v4868_v32, %s4984_s3 }
0x2778   :  { %v4870_v34 = vpop.eup %4869 }
0x2779   :  { %3426 = vrot.lane.b32.xlu1 %v4870_v34, %s4984_s3 }
0x27df   :  { %v3399_v35 = vpop.permute.xlu0 %3398 }
0x27e0   :  { %v3401_v36 = vmul.f32 %v3399_v35, %v3381_v8 }
0x27e2   :  { %v3431_v37 = vrot.slane %v3401_v36, 2 }
0x27e4   :  { %3432 = vrot.lane.b32.xlu0 %v3431_v37, %s4985_s0 }
0x27eb   :  { %v3427_v54 = vpop.permute.xlu1 %3426 }
0x27ec   :  { %v3429_v42 = vmul.f32 %v3427_v54, %v3409_v5 }
0x27ee   :  { %v3511_v2 = vrot.slane %v3429_v42, 4 }
0x27f0   :  { %3512 = vrot.lane.b32.xlu1 %v3511_v2, %s4985_s0 }
0x2856   :  { %v3433_v45 = vpop.permute.xlu0 %3432 }
0x2857   :  { %4565 = vmatmul.mubr.msk.f32.vlgmr.msra.gmra.mxu1 %vm90_vm0, %v3433_v45 }
0x2858   :  { %4579 = vmatpush3.msra.mxu1 %v4907_v43  ;;  %4586 = vmatprep.mubr.msk.f32.mxu1 %vm4983_vm3, %v4982_v1 }
0x2859   :  { %4580 = vmatprep.subr.mxu1 %v4982_v1 }
0x285a   :  { %4581 = vmatpush3.msra.mxu1 %v4908_v46 }
0x285b   :  { %4582 = vmatprep.subr.mxu1 %v4982_v1 }
0x285c   :  { %4583 = vmatpush3.msra.mxu1 %v4909_v61 }
0x285d   :  { %4584 = vmatprep.subr.mxu1 %v4982_v1 }
0x285e   :  { %4585 = vmatpush3.msra.mxu1 %v4910_v7 }
0x285f   :  { %4600 = vmatprep.subr.mxu1 %v4982_v1 }
0x2862   :  { %v3513_v56 = vpop.permute.xlu1 %3512 }
0x2863   :  { %4576 = vmatmul.mubr.msk.f32.vlgmr.msra.gmra.mxu0 %vm90_vm0, %v3513_v56 }
0x2864   :  { %4590 = vmatpush3.msra.mxu0 %v5682_v4  ;;  %4597 = vmatprep.mubr.msk.f32.mxu0 %vm4983_vm3, %v4982_v1 }
0x2865   :  { %4591 = vmatprep.subr.mxu0 %v4982_v1 }
0x2866   :  { %4592 = vmatpush3.msra.mxu0 %v5685_v39 }
0x2867   :  { %4593 = vmatprep.subr.mxu0 %v4982_v1 }
0x2868   :  { %4594 = vmatpush3.msra.mxu0 %v5691_v44 }
0x2869   :  { %4595 = vmatprep.subr.mxu0 %v4982_v1 }
0x286a   :  { %4596 = vmatpush3.msra.mxu0 %v5695_v41 }
0x2917   :  { %v3502_v0 = vpop.f32.mrf.mxu1 }
0x2918   :  { %v3507_v48 = vrot.slane %v3502_v0, 4 }
0x2919   :  { %v4566_v49 = vpop.f32.mrf.mxu1 }
0x291a   :  { %v3509_v4 = vadd.f32 %v3507_v48, %v5721_v3 }
0x291c   :  { %v4047_v52 = vmul.f32 -1.442695, %v3509_v4 }
0x291e   :  { %4871 = vpow2.f32 %v4047_v52 }
0x2923   :  { %v3582_v31 = vpop.f32.mrf.mxu0 }
0x2924   :  { %v3587_v53 = vrot.slane %v3582_v31, 6 }
0x2925   :  { %v4577_v51 = vpop.f32.mrf.mxu0 }
0x2926   :  { %v3589_v39 = vadd.f32 %v3587_v53, %v5717_v9 }
0x2928   :  { %v4048_v12 = vmul.f32 -1.442695, %v3589_v39 }
0x292a   :  { %4873 = vpow2.f32 %v4048_v12 }
0x292b   :  { %v4872_v60 = vpop.eup %4871  ;;  %4875 = vtanh.f32 %v3509_v4 }
0x292c   :  { %v3594_v44 = vadd.f32 1.0, %v4872_v60 }
0x292e   :  { %4877 = vrcp.f32 %v3594_v44 }
0x292f   :  { %4879 = vtanh.f32 %v3589_v39 }
0x2937   :  { %v4874_v47 = vpop.eup %4873 }
0x2938   :  { %v3622_v41 = vadd.f32 1.0, %v4874_v47  ;;  %v4876_v63 = vpop.eup %4875 }
0x293a   :  { %4881 = vrcp.f32 %v3622_v41 }
0x293b   :  { %v4878_v30 = vpop.eup %4877 }
0x293c   :  { %v3597_v33 = vsel %vm5208_vm7, %v4876_v63, %v4878_v30  ;;  %v4880_v6 = vpop.eup %4879  ;;  %v3889_v63 = vld [vmem:[%s6121_s10 + $0x78] sm:$0xff]  ;;  %v3888_v30 = vld [vmem:[%s6121_s10 + $0x70] sm:$0xff] }
0x293d   :  { %3603 = vrot.lane.b32.xlu0 %v3597_v33, %s4984_s3  ;;  %v3601_v19 = vmul.f32 %v3599_v25, %v3597_v33  ;;  %v3880_v25 = vld [vmem:[%s6121_s10 + $0x30] sm:$0xff] }
0x2947   :  { %v4882_v57 = vpop.eup %4881 }
0x2948   :  { %v3625_v58 = vsel %vm5208_vm7, %v4880_v6, %v4882_v57  ;;  %v3886_v6 = vld [vmem:[%s6121_s10 + $0x60] sm:$0xff]  ;;  %v3885_v57 = vld [vmem:[%s6121_s10 + $0x58] sm:$0xff] }
0x2949   :  { %3631 = vrot.lane.b32.xlu1 %v3625_v58, %s4984_s3  ;;  %v3629_v10 = vmul.f32 %v3627_v21, %v3625_v58  ;;  %v3876_v21 = vld [vmem:[%s6121_s10 + $0x10] sm:$0xff] }
0x29af   :  { %v3604_v50 = vpop.permute.xlu0 %3603 }
0x29b0   :  { %v3606_v62 = vmul.f32 %v3604_v50, %v3597_v33 }
0x29b2   :  { %3608 = vrot.lane.b32.xlu0 %v3606_v62, %s4985_s0  ;;  %v3883_v62 = vld [vmem:[%s6121_s10 + $0x48] sm:$0xff] }
0x29bb   :  { %v3632_v16 = vpop.permute.xlu1 %3631 }
0x29bc   :  { %v3634_v23 = vmul.f32 %v3632_v16, %v3625_v58  ;;  %v3882_v16 = vld [vmem:[%s6121_s10 + $0x40] sm:$0xff] }
0x29be   :  { %3636 = vrot.lane.b32.xlu1 %v3634_v23, %s4985_s0  ;;  %v3881_v23 = vld [vmem:[%s6121_s10 + $0x38] sm:$0xff] }
0x2a24   :  { %v3609_v20 = vpop.permute.xlu0 %3608 }
0x2a25   :  { %v3611_v8 = vadd.f32 %v3609_v20, %v3601_v19  ;;  %v3879_v19 = vld [vmem:[%s6121_s10 + $0x28] sm:$0xff]  ;;  %v3878_v20 = vld [vmem:[%s6121_s10 + $0x20] sm:$0xff] }
0x2a27   :  { %4883 = vtanh.f32 %v3611_v8  ;;  %v3812_v53 = vrot.slane %v3611_v8, 6  ;;  %v3877_v8 = vld [vmem:[%s6121_s10 + $0x18] sm:$0xff] }
0x2a30   :  { %v3637_v5 = vpop.permute.xlu1 %3636 }
0x2a31   :  { %v3639_v11 = vadd.f32 %v3637_v5, %v3629_v10  ;;  %v3875_v10 = vld [vmem:[%s6121_s10 + $0x8] sm:$0xff] }
0x2a33   :  { %4885 = vtanh.f32 %v3639_v11  ;;  %v3840_v12 = vrot.slane %v3639_v11, 2 }
0x2a34   :  { %v4884_v13 = vpop.eup %4883 }
0x2a35   :  { %3614 = vrot.lane.b32.xlu0 %v4884_v13, %s4984_s3  ;;  %v3874_v13 = vld [vmem:[%s6121_s10] sm:$0xff] }
0x2a40   :  { %v4886_v26 = vpop.eup %4885 }
0x2a41   :  { %3642 = vrot.lane.b32.xlu1 %v4886_v26, %s4984_s3 }
0x2aa7   :  { %v3615_v59 = vpop.permute.xlu0 %3614 }
0x2aa8   :  { %v3617_v14 = vmul.f32 %v3615_v59, %v3597_v33  ;;  %v3887_v33 = vld [vmem:[%s6121_s10 + $0x68] sm:$0xff] }
0x2aaa   :  { %v3647_v15 = vrot.slane %v3617_v14, 4 }
0x2aac   :  { %3648 = vrot.lane.b32.xlu0 %v3647_v15, %s4985_s0 }
0x2ab3   :  { %v3643_v38 = vpop.permute.xlu1 %3642 }
0x2ab4   :  { %v3645_v17 = vmul.f32 %v3643_v38, %v3625_v58  ;;  %v3884_v58 = vld [vmem:[%s6121_s10 + $0x50] sm:$0xff] }
0x2ab6   :  { %v3727_v40 = vrot.slane %v3645_v17, 2 }
0x2ab8   :  { %3728 = vrot.lane.b32.xlu1 %v3727_v40, %s4985_s0 }
0x2b1e   :  { %v3649_v22 = vpop.permute.xlu0 %3648 }
0x2b1f   :  { %4587 = vmatmul.mubr.msk.f32.vlgmr.msra.gmra.mxu1 %vm90_vm0, %v3649_v22  ;;  %v4053_v22 = vld [vmem:[%s6122_s11] ss:$0 sm:$0xff] }
0x2b20   :  { %4632 = vmatprep.mubr.msk.f32.mxu1 %vm4983_vm3, %v4982_v1  ;;  %4601 = vmatpush3.msra.mxu1 %v3889_v63 }
0x2b21   :  { %4602 = vmatprep.subr.mxu1 %v4982_v1 }
0x2b22   :  { %4603 = vmatpush3.msra.mxu1 %v3888_v30 }
0x2b23   :  { %4604 = vmatprep.subr.mxu1 %v4982_v1 }
0x2b24   :  { %4605 = vmatpush3.msra.mxu1 %v3887_v33 }
0x2b25   :  { %4606 = vmatprep.subr.mxu1 %v4982_v1 }
0x2b26   :  { %4607 = vmatpush3.msra.mxu1 %v3886_v6 }
0x2b27   :  { %4608 = vmatprep.subr.mxu1 %v4982_v1 }
0x2b28   :  { %4609 = vmatpush3.msra.mxu1 %v3885_v57 }
0x2b29   :  { %4610 = vmatprep.subr.mxu1 %v4982_v1 }
0x2b2a   :  { %v3729_v27 = vpop.permute.xlu1 %3728  ;;  %4611 = vmatpush3.msra.mxu1 %v3884_v58 }
0x2b2b   :  { %4598 = vmatmul.mubr.msk.f32.vlgmr.msra.gmra.mxu0 %vm90_vm0, %v3729_v27  ;;  %4612 = vmatprep.subr.mxu1 %v4982_v1 }
0x2b2c   :  { %4613 = vmatpush3.msra.mxu1 %v3883_v62 }
0x2b2d   :  { %4614 = vmatprep.subr.mxu1 %v4982_v1 }
0x2b2e   :  { %4615 = vmatpush3.msra.mxu1 %v3882_v16 }
0x2b2f   :  { %4616 = vmatprep.subr.mxu1 %v4982_v1 }
0x2b30   :  { %4617 = vmatpush3.msra.mxu1 %v3881_v23 }
0x2b31   :  { %4618 = vmatprep.subr.mxu1 %v4982_v1 }
0x2b32   :  { %4619 = vmatpush3.msra.mxu1 %v3880_v25 }
0x2b33   :  { %4620 = vmatprep.subr.mxu1 %v4982_v1 }
0x2b34   :  { %4621 = vmatpush3.msra.mxu1 %v3879_v19 }
0x2b35   :  { %4622 = vmatprep.subr.mxu1 %v4982_v1 }
0x2b36   :  { %4623 = vmatpush3.msra.mxu1 %v3878_v20 }
0x2b37   :  { %4624 = vmatprep.subr.mxu1 %v4982_v1 }
0x2b38   :  { %4625 = vmatpush3.msra.mxu1 %v3877_v8 }
0x2b39   :  { %4626 = vmatprep.subr.mxu1 %v4982_v1 }
0x2b3a   :  { %4627 = vmatpush3.msra.mxu1 %v3876_v21 }
0x2b3b   :  { %4628 = vmatprep.subr.mxu1 %v4982_v1 }
0x2b3c   :  { %4629 = vmatpush3.msra.mxu1 %v3875_v10 }
0x2b3d   :  { %4630 = vmatprep.subr.mxu1 %v4982_v1 }
0x2b3e   :  { %4631 = vmatpush3.msra.mxu1 %v3874_v13 }
0x2bdf   :  { %v3718_v29 = vpop.f32.mrf.mxu1 }
0x2be0   :  { %v3723_v32 = vrot.slane %v3718_v29, 2 }
0x2be1   :  { %v4588_v34 = vpop.f32.mrf.mxu1 }
0x2be2   :  { %v3725_v35 = vadd.f32 %v3723_v32, %v5721_v3 }
0x2be4   :  { %v4051_v36 = vmul.f32 -1.442695, %v3725_v35 }
0x2be6   :  { %4887 = vpow2.f32 %v4051_v36 }
0x2beb   :  { %v3798_v37 = vpop.f32.mrf.mxu0 }
0x2bec   :  { %v3802_v54 = vadd.f32 %v3798_v37, %v5717_v9 }
0x2bed   :  { %v4599_v42 = vpop.f32.mrf.mxu0 }
0x2bee   :  { %v4052_v2 = vmul.f32 -1.442695, %v3802_v54 }
0x2bf0   :  { %4889 = vpow2.f32 %v4052_v2 }
0x2bf1   :  { %4891 = vtanh.f32 %v3725_v35 }
0x2bf3   :  { %v4888_v45 = vpop.eup %4887 }
0x2bf4   :  { %v3807_v43 = vadd.f32 1.0, %v4888_v45 }
0x2bf6   :  { %4893 = vrcp.f32 %v3807_v43 }
0x2bf7   :  { %4895 = vtanh.f32 %v3802_v54 }
0x2bfd   :  { %v4890_v46 = vpop.eup %4889 }
0x2bfe   :  { %v3835_v61 = vadd.f32 1.0, %v4890_v46  ;;  %v4892_v7 = vpop.eup %4891 }
0x2c00   :  { %4897 = vrcp.f32 %v3835_v61 }
0x2c03   :  { %v4894_v56 = vpop.eup %4893 }
0x2c04   :  { %v6016_v3 = vsel %vm5208_vm7, %v4892_v7, %v4894_v56  ;;  %v4896_v9 = vpop.eup %4895 }
0x2c05   :  { %3816 = vrot.lane.b32.xlu0 %v6016_v3, %s4984_s3  ;;  %v3814_v51 = vmul.f32 %v3812_v53, %v6016_v3 }
0x2c0d   :  { %v4898_v0 = vpop.eup %4897 }
0x2c0e   :  { %v6022_v48 = vsel %vm5208_vm7, %v4896_v9, %v4898_v0 }
0x2c0f   :  { %3844 = vrot.lane.b32.xlu1 %v6022_v48, %s4984_s3  ;;  %v3842_v60 = vmul.f32 %v3840_v12, %v6022_v48 }
0x2c77   :  { %v3817_v49 = vpop.permute.xlu0 %3816 }
0x2c78   :  { %v3819_v4 = vmul.f32 %v3817_v49, %v6016_v3 }
0x2c7a   :  { %3821 = vrot.lane.b32.xlu0 %v3819_v4, %s4985_s0 }
0x2c81   :  { %v3845_v52 = vpop.permute.xlu1 %3844 }
0x2c82   :  { %v3847_v31 = vmul.f32 %v3845_v52, %v6022_v48 }
0x2c84   :  { %3849 = vrot.lane.b32.xlu1 %v3847_v31, %s4985_s0 }
0x2cec   :  { %v3822_v39 = vpop.permute.xlu0 %3821 }
0x2ced   :  { %v3824_v55 = vadd.f32 %v3822_v39, %v3814_v51 }
0x2cef   :  { %4899 = vtanh.f32 %v3824_v55 }
0x2cf6   :  { %v3850_v44 = vpop.permute.xlu1 %3849 }
0x2cf7   :  { %v3852_v47 = vadd.f32 %v3850_v44, %v3842_v60 }
0x2cf9   :  { %4901 = vtanh.f32 %v3852_v47 }
0x2cfc   :  { %v4900_v41 = vpop.eup %4899 }
0x2cfd   :  { %3827 = vrot.lane.b32.xlu0 %v4900_v41, %s4984_s3 }
0x2d06   :  { %v4902_v50 = vpop.eup %4901 }
0x2d07   :  { %3855 = vrot.lane.b32.xlu1 %v4902_v50, %s4984_s3 }
0x2d6f   :  { %v3828_v5 = vpop.permute.xlu0 %3827 }
0x2d70   :  { %v3830_v11 = vmul.f32 %v3828_v5, %v6016_v3 }
0x2d72   :  { %v3865_v26 = vrot.slane %v3830_v11, 6 }
0x2d74   :  { %3866 = vrot.lane.b32.xlu1 %v3865_v26, %s4986_s24 }
0x2d79   :  { %v3856_v59 = vpop.permute.xlu1 %3855 }
0x2d7a   :  { %v3858_v14 = vmul.f32 %v3856_v59, %v6022_v48 }
0x2d7c   :  { %3861 = vrot.lane.b32.xlu0 %v3858_v14, %s4984_s3  ;;  %s4951_s3 = scalar_lea.vmem %s3976_s26, 32 }
0x2d7d   :  { %p4952_p10 = scmp.ne.s32.totalorder %s3976_s26, %s4951_s3  ;;  %p4957_p12 = scmp.lt.s32.totalorder %s4951_s3, %s4951_s3 }
0x2d7f   :  { %p4958_p13 = por %p4957_p12, %p4956_p11 }
0x2d81   :  { %p4959_p0 = pnand %p4958_p13, %p4952_p10 }
0x2de6   :  { %v3867_v38 = vpop.permute.xlu1 %3866 }
0x2dee   :  { %v3862_v15 = vpop.permute.xlu0 %3861 }
0x2def   :  { %v3870_v17 = vsel %vm90_vm0, %v5752_v28, %v3862_v15 }
0x2df0   :  { %v3871_v1 = vsel %vm2072_vm11, %v3870_v17, %v3867_v38 }
0x2df1   :  { %v3873_v40 = vsel %vm3872_vm12, %v3871_v1, %v2439_v18 }
0x2df2   :  { %4633 = vmatmul.mubr.f32.vlgmr.msra.gmra.mxu1 %v3873_v40 }
0x2eb2   :  { %v3963_v27 = vpop.f32.mrf.mxu1 }
0x2eb3   :  { %v3964_v29 = vadd.f32 %v4053_v22, %v3963_v27 }
0x2eb4   :  { %v4634_v32 = vpop.f32.mrf.mxu1 }
0x2eb5   :  { %3968 = vst.msk [vmem:[#allocation7] sm:$0x3] %vm3967_vm13, %v3964_v29 }
0x2eb6   :  { %4962 = shalt.err (!%p4959_p0)
}
0x2eb7   :  { %3978 = dma.vmem_to_hbm [thread:$0]  %s3976_s26, 32, %s6123_s12, [#allocation4]  }
0x2eb8   :  { %4975 = dma.done.wait [#allocation4], 32  }
0x2eb9   :  { %4976 = vsyncadd [#allocation4], 4294967264 }
0x2eba   :  { %3982 = vsyncpa [#allocation3], 1 }
0x2ebb   :  { %3983 = vsyncpa [#allocation6], 1 }
0x2ebc   :  { %3984 = vsyncpa [#allocation4], 1 }

</bundles_post_ra>
